<compile_context>
chip_gen: v7x
topology: tpu7x:2x2x1
jax: 0.10.0
libtpu: 0.0.40
codegen_flags: <defaults>
</compile_context>

<pallas_src>
import jax
import jax.numpy as jnp
from jax.experimental import pallas as pl
from jax.experimental.pallas import tpu as pltpu

EPS = 1e-5
LANES = 128                      # pad every channel dim to the 128-lane vreg width
MM_DTYPE = jnp.bfloat16          # matmul-input dtype (set jnp.float32 for exact f32 math)
VMEM_LIMIT_BYTES = 32 * 1024 * 1024


def _round_up(x, m):
    return (x + m - 1) // m * m


# --------------------------------------------------------------------------------------
# Kernel A: [optional BN(prev-stage stats) + ReLU] -> 1x1-conv matmul -> partial BN stats
# --------------------------------------------------------------------------------------
def _conv1x1_kernel_factory(tm, apply_bn, m_valid, mm_dtype):
    def _matmul_and_stats(xb, w_ref, o_ref, p_ref):
        y = jnp.dot(xb, w_ref[...], preferred_element_type=jnp.float32)
        if m_valid is not None:
            # rows beyond the true M are padding; zero them so BN stats stay exact
            row = (pl.program_id(0) * tm
                   + jax.lax.broadcasted_iota(jnp.int32, (tm, 1), 0))
            y = jnp.where(row < m_valid, y, 0.0)
        o_ref[...] = y
        p_ref[0:1, :] = jnp.sum(y, axis=0, keepdims=True)
        p_ref[1:2, :] = jnp.sum(y * y, axis=0, keepdims=True)

    if apply_bn:
        def kernel(x_ref, w_ref, scale_ref, shift_ref, o_ref, p_ref):
            x = x_ref[...].astype(jnp.float32)
            x = jnp.maximum(x * scale_ref[...] + shift_ref[...], 0.0)   # BN + ReLU in f32
            _matmul_and_stats(x.astype(mm_dtype), w_ref, o_ref, p_ref)
    else:
        def kernel(x_ref, w_ref, o_ref, p_ref):
            _matmul_and_stats(x_ref[...].astype(mm_dtype), w_ref, o_ref, p_ref)
    return kernel


def _conv1x1(x2d, w, *, tm, m_valid, scale_shift=None):
    Mp, K = x2d.shape
    CO = w.shape[1]
    G = Mp // tm
    mask_valid = m_valid if Mp != m_valid else None
    kernel = _conv1x1_kernel_factory(tm, scale_shift is not None, mask_valid, w.dtype)

    in_specs = [pl.BlockSpec((tm, K), lambda i: (i, 0)),
                pl.BlockSpec((K, CO), lambda i: (0, 0))]
    args = [x2d, w]
    if scale_shift is not None:
        in_specs += [pl.BlockSpec((1, CO), lambda i: (0, 0)),
                     pl.BlockSpec((1, CO), lambda i: (0, 0))]
        args += list(scale_shift)

    flops = 2 * Mp * K * CO
    bytes_accessed = (x2d.size * x2d.dtype.itemsize + w.size * w.dtype.itemsize
                      + Mp * CO * 4 + G * 2 * CO * 4)
    return pl.pallas_call(
        kernel,
        grid=(G,),
        in_specs=in_specs,
        out_specs=(pl.BlockSpec((tm, CO), lambda i: (i, 0)),
                   pl.BlockSpec((None, 2, CO), lambda i: (i, 0, 0))),
        out_shape=(jax.ShapeDtypeStruct((Mp, CO), jnp.float32),
                   jax.ShapeDtypeStruct((G, 2, CO), jnp.float32)),
        compiler_params=pltpu.CompilerParams(
            dimension_semantics=("parallel",),
            vmem_limit_bytes=VMEM_LIMIT_BYTES),
        cost_estimate=pl.CostEstimate(flops=flops, transcendentals=0,
                                      bytes_accessed=bytes_accessed),
    )(*args)


# --------------------------------------------------------------------------------------
# Kernel B: fused 3x3 transpose conv (as 9 shifted tap matmuls on the dilated, padded
#           input) -> raw conv output + partial BN stats.  No im2col tensor in HBM.
# --------------------------------------------------------------------------------------
def _deconv3x3_kernel_factory(tr, wo, cp, ho_valid):
    def kernel(xp_ref, w_ref, o_ref, p_ref, acc_ref):
        row0 = pl.program_id(1) * tr
        for kh in range(3):
            for kw in range(3):
                xt = xp_ref[pl.ds(row0 + kh, tr), pl.ds(kw, wo), :]     # (tr, wo, cp)
                contrib = jnp.dot(xt.reshape(tr * wo, cp), w_ref[kh * 3 + kw],
                                  preferred_element_type=jnp.float32)
                if kh == 0 and kw == 0:
                    acc_ref[...] = contrib
                else:
                    acc_ref[...] += contrib
        y = acc_ref[...]
        if ho_valid is not None:
            # output rows >= Ho are tile padding: zero them so BN stats stay exact
            orow = row0 + jax.lax.broadcasted_iota(jnp.int32, (tr * wo, 1), 0) // wo
            y = jnp.where(orow < ho_valid, y, 0.0)
        o_ref[...] = y.reshape(tr, wo, cp)
        p_ref[0:1, :] = jnp.sum(y, axis=0, keepdims=True)
        p_ref[1:2, :] = jnp.sum(y * y, axis=0, keepdims=True)
    return kernel


def _deconv3x3(xp, w_taps, *, tr, wo, ho_valid):
    # TODO(synk): for very large spatial extents, additionally tile the padded image over
    # rows with a manual halo DMA (and/or a polyphase decomposition for stride>1).
    N, Hpp, Wp, CP = xp.shape
    t_tiles = (Hpp - 2) // tr
    ho_pad = t_tiles * tr
    kernel = _deconv3x3_kernel_factory(tr, wo, CP, ho_valid if ho_pad != ho_valid else None)
    flops = 2 * 9 * N * ho_pad * wo * CP * CP
    bytes_accessed = (xp.size * xp.dtype.itemsize + w_taps.size * w_taps.dtype.itemsize
                      + N * ho_pad * wo * CP * 4 + N * t_tiles * 2 * CP * 4)
    return pl.pallas_call(
        kernel,
        grid=(N, t_tiles),
        in_specs=[pl.BlockSpec((None, Hpp, Wp, CP), lambda n, t: (n, 0, 0, 0)),
                  pl.BlockSpec((9, CP, CP), lambda n, t: (0, 0, 0))],
        out_specs=(pl.BlockSpec((None, tr, wo, CP), lambda n, t: (n, t, 0, 0)),
                   pl.BlockSpec((None, None, 2, CP), lambda n, t: (n, t, 0, 0))),
        out_shape=(jax.ShapeDtypeStruct((N, ho_pad, wo, CP), jnp.float32),
                   jax.ShapeDtypeStruct((N, t_tiles, 2, CP), jnp.float32)),
        scratch_shapes=[pltpu.VMEM((tr * wo, CP), jnp.float32)],
        compiler_params=pltpu.CompilerParams(
            dimension_semantics=("parallel", "arbitrary"),
            vmem_limit_bytes=VMEM_LIMIT_BYTES),
        cost_estimate=pl.CostEstimate(flops=flops, transcendentals=0,
                                      bytes_accessed=bytes_accessed),
    )(xp, w_taps)


# --------------------------------------------------------------------------------------
# Kernel C: final BN + ReLU (lane-dense tiled elementwise)
# --------------------------------------------------------------------------------------
def _bn_relu_kernel(x_ref, scale_ref, shift_ref, o_ref):
    o_ref[...] = jnp.maximum(x_ref[...] * scale_ref[...] + shift_ref[...], 0.0)


def _bn_relu(x2d, scale, shift, *, tm):
    Mp, CO = x2d.shape
    G = Mp // tm
    return pl.pallas_call(
        _bn_relu_kernel,
        grid=(G,),
        in_specs=[pl.BlockSpec((tm, CO), lambda i: (i, 0)),
                  pl.BlockSpec((1, CO), lambda i: (0, 0)),
                  pl.BlockSpec((1, CO), lambda i: (0, 0))],
        out_specs=pl.BlockSpec((tm, CO), lambda i: (i, 0)),
        out_shape=jax.ShapeDtypeStruct((Mp, CO), jnp.float32),
        compiler_params=pltpu.CompilerParams(
            dimension_semantics=("parallel",),
            vmem_limit_bytes=VMEM_LIMIT_BYTES),
    )(x2d, scale, shift)


def _bn_scale_shift(partials, count, gamma, beta):
    """Combine per-tile (sum, sumsq) partials -> BN scale/shift (training-mode, biased var)."""
    tot = jnp.sum(partials.reshape(-1, 2, partials.shape[-1]), axis=0)   # (2, C)
    mean = (tot[0] / count)[None, :]
    var = jnp.maximum((tot[1] / count)[None, :] - mean * mean, 0.0)
    scale = gamma * jax.lax.rsqrt(var + EPS)
    shift = beta - mean * scale
    return scale, shift


# --------------------------------------------------------------------------------------
# Parameters
# --------------------------------------------------------------------------------------
def init_decoder_params(key, in_channels, out_channels):
    """Logical parameters mirroring the PyTorch module. The conv/deconv biases are kept
    here for completeness but are mathematically cancelled by the mean subtraction of the
    training-mode BatchNorm that immediately follows each conv, so they are never used."""
    c4 = in_channels // 4
    ks = jax.random.split(key, 12)
    p = {}
    p["w1"] = jax.random.normal(ks[0], (in_channels, c4), jnp.float32) * 0.1
    p["b1"] = jax.random.normal(ks[1], (1, c4), jnp.float32) * 0.1          # unused (cancels)
    p["g1"] = 1.0 + 0.1 * jax.random.normal(ks[2], (1, c4), jnp.float32)
    p["beta1"] = 0.1 * jax.random.normal(ks[3], (1, c4), jnp.float32)
    p["wt"] = jax.random.normal(ks[4], (c4, c4, 3, 3), jnp.float32) * 0.1   # PyTorch layout
    p["bt"] = jax.random.normal(ks[5], (1, c4), jnp.float32) * 0.1          # unused (cancels)
    p["g2"] = 1.0 + 0.1 * jax.random.normal(ks[6], (1, c4), jnp.float32)
    p["beta2"] = 0.1 * jax.random.normal(ks[7], (1, c4), jnp.float32)
    p["w3"] = jax.random.normal(ks[8], (c4, out_channels), jnp.float32) * 0.1
    p["b3"] = jax.random.normal(ks[9], (1, out_channels), jnp.float32) * 0.1  # unused (cancels)
    p["g3"] = 1.0 + 0.1 * jax.random.normal(ks[10], (1, out_channels), jnp.float32)
    p["beta3"] = 0.1 * jax.random.normal(ks[11], (1, out_channels), jnp.float32)
    return p


def pack_decoder_params(p, in_channels, out_channels, mm_dtype=MM_DTYPE):
    """One-time packing: zero-pad every channel dim to LANES, cast matmul weights to
    mm_dtype, and convert the ConvTranspose2d weight into its 9 forward-conv taps."""
    assert in_channels <= LANES and out_channels <= LANES
    c4 = in_channels // 4
    CP = LANES
    q = {}

    def pad_w(w):
        return (jnp.zeros((CP, CP), jnp.float32)
                .at[:w.shape[0], :w.shape[1]].set(w).astype(mm_dtype))

    def pad_row(v):
        return jnp.zeros((1, CP), jnp.float32).at[:, :v.shape[1]].set(v)

    q["w1"] = pad_w(p["w1"])
    q["g1"], q["beta1"] = pad_row(p["g1"]), pad_row(p["beta1"])

    taps = jnp.zeros((9, CP, CP), jnp.float32)
    for kh in range(3):
        for kw in range(3):
            # forward-conv equivalent of ConvTranspose2d: spatially flipped kernel
            taps = taps.at[kh * 3 + kw, :c4, :c4].set(p["wt"][:, :, 2 - kh, 2 - kw])
    q["wt_taps"] = taps.astype(mm_dtype)
    q["g2"], q["beta2"] = pad_row(p["g2"]), pad_row(p["beta2"])

    q["w3"] = pad_w(p["w3"])
    q["g3"], q["beta3"] = pad_row(p["g3"]), pad_row(p["beta3"])
    return q


# --------------------------------------------------------------------------------------
# Forward pass
# --------------------------------------------------------------------------------------
def decoder_forward(packed, x_nchw, stride, output_padding, out_channels):
    N, Cin, H, W = x_nchw.shape
    s, op = stride, output_padding
    CP = LANES

    # ---- stage 1: Conv2d(Cin -> Cin//4, 1x1) ----
    M1 = N * H * W
    tm1 = min(1024, _round_up(M1, 8))
    M1p = _round_up(M1, tm1)
    x = jnp.transpose(x_nchw, (0, 2, 3, 1)).reshape(M1, Cin)
    x = jnp.pad(x, ((0, M1p - M1), (0, CP - Cin))).astype(packed["w1"].dtype)
    y1, part1 = _conv1x1(x, packed["w1"], tm=tm1, m_valid=M1)
    scale1, shift1 = _bn_scale_shift(part1, M1, packed["g1"], packed["beta1"])

    # ---- stage 2: BN1+ReLU -> ConvTranspose2d(3x3, stride=s, padding=1, out_pad=op) ----
    Ho = (H - 1) * s + 1 + op
    Wo = (W - 1) * s + 1 + op
    tr = max(1, min(Ho, pl.cdiv(512, Wo)))        # ~512 output pixels per row tile
    t_tiles = pl.cdiv(Ho, tr)
    Ho_pad = t_tiles * tr

    # BN1 + ReLU + zero-dilation + conv padding happen in ONE fused XLA pass (single read
    # of y1, single write of xp); the 9-tap conv itself runs entirely inside the kernel.
    # TODO(synk): fully fuse BN1+ReLU+dilation into the deconv kernel (polyphase for
    # stride>1) to also drop this one remaining HBM intermediate and the zero taps.
    y1n = jnp.maximum(y1[:M1] * scale1 + shift1, 0.0).astype(packed["wt_taps"].dtype)
    y1n = y1n.reshape(N, H, W, CP)
    zero = jnp.zeros((), y1n.dtype)
    xp = jax.lax.pad(
        y1n, zero,
        ((0, 0, 0),
         (1, 1 + op + (Ho_pad - Ho), s - 1),      # top 1, bottom 1+out_pad (+tile pad)
         (1, 1 + op, s - 1),
         (0, 0, 0)))                               # -> (N, Ho_pad + 2, Wo + 2, CP)
    y2, part2 = _deconv3x3(xp, packed["wt_taps"], tr=tr, wo=Wo, ho_valid=Ho)
    M2 = N * Ho * Wo
    scale2, shift2 = _bn_scale_shift(part2, M2, packed["g2"], packed["beta2"])

    # ---- stage 3: BN2+ReLU fused into Conv2d(Cin//4 -> out_channels, 1x1) ----
    tm3 = min(1024, _round_up(M2, 8))
    M2p = _round_up(M2, tm3)
    y2r = y2[:, :Ho].reshape(M2, CP)
    y2r = jnp.pad(y2r, ((0, M2p - M2), (0, 0)))
    y3, part3 = _conv1x1(y2r, packed["w3"], tm=tm3, m_valid=M2,
                         scale_shift=(scale2, shift2))
    scale3, shift3 = _bn_scale_shift(part3, M2, packed["g3"], packed["beta3"])

    # ---- final BN3 + ReLU ----
    out = _bn_relu(y3, scale3, shift3, tm=tm3)
    out = out[:M2, :out_channels].reshape(N, Ho, Wo, out_channels)
    return jnp.transpose(out, (0, 3, 1, 2))        # back to NCHW


if __name__ == "__main__":
    in_channels, out_channels = 16, 8
    stride, output_padding = 2, 1
    N, H, W = 2, 8, 8

    key = jax.random.PRNGKey(0)
    k_x, k_p = jax.random.split(key)
    x = jax.random.normal(k_x, (N, in_channels, H, W), jnp.float32)   # NCHW input
    params = init_decoder_params(k_p, in_channels, out_channels)
    packed = pack_decoder_params(params, in_channels, out_channels)

    fwd = jax.jit(decoder_forward, static_argnums=(2, 3, 4))
    out = fwd(packed, x, stride, output_padding, out_channels)
    out = jax.block_until_ready(out)

    expected_hw = (H - 1) * stride - 2 + 3 + output_padding
    assert out.shape == (N, out_channels, expected_hw, expected_hw), out.shape
    assert bool(jnp.all(jnp.isfinite(out)))
    print("KERNEL_OK")
</pallas_src>

<mosaic_0001>
module attributes {stable_mosaic.version = 11 : i64} {
  func.func @kernel(%arg0: i32, %arg1: memref<128x128xbf16, #tpu.memory_space<vmem>>, %arg2: memref<128x128xbf16, #tpu.memory_space<vmem>>, %arg3: memref<128x128xf32, #tpu.memory_space<vmem>>, %arg4: memref<1x2x128xf32, #tpu.memory_space<vmem>>) attributes {dimension_semantics = [#tpu.dimension_semantics<parallel>], iteration_bounds = array<i64: 1>, scalar_prefetch = 0 : i64, scratch_operands = 0 : i64, tpu.core_type = #tpu.core_type<tc>, window_params = [{transform_indices = @transform_0, window_bounds = array<i64: 128, 128>}, {pipeline_mode = #tpu.pipeline_mode<synchronous>, transform_indices = @transform_1, window_bounds = array<i64: 128, 128>}, {transform_indices = @transform_2, window_bounds = array<i64: 128, 128>}, {transform_indices = @transform_3, window_bounds = array<i64: 1, 2, 128>}]} {
    %c0 = arith.constant 0 : index
    %c0_0 = arith.constant 0 : index
    %0 = vector.load %arg1[%c0, %c0_0] : memref<128x128xbf16, #tpu.memory_space<vmem>>, vector<128x128xbf16>
    %c0_1 = arith.constant 0 : index
    %c0_2 = arith.constant 0 : index
    %1 = vector.load %arg2[%c0_1, %c0_2] : memref<128x128xbf16, #tpu.memory_space<vmem>>, vector<128x128xbf16>
    %cst = arith.constant dense<0.000000e+00> : vector<128x128xf32>
    %2 = tpu.matmul %0, %1, %cst {dimension_numbers = #tpu.dot_dimension_numbers<[1], [0], [0], [1], [0, 0, 1, 1], [], []>} : vector<128x128xbf16>, vector<128x128xbf16>, vector<128x128xf32> -> vector<128x128xf32>
    %c0_3 = arith.constant 0 : index
    %c0_4 = arith.constant 0 : index
    %3 = vector.load %arg3[%c0_3, %c0_4] : memref<128x128xf32, #tpu.memory_space<vmem>>, vector<128x128xf32>
    tpu.vector_store %arg3[%c0_3, %c0_4], %2 {strides = array<i32>} : memref<128x128xf32, #tpu.memory_space<vmem>>, vector<128x128xf32>,
    %cst_5 = arith.constant dense<0.000000e+00> : vector<128xf32>
    %4 = vector.multi_reduction <add>, %2, %cst_5 [0] : vector<128x128xf32> to vector<128xf32>
    %5 = vector.shape_cast %4 : vector<128xf32> to vector<1x128xf32>
    %c0_6 = arith.constant 0 : index
    %c0_7 = arith.constant 0 : index
    %c0_8 = arith.constant 0 : index
    %6 = vector.load %arg4[%c0_6, %c0_7, %c0_8] : memref<1x2x128xf32, #tpu.memory_space<vmem>>, vector<1x1x128xf32>
    %7 = vector.shape_cast %6 : vector<1x1x128xf32> to vector<1x128xf32>
    %8 = vector.shape_cast %5 : vector<1x128xf32> to vector<1x1x128xf32>
    tpu.vector_store %arg4[%c0_6, %c0_7, %c0_8], %8 {strides = array<i32>} : memref<1x2x128xf32, #tpu.memory_space<vmem>>, vector<1x1x128xf32>,
    %9 = arith.mulf %2, %2 : vector<128x128xf32>
    %cst_9 = arith.constant dense<0.000000e+00> : vector<128xf32>
    %10 = vector.multi_reduction <add>, %9, %cst_9 [0] : vector<128x128xf32> to vector<128xf32>
    %11 = vector.shape_cast %10 : vector<128xf32> to vector<1x128xf32>
    %c0_10 = arith.constant 0 : index
    %c1 = arith.constant 1 : index
    %c0_11 = arith.constant 0 : index
    %12 = vector.load %arg4[%c0_10, %c1, %c0_11] : memref<1x2x128xf32, #tpu.memory_space<vmem>>, vector<1x1x128xf32>
    %13 = vector.shape_cast %12 : vector<1x1x128xf32> to vector<1x128xf32>
    %14 = vector.shape_cast %11 : vector<1x128xf32> to vector<1x1x128xf32>
    tpu.vector_store %arg4[%c0_10, %c1, %c0_11], %14 {strides = array<i32>} : memref<1x2x128xf32, #tpu.memory_space<vmem>>, vector<1x1x128xf32>,
    return
  }
  func.func @transform_0(%arg0: i32) -> (i32, i32) {
    %c0_i32 = arith.constant 0 : i32
    %c0_i32_0 = arith.constant 0 : i32
    return %arg0, %c0_i32 : i32, i32
  }
  func.func @transform_1(%arg0: i32) -> (i32, i32) {
    %c0_i32 = arith.constant 0 : i32
    %c0_i32_0 = arith.constant 0 : i32
    %c0_i32_1 = arith.constant 0 : i32
    return %c0_i32, %c0_i32_0 : i32, i32
  }
  func.func @transform_2(%arg0: i32) -> (i32, i32) {
    %c0_i32 = arith.constant 0 : i32
    %c0_i32_0 = arith.constant 0 : i32
    return %arg0, %c0_i32 : i32, i32
  }
  func.func @transform_3(%arg0: i32) -> (i32, i32, i32) {
    %c0_i32 = arith.constant 0 : i32
    %c0_i32_0 = arith.constant 0 : i32
    %c0_i32_1 = arith.constant 0 : i32
    return %arg0, %c0_i32, %c0_i32_0 : i32, i32, i32
  }
}

module attributes {stable_mosaic.version = 11 : i64} {
  func.func @kernel(%arg0: i32, %arg1: memref<512x128xf32, #tpu.memory_space<vmem>>, %arg2: memref<128x128xbf16, #tpu.memory_space<vmem>>, %arg3: memref<1x128xf32, #tpu.memory_space<vmem>>, %arg4: memref<1x128xf32, #tpu.memory_space<vmem>>, %arg5: memref<512x128xf32, #tpu.memory_space<vmem>>, %arg6: memref<1x2x128xf32, #tpu.memory_space<vmem>>) attributes {dimension_semantics = [#tpu.dimension_semantics<parallel>], iteration_bounds = array<i64: 1>, scalar_prefetch = 0 : i64, scratch_operands = 0 : i64, tpu.core_type = #tpu.core_type<tc>, window_params = [{transform_indices = @transform_0, window_bounds = array<i64: 512, 128>}, {pipeline_mode = #tpu.pipeline_mode<synchronous>, transform_indices = @transform_1, window_bounds = array<i64: 128, 128>}, {pipeline_mode = #tpu.pipeline_mode<synchronous>, transform_indices = @transform_2, window_bounds = array<i64: 1, 128>}, {pipeline_mode = #tpu.pipeline_mode<synchronous>, transform_indices = @transform_3, window_bounds = array<i64: 1, 128>}, {transform_indices = @transform_4, window_bounds = array<i64: 512, 128>}, {transform_indices = @transform_5, window_bounds = array<i64: 1, 2, 128>}]} {
    %c0 = arith.constant 0 : index
    %c0_0 = arith.constant 0 : index
    %0 = vector.load %arg1[%c0, %c0_0] : memref<512x128xf32, #tpu.memory_space<vmem>>, vector<512x128xf32>
    %c0_1 = arith.constant 0 : index
    %c0_2 = arith.constant 0 : index
    %1 = vector.load %arg3[%c0_1, %c0_2] : memref<1x128xf32, #tpu.memory_space<vmem>>, vector<1x128xf32>
    %2 = vector.broadcast %1 : vector<1x128xf32> to vector<512x128xf32>
    %3 = arith.mulf %0, %2 : vector<512x128xf32>
    %c0_3 = arith.constant 0 : index
    %c0_4 = arith.constant 0 : index
    %4 = vector.load %arg4[%c0_3, %c0_4] : memref<1x128xf32, #tpu.memory_space<vmem>>, vector<1x128xf32>
    %5 = vector.broadcast %4 : vector<1x128xf32> to vector<512x128xf32>
    %6 = arith.addf %3, %5 : vector<512x128xf32>
    %cst = arith.constant 0.000000e+00 : f32
    %7 = vector.broadcast %cst : f32 to vector<512x128xf32>
    %8 = arith.maximumf %6, %7 : vector<512x128xf32>
    %9 = arith.truncf %8 : vector<512x128xf32> to vector<512x128xbf16>
    %c0_5 = arith.constant 0 : index
    %c0_6 = arith.constant 0 : index
    %10 = vector.load %arg2[%c0_5, %c0_6] : memref<128x128xbf16, #tpu.memory_space<vmem>>, vector<128x128xbf16>
    %cst_7 = arith.constant dense<0.000000e+00> : vector<512x128xf32>
    %11 = tpu.matmul %9, %10, %cst_7 {dimension_numbers = #tpu.dot_dimension_numbers<[1], [0], [0], [1], [0, 0, 1, 1], [], []>} : vector<512x128xbf16>, vector<128x128xbf16>, vector<512x128xf32> -> vector<512x128xf32>
    %c0_8 = arith.constant 0 : index
    %c0_9 = arith.constant 0 : index
    %12 = vector.load %arg5[%c0_8, %c0_9] : memref<512x128xf32, #tpu.memory_space<vmem>>, vector<512x128xf32>
    tpu.vector_store %arg5[%c0_8, %c0_9], %11 {strides = array<i32>} : memref<512x128xf32, #tpu.memory_space<vmem>>, vector<512x128xf32>,
    %cst_10 = arith.constant dense<0.000000e+00> : vector<128xf32>
    %13 = vector.multi_reduction <add>, %11, %cst_10 [0] : vector<512x128xf32> to vector<128xf32>
    %14 = vector.shape_cast %13 : vector<128xf32> to vector<1x128xf32>
    %c0_11 = arith.constant 0 : index
    %c0_12 = arith.constant 0 : index
    %c0_13 = arith.constant 0 : index
    %15 = vector.load %arg6[%c0_11, %c0_12, %c0_13] : memref<1x2x128xf32, #tpu.memory_space<vmem>>, vector<1x1x128xf32>
    %16 = vector.shape_cast %15 : vector<1x1x128xf32> to vector<1x128xf32>
    %17 = vector.shape_cast %14 : vector<1x128xf32> to vector<1x1x128xf32>
    tpu.vector_store %arg6[%c0_11, %c0_12, %c0_13], %17 {strides = array<i32>} : memref<1x2x128xf32, #tpu.memory_space<vmem>>, vector<1x1x128xf32>,
    %18 = arith.mulf %11, %11 : vector<512x128xf32>
    %cst_14 = arith.constant dense<0.000000e+00> : vector<128xf32>
    %19 = vector.multi_reduction <add>, %18, %cst_14 [0] : vector<512x128xf32> to vector<128xf32>
    %20 = vector.shape_cast %19 : vector<128xf32> to vector<1x128xf32>
    %c0_15 = arith.constant 0 : index
    %c1 = arith.constant 1 : index
    %c0_16 = arith.constant 0 : index
    %21 = vector.load %arg6[%c0_15, %c1, %c0_16] : memref<1x2x128xf32, #tpu.memory_space<vmem>>, vector<1x1x128xf32>
    %22 = vector.shape_cast %21 : vector<1x1x128xf32> to vector<1x128xf32>
    %23 = vector.shape_cast %20 : vector<1x128xf32> to vector<1x1x128xf32>
    tpu.vector_store %arg6[%c0_15, %c1, %c0_16], %23 {strides = array<i32>} : memref<1x2x128xf32, #tpu.memory_space<vmem>>, vector<1x1x128xf32>,
    return
  }
  func.func @transform_0(%arg0: i32) -> (i32, i32) {
    %c0_i32 = arith.constant 0 : i32
    %c0_i32_0 = arith.constant 0 : i32
    return %arg0, %c0_i32 : i32, i32
  }
  func.func @transform_1(%arg0: i32) -> (i32, i32) {
    %c0_i32 = arith.constant 0 : i32
    %c0_i32_0 = arith.constant 0 : i32
    %c0_i32_1 = arith.constant 0 : i32
    return %c0_i32, %c0_i32_0 : i32, i32
  }
  func.func @transform_2(%arg0: i32) -> (i32, i32) {
    %c0_i32 = arith.constant 0 : i32
    %c0_i32_0 = arith.constant 0 : i32
    %c0_i32_1 = arith.constant 0 : i32
    return %c0_i32, %c0_i32_0 : i32, i32
  }
  func.func @transform_3(%arg0: i32) -> (i32, i32) {
    %c0_i32 = arith.constant 0 : i32
    %c0_i32_0 = arith.constant 0 : i32
    %c0_i32_1 = arith.constant 0 : i32
    return %c0_i32, %c0_i32_0 : i32, i32
  }
  func.func @transform_4(%arg0: i32) -> (i32, i32) {
    %c0_i32 = arith.constant 0 : i32
    %c0_i32_0 = arith.constant 0 : i32
    return %arg0, %c0_i32 : i32, i32
  }
  func.func @transform_5(%arg0: i32) -> (i32, i32, i32) {
    %c0_i32 = arith.constant 0 : i32
    %c0_i32_0 = arith.constant 0 : i32
    %c0_i32_1 = arith.constant 0 : i32
    return %arg0, %c0_i32, %c0_i32_0 : i32, i32, i32
  }
}

module attributes {stable_mosaic.version = 11 : i64} {
  func.func @_bn_relu_kernel(%arg0: i32, %arg1: memref<512x128xf32, #tpu.memory_space<vmem>>, %arg2: memref<1x128xf32, #tpu.memory_space<vmem>>, %arg3: memref<1x128xf32, #tpu.memory_space<vmem>>, %arg4: memref<512x128xf32, #tpu.memory_space<vmem>>) attributes {dimension_semantics = [#tpu.dimension_semantics<parallel>], iteration_bounds = array<i64: 1>, scalar_prefetch = 0 : i64, scratch_operands = 0 : i64, tpu.core_type = #tpu.core_type<tc>, window_params = [{transform_indices = @transform_0, window_bounds = array<i64: 512, 128>}, {pipeline_mode = #tpu.pipeline_mode<synchronous>, transform_indices = @transform_1, window_bounds = array<i64: 1, 128>}, {pipeline_mode = #tpu.pipeline_mode<synchronous>, transform_indices = @transform_2, window_bounds = array<i64: 1, 128>}, {transform_indices = @transform_3, window_bounds = array<i64: 512, 128>}]} {
    %c0 = arith.constant 0 : index
    %c0_0 = arith.constant 0 : index
    %0 = vector.load %arg1[%c0, %c0_0] : memref<512x128xf32, #tpu.memory_space<vmem>>, vector<512x128xf32>
    %c0_1 = arith.constant 0 : index
    %c0_2 = arith.constant 0 : index
    %1 = vector.load %arg2[%c0_1, %c0_2] : memref<1x128xf32, #tpu.memory_space<vmem>>, vector<1x128xf32>
    %2 = vector.broadcast %1 : vector<1x128xf32> to vector<512x128xf32>
    %3 = arith.mulf %0, %2 : vector<512x128xf32>
    %c0_3 = arith.constant 0 : index
    %c0_4 = arith.constant 0 : index
    %4 = vector.load %arg3[%c0_3, %c0_4] : memref<1x128xf32, #tpu.memory_space<vmem>>, vector<1x128xf32>
    %5 = vector.broadcast %4 : vector<1x128xf32> to vector<512x128xf32>
    %6 = arith.addf %3, %5 : vector<512x128xf32>
    %cst = arith.constant 0.000000e+00 : f32
    %7 = vector.broadcast %cst : f32 to vector<512x128xf32>
    %8 = arith.maximumf %6, %7 : vector<512x128xf32>
    %c0_5 = arith.constant 0 : index
    %c0_6 = arith.constant 0 : index
    %9 = vector.load %arg4[%c0_5, %c0_6] : memref<512x128xf32, #tpu.memory_space<vmem>>, vector<512x128xf32>
    tpu.vector_store %arg4[%c0_5, %c0_6], %8 {strides = array<i32>} : memref<512x128xf32, #tpu.memory_space<vmem>>, vector<512x128xf32>,
    return
  }
  func.func @transform_0(%arg0: i32) -> (i32, i32) {
    %c0_i32 = arith.constant 0 : i32
    %c0_i32_0 = arith.constant 0 : i32
    return %arg0, %c0_i32 : i32, i32
  }
  func.func @transform_1(%arg0: i32) -> (i32, i32) {
    %c0_i32 = arith.constant 0 : i32
    %c0_i32_0 = arith.constant 0 : i32
    %c0_i32_1 = arith.constant 0 : i32
    return %c0_i32, %c0_i32_0 : i32, i32
  }
  func.func @transform_2(%arg0: i32) -> (i32, i32) {
    %c0_i32 = arith.constant 0 : i32
    %c0_i32_0 = arith.constant 0 : i32
    %c0_i32_1 = arith.constant 0 : i32
    return %c0_i32, %c0_i32_0 : i32, i32
  }
  func.func @transform_3(%arg0: i32) -> (i32, i32) {
    %c0_i32 = arith.constant 0 : i32
    %c0_i32_0 = arith.constant 0 : i32
    return %arg0, %c0_i32 : i32, i32
  }
}

module attributes {stable_mosaic.version = 11 : i64} {
  func.func @kernel(%arg0: i32, %arg1: i32, %arg2: memref<1x18x18x128xbf16, #tpu.memory_space<vmem>>, %arg3: memref<9x128x128xbf16, #tpu.memory_space<vmem>>, %arg4: memref<1x16x16x128xf32, #tpu.memory_space<vmem>>, %arg5: memref<1x1x2x128xf32, #tpu.memory_space<vmem>>, %arg6: memref<256x128xf32, #tpu.memory_space<vmem>>) attributes {dimension_semantics = [#tpu.dimension_semantics<parallel>, #tpu.dimension_semantics<arbitrary>], iteration_bounds = array<i64: 2, 1>, scalar_prefetch = 0 : i64, scratch_operands = 1 : i64, tpu.core_type = #tpu.core_type<tc>, window_params = [{transform_indices = @transform_0, window_bounds = array<i64: 1, 18, 18, 128>}, {pipeline_mode = #tpu.pipeline_mode<synchronous>, transform_indices = @transform_1, window_bounds = array<i64: 9, 128, 128>}, {transform_indices = @transform_2, window_bounds = array<i64: 1, 16, 16, 128>}, {transform_indices = @transform_3, window_bounds = array<i64: 1, 1, 2, 128>}]} {
    %c16_i32 = arith.constant 16 : i32
    %0 = arith.muli %arg1, %c16_i32 : i32
    %c0_i32 = arith.constant 0 : i32
    %1 = arith.addi %0, %c0_i32 : i32
    %c0 = arith.constant 0 : index
    %2 = arith.index_cast %1 : i32 to index
    %c0_0 = arith.constant 0 : index
    %c0_1 = arith.constant 0 : index
    %3 = vector.load %arg2[%c0, %2, %c0_0, %c0_1] : memref<1x18x18x128xbf16, #tpu.memory_space<vmem>>, vector<1x16x16x128xbf16>
    %4 = vector.shape_cast %3 : vector<1x16x16x128xbf16> to vector<16x16x128xbf16>
    %5 = vector.shape_cast %4 : vector<16x16x128xbf16> to vector<256x128xbf16>
    %c0_2 = arith.constant 0 : index
    %c0_3 = arith.constant 0 : index
    %c0_4 = arith.constant 0 : index
    %6 = vector.load %arg3[%c0_2, %c0_3, %c0_4] : memref<9x128x128xbf16, #tpu.memory_space<vmem>>, vector<1x128x128xbf16>
    %7 = vector.shape_cast %6 : vector<1x128x128xbf16> to vector<128x128xbf16>
    %cst = arith.constant dense<0.000000e+00> : vector<256x128xf32>
    %8 = tpu.matmul %5, %7, %cst {dimension_numbers = #tpu.dot_dimension_numbers<[1], [0], [0], [1], [0, 0, 1, 1], [], []>} : vector<256x128xbf16>, vector<128x128xbf16>, vector<256x128xf32> -> vector<256x128xf32>
    %c0_5 = arith.constant 0 : index
    %c0_6 = arith.constant 0 : index
    %9 = vector.load %arg6[%c0_5, %c0_6] : memref<256x128xf32, #tpu.memory_space<vmem>>, vector<256x128xf32>
    tpu.vector_store %arg6[%c0_5, %c0_6], %8 {strides = array<i32>} : memref<256x128xf32, #tpu.memory_space<vmem>>, vector<256x128xf32>,
    %c0_i32_7 = arith.constant 0 : i32
    %10 = arith.addi %0, %c0_i32_7 : i32
    %c0_8 = arith.constant 0 : index
    %11 = arith.index_cast %10 : i32 to index
    %c1 = arith.constant 1 : index
    %c0_9 = arith.constant 0 : index
    %12 = vector.load %arg2[%c0_8, %11, %c1, %c0_9] : memref<1x18x18x128xbf16, #tpu.memory_space<vmem>>, vector<1x16x16x128xbf16>
    %13 = vector.shape_cast %12 : vector<1x16x16x128xbf16> to vector<16x16x128xbf16>
    %14 = vector.shape_cast %13 : vector<16x16x128xbf16> to vector<256x128xbf16>
    %c1_10 = arith.constant 1 : index
    %c0_11 = arith.constant 0 : index
    %c0_12 = arith.constant 0 : index
    %15 = vector.load %arg3[%c1_10, %c0_11, %c0_12] : memref<9x128x128xbf16, #tpu.memory_space<vmem>>, vector<1x128x128xbf16>
    %16 = vector.shape_cast %15 : vector<1x128x128xbf16> to vector<128x128xbf16>
    %cst_13 = arith.constant dense<0.000000e+00> : vector<256x128xf32>
    %17 = tpu.matmul %14, %16, %cst_13 {dimension_numbers = #tpu.dot_dimension_numbers<[1], [0], [0], [1], [0, 0, 1, 1], [], []>} : vector<256x128xbf16>, vector<128x128xbf16>, vector<256x128xf32> -> vector<256x128xf32>
    %c0_14 = arith.constant 0 : index
    %c0_15 = arith.constant 0 : index
    %18 = vector.load %arg6[%c0_14, %c0_15] : memref<256x128xf32, #tpu.memory_space<vmem>>, vector<256x128xf32>
    %19 = arith.addf %18, %17 : vector<256x128xf32>
    %c0_16 = arith.constant 0 : index
    %c0_17 = arith.constant 0 : index
    %20 = vector.load %arg6[%c0_16, %c0_17] : memref<256x128xf32, #tpu.memory_space<vmem>>, vector<256x128xf32>
    tpu.vector_store %arg6[%c0_16, %c0_17], %19 {strides = array<i32>} : memref<256x128xf32, #tpu.memory_space<vmem>>, vector<256x128xf32>,
    %c0_i32_18 = arith.constant 0 : i32
    %21 = arith.addi %0, %c0_i32_18 : i32
    %c0_19 = arith.constant 0 : index
    %22 = arith.index_cast %21 : i32 to index
    %c2 = arith.constant 2 : index
    %c0_20 = arith.constant 0 : index
    %23 = vector.load %arg2[%c0_19, %22, %c2, %c0_20] : memref<1x18x18x128xbf16, #tpu.memory_space<vmem>>, vector<1x16x16x128xbf16>
    %24 = vector.shape_cast %23 : vector<1x16x16x128xbf16> to vector<16x16x128xbf16>
    %25 = vector.shape_cast %24 : vector<16x16x128xbf16> to vector<256x128xbf16>
    %c2_21 = arith.constant 2 : index
    %c0_22 = arith.constant 0 : index
    %c0_23 = arith.constant 0 : index
    %26 = vector.load %arg3[%c2_21, %c0_22, %c0_23] : memref<9x128x128xbf16, #tpu.memory_space<vmem>>, vector<1x128x128xbf16>
    %27 = vector.shape_cast %26 : vector<1x128x128xbf16> to vector<128x128xbf16>
    %cst_24 = arith.constant dense<0.000000e+00> : vector<256x128xf32>
    %28 = tpu.matmul %25, %27, %cst_24 {dimension_numbers = #tpu.dot_dimension_numbers<[1], [0], [0], [1], [0, 0, 1, 1], [], []>} : vector<256x128xbf16>, vector<128x128xbf16>, vector<256x128xf32> -> vector<256x128xf32>
    %c0_25 = arith.constant 0 : index
    %c0_26 = arith.constant 0 : index
    %29 = vector.load %arg6[%c0_25, %c0_26] : memref<256x128xf32, #tpu.memory_space<vmem>>, vector<256x128xf32>
    %30 = arith.addf %29, %28 : vector<256x128xf32>
    %c0_27 = arith.constant 0 : index
    %c0_28 = arith.constant 0 : index
    %31 = vector.load %arg6[%c0_27, %c0_28] : memref<256x128xf32, #tpu.memory_space<vmem>>, vector<256x128xf32>
    tpu.vector_store %arg6[%c0_27, %c0_28], %30 {strides = array<i32>} : memref<256x128xf32, #tpu.memory_space<vmem>>, vector<256x128xf32>,
    %c1_i32 = arith.constant 1 : i32
    %32 = arith.addi %0, %c1_i32 : i32
    %c0_29 = arith.constant 0 : index
    %33 = arith.index_cast %32 : i32 to index
    %c0_30 = arith.constant 0 : index
    %c0_31 = arith.constant 0 : index
    %34 = vector.load %arg2[%c0_29, %33, %c0_30, %c0_31] : memref<1x18x18x128xbf16, #tpu.memory_space<vmem>>, vector<1x16x16x128xbf16>
    %35 = vector.shape_cast %34 : vector<1x16x16x128xbf16> to vector<16x16x128xbf16>
    %36 = vector.shape_cast %35 : vector<16x16x128xbf16> to vector<256x128xbf16>
    %c3 = arith.constant 3 : index
    %c0_32 = arith.constant 0 : index
    %c0_33 = arith.constant 0 : index
    %37 = vector.load %arg3[%c3, %c0_32, %c0_33] : memref<9x128x128xbf16, #tpu.memory_space<vmem>>, vector<1x128x128xbf16>
    %38 = vector.shape_cast %37 : vector<1x128x128xbf16> to vector<128x128xbf16>
    %cst_34 = arith.constant dense<0.000000e+00> : vector<256x128xf32>
    %39 = tpu.matmul %36, %38, %cst_34 {dimension_numbers = #tpu.dot_dimension_numbers<[1], [0], [0], [1], [0, 0, 1, 1], [], []>} : vector<256x128xbf16>, vector<128x128xbf16>, vector<256x128xf32> -> vector<256x128xf32>
    %c0_35 = arith.constant 0 : index
    %c0_36 = arith.constant 0 : index
    %40 = vector.load %arg6[%c0_35, %c0_36] : memref<256x128xf32, #tpu.memory_space<vmem>>, vector<256x128xf32>
    %41 = arith.addf %40, %39 : vector<256x128xf32>
    %c0_37 = arith.constant 0 : index
    %c0_38 = arith.constant 0 : index
    %42 = vector.load %arg6[%c0_37, %c0_38] : memref<256x128xf32, #tpu.memory_space<vmem>>, vector<256x128xf32>
    tpu.vector_store %arg6[%c0_37, %c0_38], %41 {strides = array<i32>} : memref<256x128xf32, #tpu.memory_space<vmem>>, vector<256x128xf32>,
    %c1_i32_39 = arith.constant 1 : i32
    %43 = arith.addi %0, %c1_i32_39 : i32
    %c0_40 = arith.constant 0 : index
    %44 = arith.index_cast %43 : i32 to index
    %c1_41 = arith.constant 1 : index
    %c0_42 = arith.constant 0 : index
    %45 = vector.load %arg2[%c0_40, %44, %c1_41, %c0_42] : memref<1x18x18x128xbf16, #tpu.memory_space<vmem>>, vector<1x16x16x128xbf16>
    %46 = vector.shape_cast %45 : vector<1x16x16x128xbf16> to vector<16x16x128xbf16>
    %47 = vector.shape_cast %46 : vector<16x16x128xbf16> to vector<256x128xbf16>
    %c4 = arith.constant 4 : index
    %c0_43 = arith.constant 0 : index
    %c0_44 = arith.constant 0 : index
    %48 = vector.load %arg3[%c4, %c0_43, %c0_44] : memref<9x128x128xbf16, #tpu.memory_space<vmem>>, vector<1x128x128xbf16>
    %49 = vector.shape_cast %48 : vector<1x128x128xbf16> to vector<128x128xbf16>
    %cst_45 = arith.constant dense<0.000000e+00> : vector<256x128xf32>
    %50 = tpu.matmul %47, %49, %cst_45 {dimension_numbers = #tpu.dot_dimension_numbers<[1], [0], [0], [1], [0, 0, 1, 1], [], []>} : vector<256x128xbf16>, vector<128x128xbf16>, vector<256x128xf32> -> vector<256x128xf32>
    %c0_46 = arith.constant 0 : index
    %c0_47 = arith.constant 0 : index
    %51 = vector.load %arg6[%c0_46, %c0_47] : memref<256x128xf32, #tpu.memory_space<vmem>>, vector<256x128xf32>
    %52 = arith.addf %51, %50 : vector<256x128xf32>
    %c0_48 = arith.constant 0 : index
    %c0_49 = arith.constant 0 : index
    %53 = vector.load %arg6[%c0_48, %c0_49] : memref<256x128xf32, #tpu.memory_space<vmem>>, vector<256x128xf32>
    tpu.vector_store %arg6[%c0_48, %c0_49], %52 {strides = array<i32>} : memref<256x128xf32, #tpu.memory_space<vmem>>, vector<256x128xf32>,
    %c1_i32_50 = arith.constant 1 : i32
    %54 = arith.addi %0, %c1_i32_50 : i32
    %c0_51 = arith.constant 0 : index
    %55 = arith.index_cast %54 : i32 to index
    %c2_52 = arith.constant 2 : index
    %c0_53 = arith.constant 0 : index
    %56 = vector.load %arg2[%c0_51, %55, %c2_52, %c0_53] : memref<1x18x18x128xbf16, #tpu.memory_space<vmem>>, vector<1x16x16x128xbf16>
    %57 = vector.shape_cast %56 : vector<1x16x16x128xbf16> to vector<16x16x128xbf16>
    %58 = vector.shape_cast %57 : vector<16x16x128xbf16> to vector<256x128xbf16>
    %c5 = arith.constant 5 : index
    %c0_54 = arith.constant 0 : index
    %c0_55 = arith.constant 0 : index
    %59 = vector.load %arg3[%c5, %c0_54, %c0_55] : memref<9x128x128xbf16, #tpu.memory_space<vmem>>, vector<1x128x128xbf16>
    %60 = vector.shape_cast %59 : vector<1x128x128xbf16> to vector<128x128xbf16>
    %cst_56 = arith.constant dense<0.000000e+00> : vector<256x128xf32>
    %61 = tpu.matmul %58, %60, %cst_56 {dimension_numbers = #tpu.dot_dimension_numbers<[1], [0], [0], [1], [0, 0, 1, 1], [], []>} : vector<256x128xbf16>, vector<128x128xbf16>, vector<256x128xf32> -> vector<256x128xf32>
    %c0_57 = arith.constant 0 : index
    %c0_58 = arith.constant 0 : index
    %62 = vector.load %arg6[%c0_57, %c0_58] : memref<256x128xf32, #tpu.memory_space<vmem>>, vector<256x128xf32>
    %63 = arith.addf %62, %61 : vector<256x128xf32>
    %c0_59 = arith.constant 0 : index
    %c0_60 = arith.constant 0 : index
    %64 = vector.load %arg6[%c0_59, %c0_60] : memref<256x128xf32, #tpu.memory_space<vmem>>, vector<256x128xf32>
    tpu.vector_store %arg6[%c0_59, %c0_60], %63 {strides = array<i32>} : memref<256x128xf32, #tpu.memory_space<vmem>>, vector<256x128xf32>,
    %c2_i32 = arith.constant 2 : i32
    %65 = arith.addi %0, %c2_i32 : i32
    %c0_61 = arith.constant 0 : index
    %66 = arith.index_cast %65 : i32 to index
    %c0_62 = arith.constant 0 : index
    %c0_63 = arith.constant 0 : index
    %67 = vector.load %arg2[%c0_61, %66, %c0_62, %c0_63] : memref<1x18x18x128xbf16, #tpu.memory_space<vmem>>, vector<1x16x16x128xbf16>
    %68 = vector.shape_cast %67 : vector<1x16x16x128xbf16> to vector<16x16x128xbf16>
    %69 = vector.shape_cast %68 : vector<16x16x128xbf16> to vector<256x128xbf16>
    %c6 = arith.constant 6 : index
    %c0_64 = arith.constant 0 : index
    %c0_65 = arith.constant 0 : index
    %70 = vector.load %arg3[%c6, %c0_64, %c0_65] : memref<9x128x128xbf16, #tpu.memory_space<vmem>>, vector<1x128x128xbf16>
    %71 = vector.shape_cast %70 : vector<1x128x128xbf16> to vector<128x128xbf16>
    %cst_66 = arith.constant dense<0.000000e+00> : vector<256x128xf32>
    %72 = tpu.matmul %69, %71, %cst_66 {dimension_numbers = #tpu.dot_dimension_numbers<[1], [0], [0], [1], [0, 0, 1, 1], [], []>} : vector<256x128xbf16>, vector<128x128xbf16>, vector<256x128xf32> -> vector<256x128xf32>
    %c0_67 = arith.constant 0 : index
    %c0_68 = arith.constant 0 : index
    %73 = vector.load %arg6[%c0_67, %c0_68] : memref<256x128xf32, #tpu.memory_space<vmem>>, vector<256x128xf32>
    %74 = arith.addf %73, %72 : vector<256x128xf32>
    %c0_69 = arith.constant 0 : index
    %c0_70 = arith.constant 0 : index
    %75 = vector.load %arg6[%c0_69, %c0_70] : memref<256x128xf32, #tpu.memory_space<vmem>>, vector<256x128xf32>
    tpu.vector_store %arg6[%c0_69, %c0_70], %74 {strides = array<i32>} : memref<256x128xf32, #tpu.memory_space<vmem>>, vector<256x128xf32>,
    %c2_i32_71 = arith.constant 2 : i32
    %76 = arith.addi %0, %c2_i32_71 : i32
    %c0_72 = arith.constant 0 : index
    %77 = arith.index_cast %76 : i32 to index
    %c1_73 = arith.constant 1 : index
    %c0_74 = arith.constant 0 : index
    %78 = vector.load %arg2[%c0_72, %77, %c1_73, %c0_74] : memref<1x18x18x128xbf16, #tpu.memory_space<vmem>>, vector<1x16x16x128xbf16>
    %79 = vector.shape_cast %78 : vector<1x16x16x128xbf16> to vector<16x16x128xbf16>
    %80 = vector.shape_cast %79 : vector<16x16x128xbf16> to vector<256x128xbf16>
    %c7 = arith.constant 7 : index
    %c0_75 = arith.constant 0 : index
    %c0_76 = arith.constant 0 : index
    %81 = vector.load %arg3[%c7, %c0_75, %c0_76] : memref<9x128x128xbf16, #tpu.memory_space<vmem>>, vector<1x128x128xbf16>
    %82 = vector.shape_cast %81 : vector<1x128x128xbf16> to vector<128x128xbf16>
    %cst_77 = arith.constant dense<0.000000e+00> : vector<256x128xf32>
    %83 = tpu.matmul %80, %82, %cst_77 {dimension_numbers = #tpu.dot_dimension_numbers<[1], [0], [0], [1], [0, 0, 1, 1], [], []>} : vector<256x128xbf16>, vector<128x128xbf16>, vector<256x128xf32> -> vector<256x128xf32>
    %c0_78 = arith.constant 0 : index
    %c0_79 = arith.constant 0 : index
    %84 = vector.load %arg6[%c0_78, %c0_79] : memref<256x128xf32, #tpu.memory_space<vmem>>, vector<256x128xf32>
    %85 = arith.addf %84, %83 : vector<256x128xf32>
    %c0_80 = arith.constant 0 : index
    %c0_81 = arith.constant 0 : index
    %86 = vector.load %arg6[%c0_80, %c0_81] : memref<256x128xf32, #tpu.memory_space<vmem>>, vector<256x128xf32>
    tpu.vector_store %arg6[%c0_80, %c0_81], %85 {strides = array<i32>} : memref<256x128xf32, #tpu.memory_space<vmem>>, vector<256x128xf32>,
    %c2_i32_82 = arith.constant 2 : i32
    %87 = arith.addi %0, %c2_i32_82 : i32
    %c0_83 = arith.constant 0 : index
    %88 = arith.index_cast %87 : i32 to index
    %c2_84 = arith.constant 2 : index
    %c0_85 = arith.constant 0 : index
    %89 = vector.load %arg2[%c0_83, %88, %c2_84, %c0_85] : memref<1x18x18x128xbf16, #tpu.memory_space<vmem>>, vector<1x16x16x128xbf16>
    %90 = vector.shape_cast %89 : vector<1x16x16x128xbf16> to vector<16x16x128xbf16>
    %91 = vector.shape_cast %90 : vector<16x16x128xbf16> to vector<256x128xbf16>
    %c8 = arith.constant 8 : index
    %c0_86 = arith.constant 0 : index
    %c0_87 = arith.constant 0 : index
    %92 = vector.load %arg3[%c8, %c0_86, %c0_87] : memref<9x128x128xbf16, #tpu.memory_space<vmem>>, vector<1x128x128xbf16>
    %93 = vector.shape_cast %92 : vector<1x128x128xbf16> to vector<128x128xbf16>
    %cst_88 = arith.constant dense<0.000000e+00> : vector<256x128xf32>
    %94 = tpu.matmul %91, %93, %cst_88 {dimension_numbers = #tpu.dot_dimension_numbers<[1], [0], [0], [1], [0, 0, 1, 1], [], []>} : vector<256x128xbf16>, vector<128x128xbf16>, vector<256x128xf32> -> vector<256x128xf32>
    %c0_89 = arith.constant 0 : index
    %c0_90 = arith.constant 0 : index
    %95 = vector.load %arg6[%c0_89, %c0_90] : memref<256x128xf32, #tpu.memory_space<vmem>>, vector<256x128xf32>
    %96 = arith.addf %95, %94 : vector<256x128xf32>
    %c0_91 = arith.constant 0 : index
    %c0_92 = arith.constant 0 : index
    %97 = vector.load %arg6[%c0_91, %c0_92] : memref<256x128xf32, #tpu.memory_space<vmem>>, vector<256x128xf32>
    tpu.vector_store %arg6[%c0_91, %c0_92], %96 {strides = array<i32>} : memref<256x128xf32, #tpu.memory_space<vmem>>, vector<256x128xf32>,
    %c0_93 = arith.constant 0 : index
    %c0_94 = arith.constant 0 : index
    %98 = vector.load %arg6[%c0_93, %c0_94] : memref<256x128xf32, #tpu.memory_space<vmem>>, vector<256x128xf32>
    %99 = vector.shape_cast %98 : vector<256x128xf32> to vector<16x16x128xf32>
    %c0_95 = arith.constant 0 : index
    %c0_96 = arith.constant 0 : index
    %c0_97 = arith.constant 0 : index
    %c0_98 = arith.constant 0 : index
    %100 = vector.load %arg4[%c0_95, %c0_96, %c0_97, %c0_98] : memref<1x16x16x128xf32, #tpu.memory_space<vmem>>, vector<1x16x16x128xf32>
    %101 = vector.shape_cast %100 : vector<1x16x16x128xf32> to vector<16x16x128xf32>
    %102 = vector.shape_cast %99 : vector<16x16x128xf32> to vector<1x16x16x128xf32>
    tpu.vector_store %arg4[%c0_95, %c0_96, %c0_97, %c0_98], %102 {strides = array<i32>} : memref<1x16x16x128xf32, #tpu.memory_space<vmem>>, vector<1x16x16x128xf32>,
    %cst_99 = arith.constant dense<0.000000e+00> : vector<128xf32>
    %103 = vector.multi_reduction <add>, %98, %cst_99 [0] : vector<256x128xf32> to vector<128xf32>
    %104 = vector.shape_cast %103 : vector<128xf32> to vector<1x128xf32>
    %c0_100 = arith.constant 0 : index
    %c0_101 = arith.constant 0 : index
    %c0_102 = arith.constant 0 : index
    %c0_103 = arith.constant 0 : index
    %105 = vector.load %arg5[%c0_100, %c0_101, %c0_102, %c0_103] : memref<1x1x2x128xf32, #tpu.memory_space<vmem>>, vector<1x1x1x128xf32>
    %106 = vector.shape_cast %105 : vector<1x1x1x128xf32> to vector<1x128xf32>
    %107 = vector.shape_cast %104 : vector<1x128xf32> to vector<1x1x1x128xf32>
    tpu.vector_store %arg5[%c0_100, %c0_101, %c0_102, %c0_103], %107 {strides = array<i32>} : memref<1x1x2x128xf32, #tpu.memory_space<vmem>>, vector<1x1x1x128xf32>,
    %108 = arith.mulf %98, %98 : vector<256x128xf32>
    %cst_104 = arith.constant dense<0.000000e+00> : vector<128xf32>
    %109 = vector.multi_reduction <add>, %108, %cst_104 [0] : vector<256x128xf32> to vector<128xf32>
    %110 = vector.shape_cast %109 : vector<128xf32> to vector<1x128xf32>
    %c0_105 = arith.constant 0 : index
    %c0_106 = arith.constant 0 : index
    %c1_107 = arith.constant 1 : index
    %c0_108 = arith.constant 0 : index
    %111 = vector.load %arg5[%c0_105, %c0_106, %c1_107, %c0_108] : memref<1x1x2x128xf32, #tpu.memory_space<vmem>>, vector<1x1x1x128xf32>
    %112 = vector.shape_cast %111 : vector<1x1x1x128xf32> to vector<1x128xf32>
    %113 = vector.shape_cast %110 : vector<1x128xf32> to vector<1x1x1x128xf32>
    tpu.vector_store %arg5[%c0_105, %c0_106, %c1_107, %c0_108], %113 {strides = array<i32>} : memref<1x1x2x128xf32, #tpu.memory_space<vmem>>, vector<1x1x1x128xf32>,
    return
  }
  func.func @transform_0(%arg0: i32, %arg1: i32) -> (i32, i32, i32, i32) {
    %c0_i32 = arith.constant 0 : i32
    %c0_i32_0 = arith.constant 0 : i32
    %c0_i32_1 = arith.constant 0 : i32
    %c0_i32_2 = arith.constant 0 : i32
    return %arg0, %c0_i32, %c0_i32_0, %c0_i32_1 : i32, i32, i32, i32
  }
  func.func @transform_1(%arg0: i32, %arg1: i32) -> (i32, i32, i32) {
    %c0_i32 = arith.constant 0 : i32
    %c0_i32_0 = arith.constant 0 : i32
    %c0_i32_1 = arith.constant 0 : i32
    %c0_i32_2 = arith.constant 0 : i32
    return %c0_i32, %c0_i32_0, %c0_i32_1 : i32, i32, i32
  }
  func.func @transform_2(%arg0: i32, %arg1: i32) -> (i32, i32, i32, i32) {
    %c0_i32 = arith.constant 0 : i32
    %c0_i32_0 = arith.constant 0 : i32
    %c0_i32_1 = arith.constant 0 : i32
    return %arg0, %arg1, %c0_i32, %c0_i32_0 : i32, i32, i32, i32
  }
  func.func @transform_3(%arg0: i32, %arg1: i32) -> (i32, i32, i32, i32) {
    %c0_i32 = arith.constant 0 : i32
    %c0_i32_0 = arith.constant 0 : i32
    %c0_i32_1 = arith.constant 0 : i32
    return %arg0, %arg1, %c0_i32, %c0_i32_0 : i32, i32, i32, i32
  }
}

</mosaic_0001>

<bundles_post_ra>
// kernel: decoder_forward.4
= control target key start
LH: loop header
LB: loop body
LE: loop exit
PB: predicated region body
PF: predicated region fallthrough
CT: control target
= control target key end

     0   :  { %s541_s1 = inlined_call_operand.vmem [shape: bf16[128,128], index: 1, kind: input, shape index: {}]   ;;  %s542_s0 = inlined_call_operand.vmem [shape: bf16[128,128], index: 0, kind: input, shape index: {}]   ;;  %s543_s2 = inlined_call_operand.vmem [shape: f32[128,128], index: 2, kind: output, shape index: {0}]   ;;  %s544_s3 = inlined_call_operand.vmem [shape: f32[1,2,128], index: 3, kind: output, shape index: {1}]  }
   0x1   :  { %v403_v0 = vld [vmem:[%s541_s1] sm:$0xff]   ;;  %v404_v1 = vld [vmem:[%s541_s1 + $0x8] sm:$0xff]   ;;  %v405_v2 = vld [vmem:[%s541_s1 + $0x10] sm:$0xff]  }
   0x2   :  { %355 = vmatprep.subr.bf16.mxu0 %v403_v0  ;;  %387 = vmatprep.subr.bf16.mxu1 %v403_v0  ;;  %v406_v3 = vld [vmem:[%s541_s1 + $0x18] sm:$0xff]   ;;  %v411_v4 = vld [vmem:[%s542_s0] sm:$0xff]   ;;  %v408_v7 = vld [vmem:[%s541_s1 + $0x28] sm:$0xff]  }
   0x3   :  { %356 = vmatpush3.bf16.msra.mxu0 %v403_v0  ;;  %395 = vmatpush3.bf16.msra.mxu1 %v403_v0  ;;  %v407_v5 = vld [vmem:[%s541_s1 + $0x20] sm:$0xff]   ;;  %v409_v8 = vld [vmem:[%s541_s1 + $0x30] sm:$0xff]   ;;  %v410_v9 = vld [vmem:[%s541_s1 + $0x38] sm:$0xff]  }
   0x4   :  { %357 = vmatprep.subr.bf16.mxu0 %v404_v1  ;;  %388 = vmatprep.subr.bf16.mxu1 %v404_v1  ;;  %v415_v6 = vld [vmem:[%s542_s0 + $0x20] sm:$0xff]   ;;  %v412_v10 = vld [vmem:[%s542_s0 + $0x8] sm:$0xff]   ;;  %v413_v12 = vld [vmem:[%s542_s0 + $0x10] sm:$0xff]  }
   0x5   :  { %371 = vmatprep.mubr.bf16.mxu0 %v411_v4  ;;  %379 = vmatprep.mubr.bf16.mxu1 %v415_v6  ;;  %v416_v11 = vld [vmem:[%s542_s0 + $0x28] sm:$0xff]   ;;  %v417_v13 = vld [vmem:[%s542_s0 + $0x30] sm:$0xff]   ;;  %v414_v14 = vld [vmem:[%s542_s0 + $0x18] sm:$0xff]  }
   0x6   :  { %v418_v15 = vld [vmem:[%s542_s0 + $0x38] sm:$0xff]  }
   0x7   :  { %358 = vmatpush3.bf16.msra.mxu0 %v404_v1  ;;  %396 = vmatpush3.bf16.msra.mxu1 %v404_v1 }
   0x8   :  { %359 = vmatprep.subr.bf16.mxu0 %v405_v2  ;;  %389 = vmatprep.subr.bf16.mxu1 %v405_v2 }
   0xb   :  { %360 = vmatpush3.bf16.msra.mxu0 %v405_v2  ;;  %397 = vmatpush3.bf16.msra.mxu1 %v405_v2 }
   0xc   :  { %361 = vmatprep.subr.bf16.mxu0 %v406_v3  ;;  %390 = vmatprep.subr.bf16.mxu1 %v406_v3 }
   0xf   :  { %362 = vmatpush3.bf16.msra.mxu0 %v406_v3  ;;  %398 = vmatpush3.bf16.msra.mxu1 %v406_v3 }
  0x10   :  { %363 = vmatprep.subr.bf16.mxu0 %v407_v5  ;;  %391 = vmatprep.subr.bf16.mxu1 %v407_v5 }
  0x13   :  { %364 = vmatpush3.bf16.msra.mxu0 %v407_v5  ;;  %399 = vmatpush3.bf16.msra.mxu1 %v407_v5 }
  0x14   :  { %365 = vmatprep.subr.bf16.mxu0 %v408_v7  ;;  %392 = vmatprep.subr.bf16.mxu1 %v408_v7 }
  0x17   :  { %366 = vmatpush3.bf16.msra.mxu0 %v408_v7  ;;  %400 = vmatpush3.bf16.msra.mxu1 %v408_v7 }
  0x18   :  { %367 = vmatprep.subr.bf16.mxu0 %v409_v8  ;;  %393 = vmatprep.subr.bf16.mxu1 %v409_v8 }
  0x1b   :  { %368 = vmatpush3.bf16.msra.mxu0 %v409_v8  ;;  %401 = vmatpush3.bf16.msra.mxu1 %v409_v8 }
  0x1c   :  { %369 = vmatprep.subr.bf16.mxu0 %v410_v9  ;;  %394 = vmatprep.subr.bf16.mxu1 %v410_v9 }
  0x1f   :  { %370 = vmatpush3.bf16.msra.mxu0 %v410_v9  ;;  %402 = vmatpush3.bf16.msra.mxu1 %v410_v9 }
  0x22   :  { %372 = vmatmul.mubr.bf16.vlgmr.msra.gmra.mrb[0].mxu0 %v412_v10  ;;  %380 = vmatmul.mubr.bf16.vlgmr.msra.gmra.mrb[0].mxu1 %v416_v11 }
  0x23   :  { %375 = vmatprep.mubr.bf16.mxu0 %v413_v12  ;;  %383 = vmatprep.mubr.bf16.mxu1 %v417_v13 }
  0x2a   :  { %376 = vmatmul.mubr.bf16.gmra.mrb[4].mxu0 %v414_v14  ;;  %384 = vmatmul.mubr.bf16.gmra.mrb[4].mxu1 %v418_v15 }
  0xf5   :  { %v373_v16 = vpop.f32.mrb[0].mxu0  ;;  %v381_v17 = vpop.f32.mrb[0].mxu1 }
  0xf6   :  { %241 = vst [vmem:[%s543_s2 + $0x10] sm:$0xff] %v373_v16  ;;  %v176_v18 = vpop.f32.mrb[1].mxu0  ;;  %249 = vst [vmem:[%s543_s2 + $0x50] sm:$0xff] %v381_v17  ;;  %v208_v19 = vpop.f32.mrb[1].mxu1  ;;  %v279_v27 = vmul.f32 %v373_v16, %v373_v16  ;;  %v287_v59 = vmul.f32 %v381_v17, %v381_v17 }
  0xf7   :  { %239 = vst [vmem:[%s543_s2] sm:$0xff] %v176_v18  ;;  %v374_v20 = vpop.f32.mrb[2].mxu0  ;;  %247 = vst [vmem:[%s543_s2 + $0x40] sm:$0xff] %v208_v19  ;;  %v382_v21 = vpop.f32.mrb[2].mxu1  ;;  %v277_v24 = vmul.f32 %v176_v18, %v176_v18  ;;  %v285_v53 = vmul.f32 %v208_v19, %v208_v19 }
  0xf8   :  { %242 = vst [vmem:[%s543_s2 + $0x18] sm:$0xff] %v374_v20  ;;  %v179_v22 = vpop.f32.mrb[3].mxu0  ;;  %250 = vst [vmem:[%s543_s2 + $0x58] sm:$0xff] %v382_v21  ;;  %v211_v23 = vpop.f32.mrb[3].mxu1  ;;  %v280_v30 = vmul.f32 %v374_v20, %v374_v20  ;;  %v288_v62 = vmul.f32 %v382_v21, %v382_v21 }
  0xf9   :  { %240 = vst [vmem:[%s543_s2 + $0x8] sm:$0xff] %v179_v22  ;;  %v255_v25 = vadd.f32 %v179_v22, %v176_v18  ;;  %v278_v26 = vmul.f32 %v179_v22, %v179_v22  ;;  %248 = vst [vmem:[%s543_s2 + $0x48] sm:$0xff] %v211_v23  ;;  %v286_v58 = vmul.f32 %v211_v23, %v211_v23 }
  0xfb   :  { %v256_v28 = vadd.f32 %v373_v16, %v255_v25  ;;  %v293_v29 = vadd.f32 %v278_v26, %v277_v24 }
  0xfd   :  { %v294_v31 = vadd.f32 %v293_v29, %v279_v27  ;;  %v377_v32 = vpop.f32.mrb[4].mxu0  ;;  %v257_v33 = vadd.f32 %v374_v20, %v256_v28  ;;  %v385_v34 = vpop.f32.mrb[4].mxu1 }
  0xfe   :  { %245 = vst [vmem:[%s543_s2 + $0x30] sm:$0xff] %v377_v32  ;;  %v192_v35 = vpop.f32.mrb[5].mxu0  ;;  %253 = vst [vmem:[%s543_s2 + $0x70] sm:$0xff] %v385_v34  ;;  %v224_v36 = vpop.f32.mrb[5].mxu1  ;;  %v283_v47 = vmul.f32 %v377_v32, %v377_v32  ;;  %v291_v7 = vmul.f32 %v385_v34, %v385_v34 }
  0xff   :  { %243 = vst [vmem:[%s543_s2 + $0x20] sm:$0xff] %v192_v35  ;;  %v258_v37 = vadd.f32 %v257_v33, %v192_v35  ;;  %v281_v38 = vmul.f32 %v192_v35, %v192_v35  ;;  %v295_v39 = vadd.f32 %v294_v31, %v280_v30  ;;  %v378_v40 = vpop.f32.mrb[6].mxu0  ;;  %251 = vst [vmem:[%s543_s2 + $0x60] sm:$0xff] %v224_v36  ;;  %v386_v41 = vpop.f32.mrb[6].mxu1 }
 0x100   :  { %246 = vst [vmem:[%s543_s2 + $0x38] sm:$0xff] %v378_v40  ;;  %v195_v42 = vpop.f32.mrb[7].mxu0  ;;  %254 = vst [vmem:[%s543_s2 + $0x78] sm:$0xff] %v386_v41  ;;  %v227_v43 = vpop.f32.mrb[7].mxu1  ;;  %v284_v50 = vmul.f32 %v378_v40, %v378_v40  ;;  %v289_v1 = vmul.f32 %v224_v36, %v224_v36  ;;  %v292_v10 = vmul.f32 %v386_v41, %v386_v41 }
 0x101   :  { %v296_v44 = vadd.f32 %v295_v39, %v281_v38  ;;  %244 = vst [vmem:[%s543_s2 + $0x28] sm:$0xff] %v195_v42  ;;  %v259_v45 = vadd.f32 %v258_v37, %v195_v42  ;;  %v282_v46 = vmul.f32 %v195_v42, %v195_v42  ;;  %252 = vst [vmem:[%s543_s2 + $0x68] sm:$0xff] %v227_v43 }
 0x102   :  { %v290_v6 = vmul.f32 %v227_v43, %v227_v43 }
 0x103   :  { %v260_v48 = vadd.f32 %v377_v32, %v259_v45  ;;  %v297_v49 = vadd.f32 %v296_v44, %v282_v46 }
 0x105   :  { %v298_v51 = vadd.f32 %v297_v49, %v283_v47  ;;  %v261_v52 = vadd.f32 %v378_v40, %v260_v48 }
 0x107   :  { %v262_v54 = vadd.f32 %v261_v52, %v208_v19  ;;  %v299_v55 = vadd.f32 %v298_v51, %v284_v50 }
 0x109   :  { %v300_v56 = vadd.f32 %v299_v55, %v285_v53  ;;  %v263_v57 = vadd.f32 %v262_v54, %v211_v23 }
 0x10b   :  { %v264_v60 = vadd.f32 %v381_v17, %v263_v57  ;;  %v301_v61 = vadd.f32 %v300_v56, %v286_v58 }
 0x10d   :  { %v302_v63 = vadd.f32 %v301_v61, %v287_v59  ;;  %v265_v0 = vadd.f32 %v382_v21, %v264_v60 }
 0x10f   :  { %v266_v2 = vadd.f32 %v265_v0, %v224_v36  ;;  %v303_v3 = vadd.f32 %v302_v63, %v288_v62 }
 0x111   :  { %v304_v4 = vadd.f32 %v303_v3, %v289_v1  ;;  %v267_v5 = vadd.f32 %v266_v2, %v227_v43 }
 0x113   :  { %v268_v8 = vadd.f32 %v385_v34, %v267_v5  ;;  %v305_v9 = vadd.f32 %v304_v4, %v290_v6 }
 0x115   :  { %v269_v11 = vadd.f32 %v386_v41, %v268_v8  ;;  %v306_v12 = vadd.f32 %v305_v9, %v291_v7 }
 0x117   :  { %v270_v13 = vrot.slane %v269_v11, 4  ;;  %v307_v14 = vadd.f32 %v306_v12, %v292_v10 }
 0x119   :  { %v271_v15 = vadd.f32 %v270_v13, %v269_v11  ;;  %v308_v16 = vrot.slane %v307_v14, 4 }
 0x11b   :  { %v272_v17 = vrot.slane %v271_v15, 2  ;;  %v309_v18 = vadd.f32 %v308_v16, %v307_v14 }
 0x11d   :  { %v273_v19 = vadd.f32 %v272_v17, %v271_v15  ;;  %v310_v20 = vrot.slane %v309_v18, 2 }
 0x11f   :  { %v274_v21 = vrot.slane %v273_v19, 1  ;;  %v311_v22 = vadd.f32 %v310_v20, %v309_v18 }
 0x121   :  { %v275_v23 = vadd.f32 %v274_v21, %v273_v19  ;;  %v312_v24 = vrot.slane %v311_v22, 1 }
 0x123   :  { %276 = vst [vmem:[%s544_s3] sm:$0x1] %v275_v23  ;;  %v313_v25 = vadd.f32 %v312_v24, %v311_v22 }
 0x125   :  { %314 = vst [vmem:[%s544_s3 + $0x1] sm:$0x1] %v313_v25 }

// kernel: decoder_forward.7
= control target key start
LH: loop header
LB: loop body
LE: loop exit
PB: predicated region body
PF: predicated region fallthrough
CT: control target
= control target key end

     0   :  { %s896_s0 = inlined_call_operand.vmem [shape: f32[512,128], index: 0, kind: input, shape index: {}]   ;;  %s897_s1 = inlined_call_operand.vmem [shape: f32[1,128], index: 1, kind: input, shape index: {}]   ;;  %s898_s2 = inlined_call_operand.vmem [shape: f32[1,128], index: 2, kind: input, shape index: {}]   ;;  %s899_s3 = inlined_call_operand.vmem [shape: f32[512,128], index: 3, kind: output, shape index: {}]  }
   0x1   :  { %v14_v0 = vld [vmem:[%s896_s0] sm:$0xff]  ;;  %v15_v4 = vld [vmem:[%s896_s0 + $0x8] sm:$0xff]  ;;  %v16_v5 = vld [vmem:[%s896_s0 + $0x10] sm:$0xff] }
   0x2   :  { %v380_v1 = vld [vmem:[%s897_s1] ss:$0 sm:$0xff]  ;;  %v17_v6 = vld [vmem:[%s896_s0 + $0x18] sm:$0xff]  ;;  %v19_v11 = vld [vmem:[%s896_s0 + $0x28] sm:$0xff] }
   0x3   :  { %v385_v2 = vld [vmem:[%s898_s2] ss:$0 sm:$0xff]  ;;  %v85_v3 = vmul.f32 %v380_v1, %v14_v0  ;;  %v86_v7 = vmul.f32 %v380_v1, %v15_v4  ;;  %v87_v8 = vmul.f32 %v380_v1, %v16_v5  ;;  %v88_v9 = vmul.f32 %v380_v1, %v17_v6  ;;  %v20_v12 = vld [vmem:[%s896_s0 + $0x30] sm:$0xff]  ;;  %v21_v17 = vld [vmem:[%s896_s0 + $0x38] sm:$0xff] }
   0x4   :  { %v18_v10 = vld [vmem:[%s896_s0 + $0x20] sm:$0xff]  ;;  %v90_v15 = vmul.f32 %v380_v1, %v19_v11  ;;  %v91_v16 = vmul.f32 %v380_v1, %v20_v12  ;;  %v92_v21 = vmul.f32 %v380_v1, %v21_v17  ;;  %v23_v27 = vld [vmem:[%s896_s0 + $0x48] sm:$0xff]  ;;  %v24_v28 = vld [vmem:[%s896_s0 + $0x50] sm:$0xff] }
   0x5   :  { %v156_v13 = vadd.f32 %v385_v2, %v85_v3  ;;  %v89_v14 = vmul.f32 %v380_v1, %v18_v10  ;;  %v157_v18 = vadd.f32 %v385_v2, %v86_v7  ;;  %v158_v19 = vadd.f32 %v385_v2, %v87_v8  ;;  %v22_v22 = vld [vmem:[%s896_s0 + $0x40] sm:$0xff]  ;;  %v25_v29 = vld [vmem:[%s896_s0 + $0x58] sm:$0xff]  ;;  %v27_v35 = vld [vmem:[%s896_s0 + $0x68] sm:$0xff] }
   0x6   :  { %v159_v20 = vadd.f32 %v385_v2, %v88_v9  ;;  %v161_v25 = vadd.f32 %v385_v2, %v90_v15  ;;  %v162_v26 = vadd.f32 %v385_v2, %v91_v16  ;;  %v163_v33 = vadd.f32 %v385_v2, %v92_v21  ;;  %v26_v34 = vld [vmem:[%s896_s0 + $0x60] sm:$0xff]  ;;  %v28_v36 = vld [vmem:[%s896_s0 + $0x70] sm:$0xff]  ;;  %v29_v41 = vld [vmem:[%s896_s0 + $0x78] sm:$0xff] }
   0x7   :  { %v220_v23 = vmax.f32 %v156_v13, 0.0  ;;  %v160_v24 = vadd.f32 %v385_v2, %v89_v14  ;;  %v221_v30 = vmax.f32 %v157_v18, 0.0  ;;  %v222_v31 = vmax.f32 %v158_v19, 0.0  ;;  %v30_v54 = vld [vmem:[%s896_s0 + $0x80] sm:$0xff]  ;;  %v31_v59 = vld [vmem:[%s896_s0 + $0x88] sm:$0xff]  ;;  %v32_v60 = vld [vmem:[%s896_s0 + $0x90] sm:$0xff] }
   0x8   :  { %v223_v32 = vmax.f32 %v159_v20, 0.0  ;;  %v225_v38 = vmax.f32 %v161_v25, 0.0  ;;  %v226_v39 = vmax.f32 %v162_v26, 0.0  ;;  %v93_v40 = vmul.f32 %v380_v1, %v22_v22  ;;  %v33_v61 = vld [vmem:[%s896_s0 + $0x98] sm:$0xff]  ;;  %v34_v4 = vld [vmem:[%s896_s0 + $0xa0] sm:$0xff]  ;;  %v35_v5 = vld [vmem:[%s896_s0 + $0xa8] sm:$0xff] }
   0x9   :  { %284 = vst [vmem:[%s899_s3] sm:$0xff] %v220_v23  ;;  %v224_v37 = vmax.f32 %v160_v24, 0.0  ;;  %285 = vst [vmem:[%s899_s3 + $0x8] sm:$0xff] %v221_v30  ;;  %v227_v42 = vmax.f32 %v163_v33, 0.0  ;;  %v94_v43 = vmul.f32 %v380_v1, %v23_v27  ;;  %v95_v44 = vmul.f32 %v380_v1, %v24_v28  ;;  %v36_v6 = vld [vmem:[%s896_s0 + $0xb0] sm:$0xff]  ;;  %v37_v11 = vld [vmem:[%s896_s0 + $0xb8] sm:$0xff] }
   0xa   :  { %286 = vst [vmem:[%s899_s3 + $0x10] sm:$0xff] %v222_v31  ;;  %287 = vst [vmem:[%s899_s3 + $0x18] sm:$0xff] %v223_v32  ;;  %v96_v45 = vmul.f32 %v380_v1, %v25_v29  ;;  %v164_v46 = vadd.f32 %v385_v2, %v93_v40  ;;  %v97_v47 = vmul.f32 %v380_v1, %v26_v34  ;;  %v38_v24 = vld [vmem:[%s896_s0 + $0xc0] sm:$0xff]  ;;  %v39_v29 = vld [vmem:[%s896_s0 + $0xc8] sm:$0xff] }
   0xb   :  { %288 = vst [vmem:[%s899_s3 + $0x20] sm:$0xff] %v224_v37  ;;  %289 = vst [vmem:[%s899_s3 + $0x28] sm:$0xff] %v225_v38  ;;  %v98_v48 = vmul.f32 %v380_v1, %v27_v35  ;;  %v99_v49 = vmul.f32 %v380_v1, %v28_v36  ;;  %v165_v50 = vadd.f32 %v385_v2, %v94_v43  ;;  %v40_v30 = vld [vmem:[%s896_s0 + $0xd0] sm:$0xff]  ;;  %v41_v31 = vld [vmem:[%s896_s0 + $0xd8] sm:$0xff] }
   0xc   :  { %290 = vst [vmem:[%s899_s3 + $0x30] sm:$0xff] %v226_v39  ;;  %291 = vst [vmem:[%s899_s3 + $0x38] sm:$0xff] %v227_v42  ;;  %v166_v51 = vadd.f32 %v385_v2, %v95_v44  ;;  %v167_v52 = vadd.f32 %v385_v2, %v96_v45  ;;  %v100_v53 = vmul.f32 %v380_v1, %v29_v41  ;;  %v228_v55 = vmax.f32 %v164_v46, 0.0  ;;  %v42_v36 = vld [vmem:[%s896_s0 + $0xe0] sm:$0xff]  ;;  %v43_v37 = vld [vmem:[%s896_s0 + $0xe8] sm:$0xff] }
   0xd   :  { %v168_v56 = vadd.f32 %v385_v2, %v97_v47  ;;  %v169_v57 = vadd.f32 %v385_v2, %v98_v48  ;;  %v170_v58 = vadd.f32 %v385_v2, %v99_v49  ;;  %v229_v62 = vmax.f32 %v165_v50, 0.0  ;;  %v44_v38 = vld [vmem:[%s896_s0 + $0xf0] sm:$0xff]  ;;  %v45_v43 = vld [vmem:[%s896_s0 + $0xf8] sm:$0xff] }
   0xe   :  { %v230_v63 = vmax.f32 %v166_v51, 0.0  ;;  %v231_v0 = vmax.f32 %v167_v52, 0.0  ;;  %v171_v3 = vadd.f32 %v385_v2, %v100_v53  ;;  %292 = vst [vmem:[%s899_s3 + $0x40] sm:$0xff] %v228_v55  ;;  %v101_v10 = vmul.f32 %v380_v1, %v30_v54 }
   0xf   :  { %v232_v7 = vmax.f32 %v168_v56, 0.0  ;;  %v233_v8 = vmax.f32 %v169_v57, 0.0  ;;  %v234_v9 = vmax.f32 %v170_v58, 0.0  ;;  %293 = vst [vmem:[%s899_s3 + $0x48] sm:$0xff] %v229_v62  ;;  %v102_v13 = vmul.f32 %v380_v1, %v31_v59  ;;  %v46_v56 = vld [vmem:[%s896_s0 + $0x100] sm:$0xff]  ;;  %v48_v62 = vld [vmem:[%s896_s0 + $0x110] sm:$0xff] }
  0x10   :  { %294 = vst [vmem:[%s899_s3 + $0x50] sm:$0xff] %v230_v63  ;;  %295 = vst [vmem:[%s899_s3 + $0x58] sm:$0xff] %v231_v0  ;;  %v235_v12 = vmax.f32 %v171_v3, 0.0  ;;  %v103_v14 = vmul.f32 %v380_v1, %v32_v60  ;;  %v104_v15 = vmul.f32 %v380_v1, %v33_v61  ;;  %v172_v16 = vadd.f32 %v385_v2, %v101_v10  ;;  %v47_v61 = vld [vmem:[%s896_s0 + $0x108] sm:$0xff]  ;;  %v49_v63 = vld [vmem:[%s896_s0 + $0x118] sm:$0xff] }
  0x11   :  { %296 = vst [vmem:[%s899_s3 + $0x60] sm:$0xff] %v232_v7  ;;  %297 = vst [vmem:[%s899_s3 + $0x68] sm:$0xff] %v233_v8  ;;  %v105_v17 = vmul.f32 %v380_v1, %v34_v4  ;;  %v106_v18 = vmul.f32 %v380_v1, %v35_v5  ;;  %v107_v19 = vmul.f32 %v380_v1, %v36_v6  ;;  %v50_v6 = vld [vmem:[%s896_s0 + $0x120] sm:$0xff]  ;;  %v51_v7 = vld [vmem:[%s896_s0 + $0x128] sm:$0xff] }
  0x12   :  { %298 = vst [vmem:[%s899_s3 + $0x70] sm:$0xff] %v234_v9  ;;  %299 = vst [vmem:[%s899_s3 + $0x78] sm:$0xff] %v235_v12  ;;  %v173_v20 = vadd.f32 %v385_v2, %v102_v13  ;;  %v174_v21 = vadd.f32 %v385_v2, %v103_v14  ;;  %v175_v22 = vadd.f32 %v385_v2, %v104_v15  ;;  %v236_v25 = vmax.f32 %v172_v16, 0.0  ;;  %v52_v8 = vld [vmem:[%s896_s0 + $0x130] sm:$0xff]  ;;  %v53_v13 = vld [vmem:[%s896_s0 + $0x138] sm:$0xff] }
  0x13   :  { %v108_v23 = vmul.f32 %v380_v1, %v37_v11  ;;  %v176_v26 = vadd.f32 %v385_v2, %v105_v17  ;;  %v177_v27 = vadd.f32 %v385_v2, %v106_v18  ;;  %v178_v28 = vadd.f32 %v385_v2, %v107_v19 }
  0x14   :  { %v237_v32 = vmax.f32 %v173_v20, 0.0  ;;  %v238_v33 = vmax.f32 %v174_v21, 0.0  ;;  %v239_v34 = vmax.f32 %v175_v22, 0.0  ;;  %300 = vst [vmem:[%s899_s3 + $0x80] sm:$0xff] %v236_v25  ;;  %v109_v42 = vmul.f32 %v380_v1, %v38_v24 }
  0x15   :  { %v179_v35 = vadd.f32 %v385_v2, %v108_v23  ;;  %v240_v39 = vmax.f32 %v176_v26, 0.0  ;;  %v241_v40 = vmax.f32 %v177_v27, 0.0  ;;  %v242_v41 = vmax.f32 %v178_v28, 0.0  ;;  %v54_v26 = vld [vmem:[%s896_s0 + $0x140] sm:$0xff] }
  0x16   :  { %301 = vst [vmem:[%s899_s3 + $0x88] sm:$0xff] %v237_v32  ;;  %302 = vst [vmem:[%s899_s3 + $0x90] sm:$0xff] %v238_v33  ;;  %v110_v45 = vmul.f32 %v380_v1, %v39_v29  ;;  %v111_v46 = vmul.f32 %v380_v1, %v40_v30  ;;  %v112_v47 = vmul.f32 %v380_v1, %v41_v31  ;;  %v55_v31 = vld [vmem:[%s896_s0 + $0x148] sm:$0xff]  ;;  %v56_v32 = vld [vmem:[%s896_s0 + $0x150] sm:$0xff] }
  0x17   :  { %303 = vst [vmem:[%s899_s3 + $0x98] sm:$0xff] %v239_v34  ;;  %v243_v44 = vmax.f32 %v179_v35, 0.0  ;;  %304 = vst [vmem:[%s899_s3 + $0xa0] sm:$0xff] %v240_v39  ;;  %v180_v48 = vadd.f32 %v385_v2, %v109_v42  ;;  %v113_v49 = vmul.f32 %v380_v1, %v42_v36  ;;  %v114_v50 = vmul.f32 %v380_v1, %v43_v37  ;;  %v57_v33 = vld [vmem:[%s896_s0 + $0x158] sm:$0xff]  ;;  %v59_v39 = vld [vmem:[%s896_s0 + $0x168] sm:$0xff] }
  0x18   :  { %305 = vst [vmem:[%s899_s3 + $0xa8] sm:$0xff] %v241_v40  ;;  %306 = vst [vmem:[%s899_s3 + $0xb0] sm:$0xff] %v242_v41  ;;  %v115_v51 = vmul.f32 %v380_v1, %v44_v38  ;;  %v181_v52 = vadd.f32 %v385_v2, %v110_v45  ;;  %v182_v53 = vadd.f32 %v385_v2, %v111_v46  ;;  %v58_v38 = vld [vmem:[%s896_s0 + $0x160] sm:$0xff]  ;;  %v60_v40 = vld [vmem:[%s896_s0 + $0x170] sm:$0xff] }
  0x19   :  { %307 = vst [vmem:[%s899_s3 + $0xb8] sm:$0xff] %v243_v44  ;;  %v183_v54 = vadd.f32 %v385_v2, %v112_v47  ;;  %v116_v55 = vmul.f32 %v380_v1, %v45_v43  ;;  %v244_v57 = vmax.f32 %v180_v48, 0.0  ;;  %v184_v58 = vadd.f32 %v385_v2, %v113_v49  ;;  %v61_v45 = vld [vmem:[%s896_s0 + $0x178] sm:$0xff] }
  0x1a   :  { %v185_v59 = vadd.f32 %v385_v2, %v114_v50  ;;  %v186_v60 = vadd.f32 %v385_v2, %v115_v51  ;;  %v245_v0 = vmax.f32 %v181_v52, 0.0  ;;  %v246_v3 = vmax.f32 %v182_v53, 0.0 }
  0x1b   :  { %v247_v4 = vmax.f32 %v183_v54, 0.0  ;;  %v187_v5 = vadd.f32 %v385_v2, %v116_v55  ;;  %308 = vst [vmem:[%s899_s3 + $0xc0] sm:$0xff] %v244_v57  ;;  %v248_v9 = vmax.f32 %v184_v58, 0.0  ;;  %v117_v12 = vmul.f32 %v380_v1, %v46_v56  ;;  %v62_v58 = vld [vmem:[%s896_s0 + $0x180] sm:$0xff] }
  0x1c   :  { %v249_v10 = vmax.f32 %v185_v59, 0.0  ;;  %v250_v11 = vmax.f32 %v186_v60, 0.0  ;;  %309 = vst [vmem:[%s899_s3 + $0xc8] sm:$0xff] %v245_v0  ;;  %310 = vst [vmem:[%s899_s3 + $0xd0] sm:$0xff] %v246_v3  ;;  %v118_v15 = vmul.f32 %v380_v1, %v47_v61  ;;  %v119_v16 = vmul.f32 %v380_v1, %v48_v62  ;;  %v64_v0 = vld [vmem:[%s896_s0 + $0x190] sm:$0xff]  ;;  %v65_v3 = vld [vmem:[%s896_s0 + $0x198] sm:$0xff] }
  0x1d   :  { %311 = vst [vmem:[%s899_s3 + $0xd8] sm:$0xff] %v247_v4  ;;  %v251_v14 = vmax.f32 %v187_v5, 0.0  ;;  %v120_v17 = vmul.f32 %v380_v1, %v49_v63  ;;  %312 = vst [vmem:[%s899_s3 + $0xe0] sm:$0xff] %v248_v9  ;;  %v188_v18 = vadd.f32 %v385_v2, %v117_v12  ;;  %v121_v19 = vmul.f32 %v380_v1, %v50_v6  ;;  %v63_v63 = vld [vmem:[%s896_s0 + $0x188] sm:$0xff] }
  0x1e   :  { %313 = vst [vmem:[%s899_s3 + $0xe8] sm:$0xff] %v249_v10  ;;  %314 = vst [vmem:[%s899_s3 + $0xf0] sm:$0xff] %v250_v11  ;;  %v122_v20 = vmul.f32 %v380_v1, %v51_v7  ;;  %v123_v21 = vmul.f32 %v380_v1, %v52_v8  ;;  %v189_v22 = vadd.f32 %v385_v2, %v118_v15  ;;  %v66_v8 = vld [vmem:[%s896_s0 + $0x1a0] sm:$0xff]  ;;  %v67_v9 = vld [vmem:[%s896_s0 + $0x1a8] sm:$0xff] }
  0x1f   :  { %315 = vst [vmem:[%s899_s3 + $0xf8] sm:$0xff] %v251_v14  ;;  %v190_v23 = vadd.f32 %v385_v2, %v119_v16  ;;  %v191_v24 = vadd.f32 %v385_v2, %v120_v17  ;;  %v124_v25 = vmul.f32 %v380_v1, %v53_v13  ;;  %v252_v27 = vmax.f32 %v188_v18, 0.0  ;;  %v68_v10 = vld [vmem:[%s896_s0 + $0x1b0] sm:$0xff]  ;;  %v69_v15 = vld [vmem:[%s896_s0 + $0x1b8] sm:$0xff] }
  0x20   :  { %v192_v28 = vadd.f32 %v385_v2, %v121_v19  ;;  %v193_v29 = vadd.f32 %v385_v2, %v122_v20  ;;  %v194_v30 = vadd.f32 %v385_v2, %v123_v21  ;;  %v253_v34 = vmax.f32 %v189_v22, 0.0 }
  0x21   :  { %v254_v35 = vmax.f32 %v190_v23, 0.0  ;;  %v255_v36 = vmax.f32 %v191_v24, 0.0  ;;  %v195_v37 = vadd.f32 %v385_v2, %v124_v25  ;;  %316 = vst [vmem:[%s899_s3 + $0x100] sm:$0xff] %v252_v27  ;;  %v125_v44 = vmul.f32 %v380_v1, %v54_v26 }
  0x22   :  { %v256_v41 = vmax.f32 %v192_v28, 0.0  ;;  %v257_v42 = vmax.f32 %v193_v29, 0.0  ;;  %v258_v43 = vmax.f32 %v194_v30, 0.0  ;;  %317 = vst [vmem:[%s899_s3 + $0x108] sm:$0xff] %v253_v34  ;;  %v126_v47 = vmul.f32 %v380_v1, %v55_v31  ;;  %v70_v28 = vld [vmem:[%s896_s0 + $0x1c0] sm:$0xff]  ;;  %v72_v34 = vld [vmem:[%s896_s0 + $0x1d0] sm:$0xff] }
  0x23   :  { %318 = vst [vmem:[%s899_s3 + $0x110] sm:$0xff] %v254_v35  ;;  %319 = vst [vmem:[%s899_s3 + $0x118] sm:$0xff] %v255_v36  ;;  %v259_v46 = vmax.f32 %v195_v37, 0.0  ;;  %v127_v48 = vmul.f32 %v380_v1, %v56_v32  ;;  %v128_v49 = vmul.f32 %v380_v1, %v57_v33  ;;  %v196_v50 = vadd.f32 %v385_v2, %v125_v44  ;;  %v71_v33 = vld [vmem:[%s896_s0 + $0x1c8] sm:$0xff]  ;;  %v73_v35 = vld [vmem:[%s896_s0 + $0x1d8] sm:$0xff] }
  0x24   :  { %320 = vst [vmem:[%s899_s3 + $0x120] sm:$0xff] %v256_v41  ;;  %321 = vst [vmem:[%s899_s3 + $0x128] sm:$0xff] %v257_v42  ;;  %v129_v51 = vmul.f32 %v380_v1, %v58_v38  ;;  %v130_v52 = vmul.f32 %v380_v1, %v59_v39  ;;  %v131_v53 = vmul.f32 %v380_v1, %v60_v40  ;;  %v74_v40 = vld [vmem:[%s896_s0 + $0x1e0] sm:$0xff]  ;;  %v75_v41 = vld [vmem:[%s896_s0 + $0x1e8] sm:$0xff] }
  0x25   :  { %322 = vst [vmem:[%s899_s3 + $0x130] sm:$0xff] %v258_v43  ;;  %323 = vst [vmem:[%s899_s3 + $0x138] sm:$0xff] %v259_v46  ;;  %v197_v54 = vadd.f32 %v385_v2, %v126_v47  ;;  %v198_v55 = vadd.f32 %v385_v2, %v127_v48  ;;  %v199_v56 = vadd.f32 %v385_v2, %v128_v49  ;;  %v260_v59 = vmax.f32 %v196_v50, 0.0  ;;  %v76_v42 = vld [vmem:[%s896_s0 + $0x1f0] sm:$0xff]  ;;  %v77_v47 = vld [vmem:[%s896_s0 + $0x1f8] sm:$0xff] }
  0x26   :  { %v132_v57 = vmul.f32 %v380_v1, %v61_v45  ;;  %v200_v60 = vadd.f32 %v385_v2, %v129_v51  ;;  %v201_v61 = vadd.f32 %v385_v2, %v130_v52  ;;  %v202_v62 = vadd.f32 %v385_v2, %v131_v53 }
  0x27   :  { %v261_v4 = vmax.f32 %v197_v54, 0.0  ;;  %v262_v5 = vmax.f32 %v198_v55, 0.0  ;;  %v263_v6 = vmax.f32 %v199_v56, 0.0  ;;  %324 = vst [vmem:[%s899_s3 + $0x140] sm:$0xff] %v260_v59  ;;  %v133_v14 = vmul.f32 %v380_v1, %v62_v58 }
  0x28   :  { %v203_v7 = vadd.f32 %v385_v2, %v132_v57  ;;  %v264_v11 = vmax.f32 %v200_v60, 0.0  ;;  %v265_v12 = vmax.f32 %v201_v61, 0.0  ;;  %v266_v13 = vmax.f32 %v202_v62, 0.0 }
  0x29   :  { %325 = vst [vmem:[%s899_s3 + $0x148] sm:$0xff] %v261_v4  ;;  %326 = vst [vmem:[%s899_s3 + $0x150] sm:$0xff] %v262_v5  ;;  %v134_v17 = vmul.f32 %v380_v1, %v63_v63  ;;  %v135_v18 = vmul.f32 %v380_v1, %v64_v0  ;;  %v136_v19 = vmul.f32 %v380_v1, %v65_v3 }
  0x2a   :  { %327 = vst [vmem:[%s899_s3 + $0x158] sm:$0xff] %v263_v6  ;;  %v267_v16 = vmax.f32 %v203_v7, 0.0  ;;  %328 = vst [vmem:[%s899_s3 + $0x160] sm:$0xff] %v264_v11  ;;  %v204_v20 = vadd.f32 %v385_v2, %v133_v14  ;;  %v137_v21 = vmul.f32 %v380_v1, %v66_v8  ;;  %v138_v22 = vmul.f32 %v380_v1, %v67_v9 }
  0x2b   :  { %329 = vst [vmem:[%s899_s3 + $0x168] sm:$0xff] %v265_v12  ;;  %330 = vst [vmem:[%s899_s3 + $0x170] sm:$0xff] %v266_v13  ;;  %v139_v23 = vmul.f32 %v380_v1, %v68_v10  ;;  %v205_v24 = vadd.f32 %v385_v2, %v134_v17  ;;  %v206_v25 = vadd.f32 %v385_v2, %v135_v18 }
  0x2c   :  { %331 = vst [vmem:[%s899_s3 + $0x178] sm:$0xff] %v267_v16  ;;  %v207_v26 = vadd.f32 %v385_v2, %v136_v19  ;;  %v140_v27 = vmul.f32 %v380_v1, %v69_v15  ;;  %v268_v29 = vmax.f32 %v204_v20, 0.0  ;;  %v208_v30 = vadd.f32 %v385_v2, %v137_v21 }
  0x2d   :  { %v209_v31 = vadd.f32 %v385_v2, %v138_v22  ;;  %v210_v32 = vadd.f32 %v385_v2, %v139_v23  ;;  %v269_v36 = vmax.f32 %v205_v24, 0.0  ;;  %v270_v37 = vmax.f32 %v206_v25, 0.0 }
  0x2e   :  { %v271_v38 = vmax.f32 %v207_v26, 0.0  ;;  %v211_v39 = vadd.f32 %v385_v2, %v140_v27  ;;  %332 = vst [vmem:[%s899_s3 + $0x180] sm:$0xff] %v268_v29  ;;  %v272_v43 = vmax.f32 %v208_v30, 0.0  ;;  %v141_v46 = vmul.f32 %v380_v1, %v70_v28 }
  0x2f   :  { %v273_v44 = vmax.f32 %v209_v31, 0.0  ;;  %v274_v45 = vmax.f32 %v210_v32, 0.0  ;;  %333 = vst [vmem:[%s899_s3 + $0x188] sm:$0xff] %v269_v36  ;;  %334 = vst [vmem:[%s899_s3 + $0x190] sm:$0xff] %v270_v37  ;;  %v142_v49 = vmul.f32 %v380_v1, %v71_v33  ;;  %v143_v50 = vmul.f32 %v380_v1, %v72_v34 }
  0x30   :  { %335 = vst [vmem:[%s899_s3 + $0x198] sm:$0xff] %v271_v38  ;;  %v275_v48 = vmax.f32 %v211_v39, 0.0  ;;  %v144_v51 = vmul.f32 %v380_v1, %v73_v35  ;;  %336 = vst [vmem:[%s899_s3 + $0x1a0] sm:$0xff] %v272_v43  ;;  %v212_v52 = vadd.f32 %v385_v2, %v141_v46  ;;  %v145_v53 = vmul.f32 %v380_v1, %v74_v40 }
  0x31   :  { %337 = vst [vmem:[%s899_s3 + $0x1a8] sm:$0xff] %v273_v44  ;;  %338 = vst [vmem:[%s899_s3 + $0x1b0] sm:$0xff] %v274_v45  ;;  %v146_v54 = vmul.f32 %v380_v1, %v75_v41  ;;  %v147_v55 = vmul.f32 %v380_v1, %v76_v42  ;;  %v213_v56 = vadd.f32 %v385_v2, %v142_v49 }
  0x32   :  { %339 = vst [vmem:[%s899_s3 + $0x1b8] sm:$0xff] %v275_v48  ;;  %v214_v57 = vadd.f32 %v385_v2, %v143_v50  ;;  %v215_v58 = vadd.f32 %v385_v2, %v144_v51  ;;  %v148_v59 = vmul.f32 %v380_v1, %v77_v47  ;;  %v276_v60 = vmax.f32 %v212_v52, 0.0 }
  0x33   :  { %v216_v61 = vadd.f32 %v385_v2, %v145_v53  ;;  %v217_v62 = vadd.f32 %v385_v2, %v146_v54  ;;  %v218_v63 = vadd.f32 %v385_v2, %v147_v55  ;;  %v277_v0 = vmax.f32 %v213_v56, 0.0 }
  0x34   :  { %v278_v3 = vmax.f32 %v214_v57, 0.0  ;;  %v279_v4 = vmax.f32 %v215_v58, 0.0  ;;  %v219_v5 = vadd.f32 %v385_v2, %v148_v59  ;;  %340 = vst [vmem:[%s899_s3 + $0x1c0] sm:$0xff] %v276_v60 }
  0x35   :  { %v280_v6 = vmax.f32 %v216_v61, 0.0  ;;  %v281_v7 = vmax.f32 %v217_v62, 0.0  ;;  %v282_v8 = vmax.f32 %v218_v63, 0.0  ;;  %341 = vst [vmem:[%s899_s3 + $0x1c8] sm:$0xff] %v277_v0 }
  0x36   :  { %342 = vst [vmem:[%s899_s3 + $0x1d0] sm:$0xff] %v278_v3  ;;  %343 = vst [vmem:[%s899_s3 + $0x1d8] sm:$0xff] %v279_v4  ;;  %v283_v1 = vmax.f32 %v219_v5, 0.0 }
  0x37   :  { %344 = vst [vmem:[%s899_s3 + $0x1e0] sm:$0xff] %v280_v6  ;;  %345 = vst [vmem:[%s899_s3 + $0x1e8] sm:$0xff] %v281_v7 }
  0x38   :  { %346 = vst [vmem:[%s899_s3 + $0x1f0] sm:$0xff] %v282_v8  ;;  %347 = vst [vmem:[%s899_s3 + $0x1f8] sm:$0xff] %v283_v1 }

// kernel: decoder_forward.6
= control target key start
LH: loop header
LB: loop body
LE: loop exit
PB: predicated region body
PF: predicated region fallthrough
CT: control target
= control target key end

     0   :  { %s1982_s1 = inlined_call_operand.vmem [shape: bf16[128,128], index: 1, kind: input, shape index: {}]   ;;  %s1983_s0 = inlined_call_operand.vmem [shape: f32[512,128], index: 0, kind: input, shape index: {}]   ;;  %s1984_s2 = inlined_call_operand.vmem [shape: f32[1,128], index: 2, kind: input, shape index: {}]   ;;  %s1985_s3 = inlined_call_operand.vmem [shape: f32[1,128], index: 3, kind: input, shape index: {}]   ;;  %s1986_s4 = inlined_call_operand.vmem [shape: f32[512,128], index: 4, kind: output, shape index: {0}]   ;;  %s1987_s5 = inlined_call_operand.vmem [shape: f32[1,2,128], index: 5, kind: output, shape index: {1}]  }
   0x1   :  { %v1097_v0 = vld [vmem:[%s1982_s1] sm:$0xff]   ;;  %v1098_v1 = vld [vmem:[%s1982_s1 + $0x8] sm:$0xff]   ;;  %v1099_v2 = vld [vmem:[%s1982_s1 + $0x10] sm:$0xff]  }
   0x2   :  { %1001 = vmatprep.subr.bf16.mxu0 %v1097_v0  ;;  %1081 = vmatprep.subr.bf16.mxu1 %v1097_v0  ;;  %v1100_v3 = vld [vmem:[%s1982_s1 + $0x18] sm:$0xff]   ;;  %v20_v4 = vld [vmem:[%s1983_s0] sm:$0xff]  ;;  %v21_v5 = vld [vmem:[%s1983_s0 + $0x8] sm:$0xff] }
   0x3   :  { %1002 = vmatpush3.bf16.msra.mxu0 %v1097_v0  ;;  %1089 = vmatpush3.bf16.msra.mxu1 %v1097_v0  ;;  %v1156_v6 = vld [vmem:[%s1984_s2] ss:$0 sm:$0xff]  ;;  %v22_v10 = vld [vmem:[%s1983_s0 + $0x10] sm:$0xff]  ;;  %v23_v14 = vld [vmem:[%s1983_s0 + $0x18] sm:$0xff] }
   0x4   :  { %1003 = vmatprep.subr.bf16.mxu0 %v1098_v1  ;;  %1082 = vmatprep.subr.bf16.mxu1 %v1098_v1  ;;  %v91_v7 = vmul.f32 %v1156_v6, %v20_v4  ;;  %v92_v8 = vmul.f32 %v1156_v6, %v21_v5  ;;  %v1163_v9 = vld [vmem:[%s1985_s3] ss:$0 sm:$0xff]  ;;  %v25_v16 = vld [vmem:[%s1983_s0 + $0x28] sm:$0xff]  ;;  %v26_v17 = vld [vmem:[%s1983_s0 + $0x30] sm:$0xff]  ;;  %v93_v21 = vmul.f32 %v1156_v6, %v22_v10 }
   0x5   :  { %v1171_v11 = vld [vmem:[%s1982_s1 + $0x20] sm:$0xff]   ;;  %v27_v18 = vld [vmem:[%s1983_s0 + $0x38] sm:$0xff]  ;;  %v29_v23 = vld [vmem:[%s1983_s0 + $0x48] sm:$0xff]  ;;  %v94_v24 = vmul.f32 %v1156_v6, %v23_v14  ;;  %v96_v29 = vmul.f32 %v1156_v6, %v25_v16  ;;  %v97_v30 = vmul.f32 %v1156_v6, %v26_v17 }
   0x6   :  { %v162_v12 = vadd.f32 %v1163_v9, %v91_v7  ;;  %v163_v13 = vadd.f32 %v1163_v9, %v92_v8  ;;  %v24_v15 = vld [vmem:[%s1983_s0 + $0x20] sm:$0xff]  ;;  %v30_v26 = vld [vmem:[%s1983_s0 + $0x50] sm:$0xff]  ;;  %v31_v27 = vld [vmem:[%s1983_s0 + $0x58] sm:$0xff]  ;;  %v98_v31 = vmul.f32 %v1156_v6, %v27_v18  ;;  %v100_v36 = vmul.f32 %v1156_v6, %v29_v23 }
   0x7   :  { %1004 = vmatpush3.bf16.msra.mxu0 %v1098_v1  ;;  %1090 = vmatpush3.bf16.msra.mxu1 %v1098_v1  ;;  %v28_v22 = vld [vmem:[%s1983_s0 + $0x40] sm:$0xff]  ;;  %v95_v25 = vmul.f32 %v1156_v6, %v24_v15  ;;  %v33_v33 = vld [vmem:[%s1983_s0 + $0x68] sm:$0xff]  ;;  %v164_v37 = vadd.f32 %v1163_v9, %v93_v21  ;;  %v101_v38 = vmul.f32 %v1156_v6, %v30_v26  ;;  %v34_v44 = vld [vmem:[%s1983_s0 + $0x70] sm:$0xff] }
   0x8   :  { %1005 = vmatprep.subr.bf16.mxu0 %v1099_v2  ;;  %1083 = vmatprep.subr.bf16.mxu1 %v1099_v2  ;;  %v226_v19 = vmax.f32 %v162_v12, 0.0  ;;  %v227_v20 = vmax.f32 %v163_v13, 0.0  ;;  %v32_v32 = vld [vmem:[%s1983_s0 + $0x60] sm:$0xff]  ;;  %v1102_v34 = vld [vmem:[%s1982_s1 + $0x28] sm:$0xff]   ;;  %v99_v35 = vmul.f32 %v1156_v6, %v28_v22  ;;  %v102_v39 = vmul.f32 %v1156_v6, %v31_v27  ;;  %v35_v48 = vld [vmem:[%s1983_s0 + $0x78] sm:$0xff] }
   0x9   :  { %v165_v40 = vadd.f32 %v1163_v9, %v94_v24  ;;  %v166_v41 = vadd.f32 %v1163_v9, %v95_v25  ;;  %v103_v42 = vmul.f32 %v1156_v6, %v32_v32  ;;  %v104_v43 = vmul.f32 %v1156_v6, %v33_v33  ;;  %v36_v49 = vld [vmem:[%s1983_s0 + $0x80] sm:$0xff]  ;;  %v1244_v50 = vld [vmem:[%s1982_s1 + $0x30] sm:$0xff]   ;;  %v37_v55 = vld [vmem:[%s1983_s0 + $0x88] sm:$0xff] }
   0xa   :  { %v290_v28 = vpack.c.bf16 %v227_v20, %v226_v19  ;;  %v167_v45 = vadd.f32 %v1163_v9, %v96_v29  ;;  %v168_v46 = vadd.f32 %v1163_v9, %v97_v30  ;;  %v169_v47 = vadd.f32 %v1163_v9, %v98_v31  ;;  %v38_v0 = vld [vmem:[%s1983_s0 + $0x90] sm:$0xff]  ;;  %v39_v5 = vld [vmem:[%s1983_s0 + $0x98] sm:$0xff]  ;;  %v40_v13 = vld [vmem:[%s1983_s0 + $0xa0] sm:$0xff] }
   0xb   :  { %1006 = vmatpush3.bf16.msra.mxu0 %v1099_v2  ;;  %1091 = vmatpush3.bf16.msra.mxu1 %v1099_v2  ;;  %v170_v51 = vadd.f32 %v1163_v9, %v99_v35  ;;  %v171_v52 = vadd.f32 %v1163_v9, %v100_v36  ;;  %v172_v53 = vadd.f32 %v1163_v9, %v101_v38  ;;  %v228_v56 = vmax.f32 %v164_v37, 0.0  ;;  %v1104_v7 = vld [vmem:[%s1982_s1 + $0x38] sm:$0xff]   ;;  %v41_v18 = vld [vmem:[%s1983_s0 + $0xa8] sm:$0xff]  ;;  %v42_v25 = vld [vmem:[%s1983_s0 + $0xb0] sm:$0xff] }
   0xc   :  { %1007 = vmatprep.subr.bf16.mxu0 %v1100_v3  ;;  %1084 = vmatprep.subr.bf16.mxu1 %v1100_v3  ;;  %v173_v54 = vadd.f32 %v1163_v9, %v102_v39  ;;  %v174_v57 = vadd.f32 %v1163_v9, %v103_v42  ;;  %v175_v58 = vadd.f32 %v1163_v9, %v104_v43  ;;  %v229_v60 = vmax.f32 %v165_v40, 0.0  ;;  %v46_v30 = vld [vmem:[%s1983_s0 + $0xd0] sm:$0xff]  ;;  %v47_v31 = vld [vmem:[%s1983_s0 + $0xd8] sm:$0xff]  ;;  %v48_v37 = vld [vmem:[%s1983_s0 + $0xe0] sm:$0xff] }
   0xd   :  { %1017 = vmatprep.mubr.bf16.mxu0 %v290_v28  ;;  %v105_v59 = vmul.f32 %v1156_v6, %v34_v44  ;;  %v230_v61 = vmax.f32 %v166_v41, 0.0  ;;  %v106_v62 = vmul.f32 %v1156_v6, %v35_v48  ;;  %v107_v63 = vmul.f32 %v1156_v6, %v36_v49  ;;  %v43_v36 = vld [vmem:[%s1983_s0 + $0xb8] sm:$0xff]  ;;  %v49_v38 = vld [vmem:[%s1983_s0 + $0xe8] sm:$0xff]  ;;  %v50_v43 = vld [vmem:[%s1983_s0 + $0xf0] sm:$0xff] }
   0xe   :  { %v231_v1 = vmax.f32 %v167_v45, 0.0  ;;  %v232_v2 = vmax.f32 %v168_v46, 0.0  ;;  %v108_v4 = vmul.f32 %v1156_v6, %v37_v55  ;;  %v234_v8 = vmax.f32 %v170_v51, 0.0  ;;  %v51_v48 = vld [vmem:[%s1983_s0 + $0xf8] sm:$0xff] }
   0xf   :  { %1008 = vmatpush3.bf16.msra.mxu0 %v1100_v3  ;;  %1092 = vmatpush3.bf16.msra.mxu1 %v1100_v3  ;;  %v233_v3 = vmax.f32 %v169_v47, 0.0  ;;  %v235_v10 = vmax.f32 %v171_v52, 0.0  ;;  %v237_v12 = vmax.f32 %v173_v54, 0.0  ;;  %v238_v14 = vmax.f32 %v174_v57, 0.0 }
  0x10   :  { %1009 = vmatprep.subr.bf16.mxu0 %v1171_v11  ;;  %1085 = vmatprep.subr.bf16.mxu1 %v1171_v11  ;;  %v239_v15 = vmax.f32 %v175_v58, 0.0  ;;  %v1274_v16 = vadd.f32 %v1163_v9, %v105_v59  ;;  %v109_v17 = vmul.f32 %v1156_v6, %v38_v0  ;;  %v1281_v19 = vadd.f32 %v1163_v9, %v106_v62  ;;  %v53_v62 = vld [vmem:[%s1983_s0 + $0x108] sm:$0xff] }
  0x11   :  { %v1284_v20 = vadd.f32 %v1163_v9, %v107_v63  ;;  %v110_v21 = vmul.f32 %v1156_v6, %v39_v5  ;;  %v291_v22 = vpack.c.bf16 %v229_v60, %v228_v56  ;;  %v1289_v23 = vadd.f32 %v1163_v9, %v108_v4  ;;  %v55_v4 = vld [vmem:[%s1983_s0 + $0x118] sm:$0xff] }
  0x12   :  { %v111_v24 = vmul.f32 %v1156_v6, %v40_v13  ;;  %v292_v26 = vpack.c.bf16 %v231_v1, %v230_v61  ;;  %v1296_v27 = vpack.c.bf16 %v233_v3, %v232_v2  ;;  %v1298_v28 = vpack.c.bf16 %v235_v10, %v234_v8  ;;  %v54_v3 = vld [vmem:[%s1983_s0 + $0x110] sm:$0xff] }
  0x13   :  { %1010 = vmatpush3.bf16.msra.mxu0 %v1171_v11  ;;  %1093 = vmatpush3.bf16.msra.mxu1 %v1171_v11  ;;  %v236_v11 = vmax.f32 %v172_v53, 0.0  ;;  %v112_v29 = vmul.f32 %v1156_v6, %v41_v18  ;;  %v1309_v33 = vpack.c.bf16 %v239_v15, %v238_v14  ;;  %v1313_v35 = vadd.f32 %v1163_v9, %v109_v17  ;;  %v52_v53 = vld [vmem:[%s1983_s0 + $0x100] sm:$0xff]  ;;  %v58_v18 = vld [vmem:[%s1983_s0 + $0x130] sm:$0xff] }
  0x14   :  { %1011 = vmatprep.subr.bf16.mxu0 %v1102_v34  ;;  %1086 = vmatprep.subr.bf16.mxu1 %v1102_v34  ;;  %v241_v39 = vmax.f32 %v1281_v19, 0.0  ;;  %v242_v40 = vmax.f32 %v1284_v20, 0.0  ;;  %v1327_v41 = vadd.f32 %v1163_v9, %v110_v21  ;;  %v113_v42 = vmul.f32 %v1156_v6, %v42_v25 }
  0x15   :  { %v1307_v32 = vpack.c.bf16 %v237_v12, %v236_v11  ;;  %v243_v44 = vmax.f32 %v1289_v23, 0.0  ;;  %v1336_v45 = vadd.f32 %v1163_v9, %v111_v24  ;;  %v117_v46 = vmul.f32 %v1156_v6, %v46_v30  ;;  %v56_v11 = vld [vmem:[%s1983_s0 + $0x120] sm:$0xff]  ;;  %v57_v12 = vld [vmem:[%s1983_s0 + $0x128] sm:$0xff] }
  0x16   :  { %v118_v47 = vmul.f32 %v1156_v6, %v47_v31  ;;  %v1344_v49 = vadd.f32 %v1163_v9, %v112_v29  ;;  %v119_v51 = vmul.f32 %v1156_v6, %v48_v37  ;;  %v120_v52 = vmul.f32 %v1156_v6, %v49_v38  ;;  %v60_v37 = vld [vmem:[%s1983_s0 + $0x140] sm:$0xff] }
  0x17   :  { %1012 = vmatpush3.bf16.msra.mxu0 %v1102_v34  ;;  %1094 = vmatpush3.bf16.msra.mxu1 %v1102_v34  ;;  %v240_v34 = vmax.f32 %v1274_v16, 0.0  ;;  %v244_v54 = vmax.f32 %v1313_v35, 0.0  ;;  %v188_v55 = vadd.f32 %v1163_v9, %v117_v46  ;;  %v121_v57 = vmul.f32 %v1156_v6, %v50_v43  ;;  %v75_v16 = vld [vmem:[%s1983_s0 + $0x1b8] sm:$0xff]  ;;  %v70_v35 = vld [vmem:[%s1983_s0 + $0x190] sm:$0xff] }
  0x18   :  { %1013 = vmatprep.subr.bf16.mxu0 %v1244_v50  ;;  %1087 = vmatprep.subr.bf16.mxu1 %v1244_v50  ;;  %v189_v56 = vadd.f32 %v1163_v9, %v118_v47  ;;  %v245_v58 = vmax.f32 %v1327_v41, 0.0  ;;  %v190_v59 = vadd.f32 %v1163_v9, %v119_v51  ;;  %v191_v60 = vadd.f32 %v1163_v9, %v120_v52  ;;  %v44_v47 = vld [vmem:[%s1983_s0 + $0xc0] sm:$0xff] }
  0x19   :  { %v122_v61 = vmul.f32 %v1156_v6, %v51_v48  ;;  %v252_v63 = vmax.f32 %v188_v55, 0.0  ;;  %v192_v1 = vadd.f32 %v1163_v9, %v121_v57  ;;  %v123_v2 = vmul.f32 %v1156_v6, %v52_v53  ;;  %v61_v55 = vld [vmem:[%s1983_s0 + $0x148] sm:$0xff] }
  0x1a   :  { %v253_v0 = vmax.f32 %v189_v56, 0.0  ;;  %v1374_v5 = vadd.f32 %v1163_v9, %v113_v42  ;;  %v255_v8 = vmax.f32 %v191_v60, 0.0  ;;  %v124_v15 = vmul.f32 %v1156_v6, %v53_v62  ;;  %v63_v62 = vld [vmem:[%s1983_s0 + $0x158] sm:$0xff] }
  0x1b   :  { %1014 = vmatpush3.bf16.msra.mxu0 %v1244_v50  ;;  %1095 = vmatpush3.bf16.msra.mxu1 %v1244_v50  ;;  %v1347_v50 = vmul.f32 %v1156_v6, %v43_v36  ;;  %v193_v10 = vadd.f32 %v1163_v9, %v122_v61  ;;  %v256_v14 = vmax.f32 %v192_v1, 0.0  ;;  %v194_v17 = vadd.f32 %v1163_v9, %v123_v2  ;;  %v62_v61 = vld [vmem:[%s1983_s0 + $0x150] sm:$0xff]  ;;  %v64_v2 = vld [vmem:[%s1983_s0 + $0x160] sm:$0xff] }
  0x1c   :  { %1015 = vmatprep.subr.bf16.mxu0 %v1104_v7  ;;  %1088 = vmatprep.subr.bf16.mxu1 %v1104_v7  ;;  %v1383_v13 = vpack.c.bf16 %v253_v0, %v252_v63  ;;  %v125_v24 = vmul.f32 %v1156_v6, %v54_v3  ;;  %v126_v25 = vmul.f32 %v1156_v6, %v55_v4  ;;  %v65_v3 = vld [vmem:[%s1983_s0 + $0x168] sm:$0xff]  ;;  %v248_v19 = vmax.f32 %v1374_v5, 0.0 }
  0x1d   :  { %v195_v29 = vadd.f32 %v1163_v9, %v124_v15  ;;  %v258_v30 = vmax.f32 %v194_v17, 0.0  ;;  %v127_v31 = vmul.f32 %v1156_v6, %v56_v11  ;;  %v128_v36 = vmul.f32 %v1156_v6, %v57_v12  ;;  %v67_v17 = vld [vmem:[%s1983_s0 + $0x178] sm:$0xff] }
  0x1e   :  { %v196_v42 = vadd.f32 %v1163_v9, %v125_v24  ;;  %v197_v43 = vadd.f32 %v1163_v9, %v126_v25  ;;  %v129_v46 = vmul.f32 %v1156_v6, %v58_v18  ;;  %v131_v60 = vmul.f32 %v1156_v6, %v60_v37 }
  0x1f   :  { %1016 = vmatpush3.bf16.msra.mxu0 %v1104_v7  ;;  %1096 = vmatpush3.bf16.msra.mxu1 %v1104_v7  ;;  %v254_v7 = vmax.f32 %v190_v59, 0.0  ;;  %v259_v48 = vmax.f32 %v195_v29, 0.0  ;;  %v198_v51 = vadd.f32 %v1163_v9, %v127_v31  ;;  %v199_v52 = vadd.f32 %v1163_v9, %v128_v36  ;;  %v45_v29 = vld [vmem:[%s1983_s0 + $0xc8] sm:$0xff] }
  0x20   :  { %v260_v56 = vmax.f32 %v196_v42, 0.0  ;;  %v261_v57 = vmax.f32 %v197_v43, 0.0  ;;  %v200_v59 = vadd.f32 %v1163_v9, %v129_v46  ;;  %v115_v4 = vmul.f32 %v1156_v6, %v44_v47 }
  0x21   :  { %v1390_v21 = vpack.c.bf16 %v255_v8, %v254_v7  ;;  %v306_v63 = vpack.c.bf16 %v259_v48, %v258_v30  ;;  %v262_v0 = vmax.f32 %v198_v51, 0.0  ;;  %v263_v1 = vmax.f32 %v199_v52, 0.0 }
  0x22   :  { %1018 = vmatmul.mubr.bf16.vlgmr.msra.gmra.mrb[0].mxu0 %v291_v22  ;;  %v257_v22 = vmax.f32 %v193_v10, 0.0  ;;  %v307_v7 = vpack.c.bf16 %v261_v57, %v260_v56  ;;  %v132_v8 = vmul.f32 %v1156_v6, %v61_v55  ;;  %v66_v10 = vld [vmem:[%s1983_s0 + $0x170] sm:$0xff]  ;;  %v264_v12 = vmax.f32 %v200_v59, 0.0 }
  0x23   :  { %1021 = vmatprep.mubr.bf16.mxu0 %v292_v26  ;;  %v59_v26 = vld [vmem:[%s1983_s0 + $0x138] sm:$0xff]  ;;  %1049 = vmatprep.mubr.bf16.mxu1 %v306_v63  ;;  %v308_v11 = vpack.c.bf16 %v263_v1, %v262_v0  ;;  %v134_v15 = vmul.f32 %v1156_v6, %v63_v62  ;;  %v135_v24 = vmul.f32 %v1156_v6, %v64_v2  ;;  %v246_v48 = vmax.f32 %v1336_v45, 0.0 }
  0x24   :  { %v1403_v38 = vpack.c.bf16 %v257_v22, %v256_v14  ;;  %v130_v53 = vmul.f32 %v1156_v6, %v59_v26  ;;  %v133_v14 = vmul.f32 %v1156_v6, %v62_v61  ;;  %1050 = vmatmul.mubr.bf16.vlgmr.msra.gmra.mrb[0].mxu1 %v307_v7  ;;  %v203_v22 = vadd.f32 %v1163_v9, %v132_v8  ;;  %v68_v26 = vld [vmem:[%s1983_s0 + $0x180] sm:$0xff]  ;;  %v77_v7 = vld [vmem:[%s1983_s0 + $0x1c8] sm:$0xff] }
  0x25   :  { %v136_v25 = vmul.f32 %v1156_v6, %v65_v3  ;;  %1053 = vmatprep.mubr.bf16.mxu1 %v308_v11  ;;  %v205_v36 = vadd.f32 %v1163_v9, %v134_v15  ;;  %v137_v37 = vmul.f32 %v1156_v6, %v66_v10  ;;  %v206_v43 = vadd.f32 %v1163_v9, %v135_v24  ;;  %v72_v3 = vld [vmem:[%s1983_s0 + $0x1a0] sm:$0xff]  ;;  %v73_v10 = vld [vmem:[%s1983_s0 + $0x1a8] sm:$0xff]  ;;  %v79_v15 = vld [vmem:[%s1983_s0 + $0x1d8] sm:$0xff] }
  0x26   :  { %v204_v31 = vadd.f32 %v1163_v9, %v133_v14  ;;  %v267_v42 = vmax.f32 %v203_v22, 0.0  ;;  %v138_v47 = vmul.f32 %v1156_v6, %v67_v17  ;;  %v247_v51 = vmax.f32 %v1344_v49, 0.0  ;;  %v78_v14 = vld [vmem:[%s1983_s0 + $0x1d0] sm:$0xff] }
  0x27   :  { %v207_v46 = vadd.f32 %v1163_v9, %v136_v25  ;;  %v1464_v52 = vadd.f32 %v1163_v9, %v1347_v50  ;;  %v116_v55 = vmul.f32 %v1156_v6, %v45_v29  ;;  %v269_v59 = vmax.f32 %v205_v36, 0.0  ;;  %v80_v25 = vld [vmem:[%s1983_s0 + $0x1e0] sm:$0xff] }
  0x28   :  { %v268_v57 = vmax.f32 %v204_v31, 0.0  ;;  %v270_v49 = vmax.f32 %v206_v43, 0.0  ;;  %v1474_v50 = vadd.f32 %v1163_v9, %v137_v37  ;;  %v297_v62 = vpack.c.bf16 %v241_v39, %v240_v34  ;;  %v76_v39 = vld [vmem:[%s1983_s0 + $0x1c0] sm:$0xff]  ;;  %v82_v37 = vld [vmem:[%s1983_s0 + $0x1f0] sm:$0xff] }
  0x29   :  { %v271_v61 = vmax.f32 %v207_v46, 0.0  ;;  %v1491_v63 = vpack.c.bf16 %v245_v58, %v244_v54  ;;  %v1494_v0 = vadd.f32 %v1163_v9, %v138_v47  ;;  %v1501_v20 = vadd.f32 %v1163_v9, %v115_v4  ;;  %v71_v54 = vld [vmem:[%s1983_s0 + $0x198] sm:$0xff] }
  0x2a   :  { %1022 = vmatmul.mubr.bf16.gmra.mrb[4].mxu0 %v1296_v27  ;;  %v201_v27 = vadd.f32 %v1163_v9, %v130_v53  ;;  %v139_v53 = vmul.f32 %v1156_v6, %v68_v26  ;;  %v249_v41 = vmax.f32 %v1464_v52, 0.0  ;;  %v311_v1 = vpack.c.bf16 %v269_v59, %v268_v57  ;;  %v81_v26 = vld [vmem:[%s1983_s0 + $0x1e8] sm:$0xff] }
  0x2b   :  { %1025 = vmatprep.mubr.bf16.mxu0 %v1298_v28  ;;  %v202_v28 = vadd.f32 %v1163_v9, %v131_v60  ;;  %v69_v60 = vld [vmem:[%s1983_s0 + $0x188] sm:$0xff]  ;;  %v272_v2 = vmax.f32 %v1474_v50, 0.0  ;;  %v146_v4 = vmul.f32 %v1156_v6, %v75_v16  ;;  %v273_v8 = vmax.f32 %v1494_v0, 0.0 }
  0x2c   :  { %v265_v18 = vmax.f32 %v201_v27, 0.0  ;;  %v140_v23 = vmul.f32 %v1156_v6, %v69_v60  ;;  %v1505_v34 = vadd.f32 %v1163_v9, %v139_v53  ;;  %v312_v27 = vpack.c.bf16 %v271_v61, %v270_v49 }
  0x2d   :  { %v266_v30 = vmax.f32 %v202_v28, 0.0  ;;  %v141_v28 = vmul.f32 %v1156_v6, %v70_v35  ;;  %v142_v22 = vmul.f32 %v1156_v6, %v71_v54  ;;  %v217_v24 = vadd.f32 %v1163_v9, %v146_v4 }
  0x2e   :  { %v309_v56 = vpack.c.bf16 %v265_v18, %v264_v12  ;;  %v147_v12 = vmul.f32 %v1156_v6, %v76_v39  ;;  %v211_v17 = vadd.f32 %v1163_v9, %v140_v23  ;;  %v274_v18 = vmax.f32 %v1505_v34, 0.0 }
  0x2f   :  { %v310_v45 = vpack.c.bf16 %v267_v42, %v266_v30  ;;  %v143_v29 = vmul.f32 %v1156_v6, %v72_v3  ;;  %v148_v31 = vmul.f32 %v1156_v6, %v77_v7  ;;  %v144_v42 = vmul.f32 %v1156_v6, %v73_v10 }
  0x30   :  { %1054 = vmatmul.mubr.bf16.gmra.mrb[4].mxu1 %v309_v56  ;;  %v218_v36 = vadd.f32 %v1163_v9, %v147_v12  ;;  %v281_v43 = vmax.f32 %v217_v24, 0.0  ;;  %v149_v46 = vmul.f32 %v1156_v6, %v78_v14  ;;  %v150_v47 = vmul.f32 %v1156_v6, %v79_v15 }
  0x31   :  { %1057 = vmatprep.mubr.bf16.mxu1 %v310_v45  ;;  %v152_v56 = vmul.f32 %v1156_v6, %v81_v26  ;;  %v153_v45 = vmul.f32 %v1156_v6, %v82_v37  ;;  %v250_v54 = vmax.f32 %v1501_v20, 0.0  ;;  %v214_v12 = vadd.f32 %v1163_v9, %v143_v29 }
  0x32   :  { %1026 = vmatmul.mubr.bf16.gmra.mrb[8].mxu0 %v1307_v32  ;;  %v74_v32 = vld [vmem:[%s1983_s0 + $0x1b0] sm:$0xff]  ;;  %v282_v53 = vmax.f32 %v218_v36, 0.0  ;;  %v220_v59 = vadd.f32 %v1163_v9, %v149_v46  ;;  %v221_v60 = vadd.f32 %v1163_v9, %v150_v47  ;;  %v215_v20 = vadd.f32 %v1163_v9, %v144_v42 }
  0x33   :  { %1029 = vmatprep.mubr.bf16.mxu0 %v1309_v33  ;;  %v298_v33 = vpack.c.bf16 %v243_v44, %v242_v40  ;;  %v1513_v40 = vpack.c.bf16 %v247_v51, %v246_v48  ;;  %v1517_v44 = vadd.f32 %v1163_v9, %v116_v55  ;;  %v145_v58 = vmul.f32 %v1156_v6, %v74_v32  ;;  %v83_v48 = vld [vmem:[%s1983_s0 + $0x1f8] sm:$0xff] }
  0x34   :  { %v219_v51 = vadd.f32 %v1163_v9, %v148_v31  ;;  %v151_v55 = vmul.f32 %v1156_v6, %v80_v25  ;;  %v223_v50 = vadd.f32 %v1163_v9, %v152_v56  ;;  %v154_v32 = vmul.f32 %v1156_v6, %v83_v48 }
  0x35   :  { %v216_v11 = vadd.f32 %v1163_v9, %v145_v58  ;;  %v285_v0 = vmax.f32 %v221_v60, 0.0  ;;  %v224_v16 = vadd.f32 %v1163_v9, %v153_v45  ;;  %v313_v58 = vpack.c.bf16 %v273_v8, %v272_v2 }
  0x36   :  { %v283_v49 = vmax.f32 %v219_v51, 0.0  ;;  %v222_v61 = vadd.f32 %v1163_v9, %v151_v55  ;;  %v287_v35 = vmax.f32 %v223_v50, 0.0  ;;  %v225_v39 = vadd.f32 %v1163_v9, %v154_v32 }
  0x37   :  { %v280_v30 = vmax.f32 %v216_v11, 0.0  ;;  %v288_v3 = vmax.f32 %v224_v16, 0.0  ;;  %v212_v6 = vadd.f32 %v1163_v9, %v141_v28  ;;  %v251_v10 = vmax.f32 %v1517_v44, 0.0 }
  0x38   :  { %1058 = vmatmul.mubr.bf16.gmra.mrb[8].mxu1 %v311_v1  ;;  %v318_v23 = vpack.c.bf16 %v283_v49, %v282_v53  ;;  %v286_v34 = vmax.f32 %v222_v61, 0.0  ;;  %v289_v7 = vmax.f32 %v225_v39, 0.0  ;;  %v278_v15 = vmax.f32 %v214_v12, 0.0 }
  0x39   :  { %v317_v57 = vpack.c.bf16 %v281_v43, %v280_v30  ;;  %1061 = vmatprep.mubr.bf16.mxu1 %v312_v27  ;;  %v213_v27 = vadd.f32 %v1163_v9, %v142_v22  ;;  %v276_v8 = vmax.f32 %v212_v6, 0.0  ;;  %v302_v14 = vpack.c.bf16 %v251_v10, %v250_v54 }
  0x3a   :  { %1030 = vmatmul.mubr.bf16.gmra.mrb[12].mxu0 %v297_v62  ;;  %v275_v62 = vmax.f32 %v211_v17, 0.0  ;;  %v320_v4 = vpack.c.bf16 %v287_v35, %v286_v34  ;;  %v321_v2 = vpack.c.bf16 %v289_v7, %v288_v3 }
  0x3b   :  { %1033 = vmatprep.mubr.bf16.mxu0 %v298_v33  ;;  %v284_v33 = vmax.f32 %v220_v59, 0.0  ;;  %v277_v28 = vmax.f32 %v213_v27, 0.0 }
  0x3c   :  { %v314_v11 = vpack.c.bf16 %v275_v62, %v274_v18 }
  0x3d   :  { %v319_v1 = vpack.c.bf16 %v285_v0, %v284_v33  ;;  %v315_v44 = vpack.c.bf16 %v277_v28, %v276_v8 }
  0x40   :  { %1062 = vmatmul.mubr.bf16.gmra.mrb[12].mxu1 %v313_v58 }
  0x41   :  { %1065 = vmatprep.mubr.bf16.mxu1 %v314_v11 }
  0x42   :  { %1034 = vmatmul.mubr.bf16.gmra.mrb[16].mxu0 %v1491_v63  ;;  %v301_v63 = vpack.c.bf16 %v249_v41, %v248_v19 }
  0x43   :  { %1037 = vmatprep.mubr.bf16.mxu0 %v1513_v40  ;;  %v279_v40 = vmax.f32 %v215_v20, 0.0 }
  0x45   :  { %v316_v17 = vpack.c.bf16 %v279_v40, %v278_v15 }
  0x48   :  { %1066 = vmatmul.mubr.bf16.gmra.mrb[16].mxu1 %v315_v44 }
  0x49   :  { %1069 = vmatprep.mubr.bf16.mxu1 %v316_v17 }
  0x4a   :  { %1038 = vmatmul.mubr.bf16.gmra.mrb[20].mxu0 %v301_v63 }
  0x4b   :  { %1041 = vmatprep.mubr.bf16.mxu0 %v302_v14 }
  0x50   :  { %1070 = vmatmul.mubr.bf16.gmra.mrb[20].mxu1 %v317_v57 }
  0x51   :  { %1073 = vmatprep.mubr.bf16.mxu1 %v318_v23 }
  0x52   :  { %1042 = vmatmul.mubr.bf16.gmra.mrb[24].mxu0 %v1383_v13 }
  0x53   :  { %1045 = vmatprep.mubr.bf16.mxu0 %v1390_v21 }
  0x58   :  { %1074 = vmatmul.mubr.bf16.gmra.mrb[24].mxu1 %v319_v1 }
  0x59   :  { %1077 = vmatprep.mubr.bf16.mxu1 %v320_v4 }
  0x5a   :  { %1046 = vmatmul.mubr.bf16.gmra.mrb[28].mxu0 %v1403_v38 }
  0x60   :  { %1078 = vmatmul.mubr.bf16.gmra.mrb[28].mxu1 %v321_v2 }
  0xf5   :  { %v1019_v9 = vpop.f32.mrb[0].mxu0 }
  0xf6   :  { %677 = vst [vmem:[%s1986_s4 + $0x10] sm:$0xff] %v1019_v9  ;;  %v420_v5 = vpop.f32.mrb[1].mxu0  ;;  %v811_v41 = vmul.f32 %v1019_v9, %v1019_v9 }
  0xf7   :  { %675 = vst [vmem:[%s1986_s4] sm:$0xff] %v420_v5  ;;  %v1020_v13 = vpop.f32.mrb[2].mxu0  ;;  %v809_v38 = vmul.f32 %v420_v5, %v420_v5  ;;  %v1616_v51 = vpop.f32.mrb[0].mxu1 }
  0xf8   :  { %678 = vst [vmem:[%s1986_s4 + $0x18] sm:$0xff] %v1020_v13  ;;  %v423_v21 = vpop.f32.mrb[3].mxu0  ;;  %v812_v24 = vmul.f32 %v1020_v13, %v1020_v13  ;;  %709 = vst [vmem:[%s1986_s4 + $0x110] sm:$0xff] %v1616_v51  ;;  %v1622_v53 = vpop.f32.mrb[1].mxu1 }
  0xf9   :  { %676 = vst [vmem:[%s1986_s4 + $0x8] sm:$0xff] %v423_v21  ;;  %v739_v52 = vadd.f32 %v423_v21, %v420_v5  ;;  %v810_v19 = vmul.f32 %v423_v21, %v423_v21  ;;  %707 = vst [vmem:[%s1986_s4 + $0x100] sm:$0xff] %v1622_v53  ;;  %v1628_v59 = vpop.f32.mrb[2].mxu1 }
  0xfa   :  { %710 = vst [vmem:[%s1986_s4 + $0x118] sm:$0xff] %v1628_v59  ;;  %v1634_v60 = vpop.f32.mrb[3].mxu1 }
  0xfb   :  { %v740_v18 = vadd.f32 %v1019_v9, %v739_v52  ;;  %v873_v22 = vadd.f32 %v810_v19, %v809_v38  ;;  %708 = vst [vmem:[%s1986_s4 + $0x108] sm:$0xff] %v1634_v60 }
  0xfd   :  { %v874_v25 = vadd.f32 %v873_v22, %v811_v41  ;;  %v1023_v26 = vpop.f32.mrb[4].mxu0  ;;  %v741_v29 = vadd.f32 %v1020_v13, %v740_v18 }
  0xfe   :  { %681 = vst [vmem:[%s1986_s4 + $0x30] sm:$0xff] %v1023_v26  ;;  %v436_v30 = vpop.f32.mrb[5].mxu0  ;;  %v815_v55 = vmul.f32 %v1023_v26, %v1023_v26 }
  0xff   :  { %679 = vst [vmem:[%s1986_s4 + $0x20] sm:$0xff] %v436_v30  ;;  %v742_v31 = vadd.f32 %v741_v29, %v436_v30  ;;  %v813_v36 = vmul.f32 %v436_v30, %v436_v30  ;;  %v875_v37 = vadd.f32 %v874_v25, %v812_v24  ;;  %v1024_v42 = vpop.f32.mrb[6].mxu0 }
 0x100   :  { %682 = vst [vmem:[%s1986_s4 + $0x38] sm:$0xff] %v1024_v42  ;;  %v439_v43 = vpop.f32.mrb[7].mxu0  ;;  %v816_v45 = vmul.f32 %v1024_v42, %v1024_v42 }
 0x101   :  { %v876_v46 = vadd.f32 %v875_v37, %v813_v36  ;;  %680 = vst [vmem:[%s1986_s4 + $0x28] sm:$0xff] %v439_v43  ;;  %v743_v47 = vadd.f32 %v742_v31, %v439_v43  ;;  %v814_v48 = vmul.f32 %v439_v43, %v439_v43 }
 0x103   :  { %v744_v56 = vadd.f32 %v1023_v26, %v743_v47  ;;  %v877_v57 = vadd.f32 %v876_v46, %v814_v48  ;;  %v1652_v54 = vpop.f32.mrb[4].mxu1 }
 0x104   :  { %713 = vst [vmem:[%s1986_s4 + $0x130] sm:$0xff] %v1652_v54  ;;  %v1658_v58 = vpop.f32.mrb[5].mxu1 }
 0x105   :  { %v878_v49 = vadd.f32 %v877_v57, %v815_v55  ;;  %v1027_v61 = vpop.f32.mrb[8].mxu0  ;;  %v745_v50 = vadd.f32 %v1024_v42, %v744_v56  ;;  %711 = vst [vmem:[%s1986_s4 + $0x120] sm:$0xff] %v1658_v58  ;;  %v1664_v27 = vpop.f32.mrb[6].mxu1 }
 0x106   :  { %685 = vst [vmem:[%s1986_s4 + $0x50] sm:$0xff] %v1027_v61  ;;  %v452_v32 = vpop.f32.mrb[9].mxu0  ;;  %v819_v1 = vmul.f32 %v1027_v61, %v1027_v61  ;;  %714 = vst [vmem:[%s1986_s4 + $0x138] sm:$0xff] %v1664_v27  ;;  %v1670_v4 = vpop.f32.mrb[7].mxu1 }
 0x107   :  { %683 = vst [vmem:[%s1986_s4 + $0x40] sm:$0xff] %v452_v32  ;;  %v746_v62 = vadd.f32 %v745_v50, %v452_v32  ;;  %v817_v33 = vmul.f32 %v452_v32, %v452_v32  ;;  %v879_v0 = vadd.f32 %v878_v49, %v816_v45  ;;  %v1028_v16 = vpop.f32.mrb[10].mxu0  ;;  %712 = vst [vmem:[%s1986_s4 + $0x128] sm:$0xff] %v1670_v4 }
 0x108   :  { %686 = vst [vmem:[%s1986_s4 + $0x58] sm:$0xff] %v1028_v16  ;;  %v455_v23 = vpop.f32.mrb[11].mxu0  ;;  %v820_v7 = vmul.f32 %v1028_v16, %v1028_v16 }
 0x109   :  { %v880_v34 = vadd.f32 %v879_v0, %v817_v33  ;;  %684 = vst [vmem:[%s1986_s4 + $0x48] sm:$0xff] %v455_v23  ;;  %v747_v35 = vadd.f32 %v746_v62, %v455_v23  ;;  %v818_v39 = vmul.f32 %v455_v23, %v455_v23 }
 0x10b   :  { %v748_v3 = vadd.f32 %v1027_v61, %v747_v35  ;;  %v881_v6 = vadd.f32 %v880_v34, %v818_v39  ;;  %v1688_v17 = vpop.f32.mrb[8].mxu1 }
 0x10c   :  { %717 = vst [vmem:[%s1986_s4 + $0x150] sm:$0xff] %v1688_v17  ;;  %v1694_v9 = vpop.f32.mrb[9].mxu1 }
 0x10d   :  { %v882_v10 = vadd.f32 %v881_v6, %v819_v1  ;;  %v1031_v11 = vpop.f32.mrb[12].mxu0  ;;  %v749_v12 = vadd.f32 %v1028_v16, %v748_v3  ;;  %715 = vst [vmem:[%s1986_s4 + $0x140] sm:$0xff] %v1694_v9  ;;  %v1700_v38 = vpop.f32.mrb[10].mxu1 }
 0x10e   :  { %689 = vst [vmem:[%s1986_s4 + $0x70] sm:$0xff] %v1031_v11  ;;  %v468_v20 = vpop.f32.mrb[13].mxu0  ;;  %v823_v5 = vmul.f32 %v1031_v11, %v1031_v11  ;;  %718 = vst [vmem:[%s1986_s4 + $0x158] sm:$0xff] %v1700_v38  ;;  %v1706_v52 = vpop.f32.mrb[11].mxu1 }
 0x10f   :  { %687 = vst [vmem:[%s1986_s4 + $0x60] sm:$0xff] %v468_v20  ;;  %v750_v2 = vadd.f32 %v749_v12, %v468_v20  ;;  %v821_v63 = vmul.f32 %v468_v20, %v468_v20  ;;  %v883_v8 = vadd.f32 %v882_v10, %v820_v7  ;;  %v1032_v28 = vpop.f32.mrb[14].mxu0  ;;  %716 = vst [vmem:[%s1986_s4 + $0x148] sm:$0xff] %v1706_v52 }
 0x110   :  { %690 = vst [vmem:[%s1986_s4 + $0x78] sm:$0xff] %v1032_v28  ;;  %v471_v14 = vpop.f32.mrb[15].mxu0  ;;  %v824_v19 = vmul.f32 %v1032_v28, %v1032_v28 }
 0x111   :  { %v884_v15 = vadd.f32 %v883_v8, %v821_v63  ;;  %688 = vst [vmem:[%s1986_s4 + $0x68] sm:$0xff] %v471_v14  ;;  %v751_v40 = vadd.f32 %v750_v2, %v471_v14  ;;  %v822_v44 = vmul.f32 %v471_v14, %v471_v14 }
 0x113   :  { %v752_v13 = vadd.f32 %v1031_v11, %v751_v40  ;;  %v885_v21 = vadd.f32 %v884_v15, %v822_v44  ;;  %v1724_v43 = vpop.f32.mrb[12].mxu1 }
 0x114   :  { %721 = vst [vmem:[%s1986_s4 + $0x170] sm:$0xff] %v1724_v43  ;;  %v1730_v46 = vpop.f32.mrb[13].mxu1 }
 0x115   :  { %v886_v41 = vadd.f32 %v885_v21, %v823_v5  ;;  %v1035_v18 = vpop.f32.mrb[16].mxu0  ;;  %v753_v22 = vadd.f32 %v1032_v28, %v752_v13  ;;  %719 = vst [vmem:[%s1986_s4 + $0x160] sm:$0xff] %v1730_v46  ;;  %v1736_v56 = vpop.f32.mrb[14].mxu1 }
 0x116   :  { %693 = vst [vmem:[%s1986_s4 + $0x90] sm:$0xff] %v1035_v18  ;;  %v484_v24 = vpop.f32.mrb[17].mxu0  ;;  %v827_v47 = vmul.f32 %v1035_v18, %v1035_v18  ;;  %722 = vst [vmem:[%s1986_s4 + $0x178] sm:$0xff] %v1736_v56  ;;  %v1742_v57 = vpop.f32.mrb[15].mxu1 }
 0x117   :  { %691 = vst [vmem:[%s1986_s4 + $0x80] sm:$0xff] %v484_v24  ;;  %v754_v25 = vadd.f32 %v753_v22, %v484_v24  ;;  %v825_v26 = vmul.f32 %v484_v24, %v484_v24  ;;  %v887_v29 = vadd.f32 %v886_v41, %v824_v19  ;;  %v1036_v30 = vpop.f32.mrb[18].mxu0  ;;  %720 = vst [vmem:[%s1986_s4 + $0x168] sm:$0xff] %v1742_v57 }
 0x118   :  { %694 = vst [vmem:[%s1986_s4 + $0x98] sm:$0xff] %v1036_v30  ;;  %v487_v31 = vpop.f32.mrb[19].mxu0  ;;  %v828_v45 = vmul.f32 %v1036_v30, %v1036_v30 }
 0x119   :  { %v888_v36 = vadd.f32 %v887_v29, %v825_v26  ;;  %692 = vst [vmem:[%s1986_s4 + $0x88] sm:$0xff] %v487_v31  ;;  %v755_v37 = vadd.f32 %v754_v25, %v487_v31  ;;  %v826_v42 = vmul.f32 %v487_v31, %v487_v31 }
 0x11b   :  { %v756_v48 = vadd.f32 %v1035_v18, %v755_v37  ;;  %v889_v55 = vadd.f32 %v888_v36, %v826_v42  ;;  %v1760_v1 = vpop.f32.mrb[16].mxu1 }
 0x11c   :  { %725 = vst [vmem:[%s1986_s4 + $0x190] sm:$0xff] %v1760_v1  ;;  %v1766_v3 = vpop.f32.mrb[17].mxu1 }
 0x11d   :  { %v890_v49 = vadd.f32 %v889_v55, %v827_v47  ;;  %v1039_v61 = vpop.f32.mrb[20].mxu0  ;;  %v757_v50 = vadd.f32 %v1036_v30, %v756_v48  ;;  %723 = vst [vmem:[%s1986_s4 + $0x180] sm:$0xff] %v1766_v3  ;;  %v1772_v11 = vpop.f32.mrb[18].mxu1 }
 0x11e   :  { %697 = vst [vmem:[%s1986_s4 + $0xb0] sm:$0xff] %v1039_v61  ;;  %v500_v32 = vpop.f32.mrb[21].mxu0  ;;  %v831_v6 = vmul.f32 %v1039_v61, %v1039_v61  ;;  %726 = vst [vmem:[%s1986_s4 + $0x198] sm:$0xff] %v1772_v11  ;;  %v1778_v12 = vpop.f32.mrb[19].mxu1 }
 0x11f   :  { %695 = vst [vmem:[%s1986_s4 + $0xa0] sm:$0xff] %v500_v32  ;;  %v758_v62 = vadd.f32 %v757_v50, %v500_v32  ;;  %v829_v33 = vmul.f32 %v500_v32, %v500_v32  ;;  %v891_v0 = vadd.f32 %v890_v49, %v828_v45  ;;  %v1040_v16 = vpop.f32.mrb[22].mxu0  ;;  %724 = vst [vmem:[%s1986_s4 + $0x188] sm:$0xff] %v1778_v12 }
 0x120   :  { %698 = vst [vmem:[%s1986_s4 + $0xb8] sm:$0xff] %v1040_v16  ;;  %v503_v23 = vpop.f32.mrb[23].mxu0  ;;  %v832_v20 = vmul.f32 %v1040_v16, %v1040_v16 }
 0x121   :  { %v892_v34 = vadd.f32 %v891_v0, %v829_v33  ;;  %696 = vst [vmem:[%s1986_s4 + $0xa8] sm:$0xff] %v503_v23  ;;  %v759_v35 = vadd.f32 %v758_v62, %v503_v23  ;;  %v830_v39 = vmul.f32 %v503_v23, %v503_v23 }
 0x123   :  { %v760_v7 = vadd.f32 %v1039_v61, %v759_v35  ;;  %v893_v10 = vadd.f32 %v892_v34, %v830_v39  ;;  %v1796_v41 = vpop.f32.mrb[20].mxu1 }
 0x124   :  { %729 = vst [vmem:[%s1986_s4 + $0x1b0] sm:$0xff] %v1796_v41  ;;  %v1802_v18 = vpop.f32.mrb[21].mxu1 }
 0x125   :  { %v894_v2 = vadd.f32 %v893_v10, %v831_v6  ;;  %v1043_v63 = vpop.f32.mrb[24].mxu0  ;;  %v761_v8 = vadd.f32 %v1040_v16, %v760_v7  ;;  %727 = vst [vmem:[%s1986_s4 + $0x1a0] sm:$0xff] %v1802_v18  ;;  %v1808_v26 = vpop.f32.mrb[22].mxu1  ;;  %v841_v10 = vmul.f32 %v1622_v53, %v1622_v53 }
 0x126   :  { %701 = vst [vmem:[%s1986_s4 + $0xd0] sm:$0xff] %v1043_v63  ;;  %v516_v28 = vpop.f32.mrb[25].mxu0  ;;  %v835_v22 = vmul.f32 %v1043_v63, %v1043_v63  ;;  %730 = vst [vmem:[%s1986_s4 + $0x1b8] sm:$0xff] %v1808_v26  ;;  %v1814_v29 = vpop.f32.mrb[23].mxu1 }
 0x127   :  { %699 = vst [vmem:[%s1986_s4 + $0xc0] sm:$0xff] %v516_v28  ;;  %v762_v14 = vadd.f32 %v761_v8, %v516_v28  ;;  %v833_v15 = vmul.f32 %v516_v28, %v516_v28  ;;  %v895_v40 = vadd.f32 %v894_v2, %v832_v20  ;;  %v1044_v44 = vpop.f32.mrb[26].mxu0  ;;  %728 = vst [vmem:[%s1986_s4 + $0x1a8] sm:$0xff] %v1814_v29 }
 0x128   :  { %702 = vst [vmem:[%s1986_s4 + $0xd8] sm:$0xff] %v1044_v44  ;;  %v519_v5 = vpop.f32.mrb[27].mxu0  ;;  %v836_v30 = vmul.f32 %v1044_v44, %v1044_v44  ;;  %v842_v28 = vmul.f32 %v1634_v60, %v1634_v60 }
 0x129   :  { %v896_v13 = vadd.f32 %v895_v40, %v833_v15  ;;  %700 = vst [vmem:[%s1986_s4 + $0xc8] sm:$0xff] %v519_v5  ;;  %v763_v21 = vadd.f32 %v762_v14, %v519_v5  ;;  %v834_v19 = vmul.f32 %v519_v5, %v519_v5  ;;  %v843_v40 = vmul.f32 %v1616_v51, %v1616_v51 }
 0x12b   :  { %v764_v24 = vadd.f32 %v1043_v63, %v763_v21  ;;  %v897_v25 = vadd.f32 %v896_v13, %v834_v19  ;;  %v1832_v62 = vpop.f32.mrb[24].mxu1  ;;  %v844_v13 = vmul.f32 %v1628_v59, %v1628_v59  ;;  %v845_v19 = vmul.f32 %v1658_v58, %v1658_v58 }
 0x12c   :  { %733 = vst [vmem:[%s1986_s4 + $0x1d0] sm:$0xff] %v1832_v62  ;;  %v1838_v33 = vpop.f32.mrb[25].mxu1 }
 0x12d   :  { %v898_v31 = vadd.f32 %v897_v25, %v835_v22  ;;  %v1047_v36 = vpop.f32.mrb[28].mxu0  ;;  %v765_v37 = vadd.f32 %v1044_v44, %v764_v24  ;;  %731 = vst [vmem:[%s1986_s4 + $0x1c0] sm:$0xff] %v1838_v33  ;;  %v1844_v34 = vpop.f32.mrb[26].mxu1 }
 0x12e   :  { %705 = vst [vmem:[%s1986_s4 + $0xf0] sm:$0xff] %v1047_v36  ;;  %v532_v42 = vpop.f32.mrb[29].mxu0  ;;  %v839_v0 = vmul.f32 %v1047_v36, %v1047_v36  ;;  %734 = vst [vmem:[%s1986_s4 + $0x1d8] sm:$0xff] %v1844_v34  ;;  %v1850_v35 = vpop.f32.mrb[27].mxu1 }
 0x12f   :  { %703 = vst [vmem:[%s1986_s4 + $0xe0] sm:$0xff] %v532_v42  ;;  %v766_v47 = vadd.f32 %v765_v37, %v532_v42  ;;  %v837_v48 = vmul.f32 %v532_v42, %v532_v42  ;;  %v899_v55 = vadd.f32 %v898_v31, %v836_v30  ;;  %v1048_v45 = vpop.f32.mrb[30].mxu0  ;;  %732 = vst [vmem:[%s1986_s4 + $0x1c8] sm:$0xff] %v1850_v35 }
 0x130   :  { %706 = vst [vmem:[%s1986_s4 + $0xf8] sm:$0xff] %v1048_v45  ;;  %v535_v49 = vpop.f32.mrb[31].mxu0  ;;  %v840_v39 = vmul.f32 %v1048_v45, %v1048_v45  ;;  %v846_v31 = vmul.f32 %v1670_v4, %v1670_v4  ;;  %v848_v42 = vmul.f32 %v1664_v27, %v1664_v27 }
 0x131   :  { %v900_v61 = vadd.f32 %v899_v55, %v837_v48  ;;  %704 = vst [vmem:[%s1986_s4 + $0xe8] sm:$0xff] %v535_v49  ;;  %v767_v50 = vadd.f32 %v766_v47, %v535_v49  ;;  %v838_v32 = vmul.f32 %v535_v49, %v535_v49 }
 0x133   :  { %v768_v16 = vadd.f32 %v1047_v36, %v767_v50  ;;  %v901_v23 = vadd.f32 %v900_v61, %v838_v32  ;;  %v1862_v14 = vpop.f32.mrb[28].mxu1  ;;  %v850_v61 = vmul.f32 %v1706_v52, %v1706_v52 }
 0x134   :  { %737 = vst [vmem:[%s1986_s4 + $0x1f0] sm:$0xff] %v1862_v14  ;;  %v1868_v15 = vpop.f32.mrb[29].mxu1 }
 0x135   :  { %v902_v6 = vadd.f32 %v901_v23, %v839_v0  ;;  %v769_v7 = vadd.f32 %v1048_v45, %v768_v16  ;;  %735 = vst [vmem:[%s1986_s4 + $0x1e0] sm:$0xff] %v1868_v15 }
 0x137   :  { %v770_v20 = vadd.f32 %v769_v7, %v1622_v53  ;;  %v903_v2 = vadd.f32 %v902_v6, %v840_v39  ;;  %v854_v7 = vmul.f32 %v1742_v57, %v1742_v57 }
 0x139   :  { %v904_v63 = vadd.f32 %v903_v2, %v841_v10  ;;  %v771_v8 = vadd.f32 %v770_v20, %v1634_v60  ;;  %v1877_v60 = vpop.f32.mrb[30].mxu1 }
 0x13a   :  { %738 = vst [vmem:[%s1986_s4 + $0x1f8] sm:$0xff] %v1877_v60  ;;  %v1883_v5 = vpop.f32.mrb[31].mxu1 }
 0x13b   :  { %v772_v53 = vadd.f32 %v1616_v51, %v771_v8  ;;  %v905_v44 = vadd.f32 %v904_v63, %v842_v28  ;;  %736 = vst [vmem:[%s1986_s4 + $0x1e8] sm:$0xff] %v1883_v5 }
 0x13d   :  { %v906_v21 = vadd.f32 %v905_v44, %v843_v40  ;;  %v773_v51 = vadd.f32 %v1628_v59, %v772_v53  ;;  %v847_v59 = vmul.f32 %v1652_v54, %v1652_v54  ;;  %v858_v53 = vmul.f32 %v1778_v12, %v1778_v12 }
 0x13f   :  { %v774_v22 = vadd.f32 %v773_v51, %v1658_v58  ;;  %v907_v24 = vadd.f32 %v906_v21, %v844_v13  ;;  %v849_v58 = vmul.f32 %v1694_v9, %v1694_v9 }
 0x141   :  { %v908_v25 = vadd.f32 %v907_v24, %v845_v19  ;;  %v775_v30 = vadd.f32 %v774_v22, %v1670_v4 }
 0x143   :  { %v776_v36 = vadd.f32 %v1652_v54, %v775_v30  ;;  %v909_v37 = vadd.f32 %v908_v25, %v846_v31  ;;  %v851_v54 = vmul.f32 %v1688_v17, %v1688_v17  ;;  %v862_v25 = vmul.f32 %v1814_v29, %v1814_v29 }
 0x145   :  { %v910_v47 = vadd.f32 %v909_v37, %v847_v59  ;;  %v777_v48 = vadd.f32 %v1664_v27, %v776_v36  ;;  %v852_v27 = vmul.f32 %v1700_v38, %v1700_v38 }
 0x147   :  { %v778_v55 = vadd.f32 %v777_v48, %v1694_v9  ;;  %v911_v45 = vadd.f32 %v910_v47, %v848_v42  ;;  %v853_v9 = vmul.f32 %v1730_v46, %v1730_v46  ;;  %v866_v48 = vmul.f32 %v1850_v35, %v1850_v35 }
 0x149   :  { %v912_v49 = vadd.f32 %v911_v45, %v849_v58  ;;  %v779_v4 = vadd.f32 %v778_v55, %v1706_v52 }
 0x14b   :  { %v780_v50 = vadd.f32 %v1688_v17, %v779_v4  ;;  %v913_v32 = vadd.f32 %v912_v49, %v850_v61  ;;  %v855_v17 = vmul.f32 %v1724_v43, %v1724_v43 }
 0x14d   :  { %v914_v0 = vadd.f32 %v913_v32, %v851_v54  ;;  %v781_v16 = vadd.f32 %v1700_v38, %v780_v50  ;;  %v856_v38 = vmul.f32 %v1736_v56, %v1736_v56  ;;  %v870_v50 = vmul.f32 %v1883_v5, %v1883_v5 }
 0x14f   :  { %v782_v23 = vadd.f32 %v781_v16, %v1730_v46  ;;  %v915_v39 = vadd.f32 %v914_v0, %v852_v27  ;;  %v857_v46 = vmul.f32 %v1766_v3, %v1766_v3 }
 0x151   :  { %v916_v6 = vadd.f32 %v915_v39, %v853_v9  ;;  %v783_v52 = vadd.f32 %v782_v23, %v1742_v57 }
 0x153   :  { %v784_v10 = vadd.f32 %v1724_v43, %v783_v52  ;;  %v917_v20 = vadd.f32 %v916_v6, %v854_v7  ;;  %v859_v43 = vmul.f32 %v1760_v1, %v1760_v1 }
 0x155   :  { %v918_v2 = vadd.f32 %v917_v20, %v855_v17  ;;  %v785_v63 = vadd.f32 %v1736_v56, %v784_v10  ;;  %v860_v56 = vmul.f32 %v1772_v11, %v1772_v11 }
 0x157   :  { %v786_v8 = vadd.f32 %v785_v63, %v1766_v3  ;;  %v919_v28 = vadd.f32 %v918_v2, %v856_v38  ;;  %v861_v3 = vmul.f32 %v1802_v18, %v1802_v18 }
 0x159   :  { %v920_v40 = vadd.f32 %v919_v28, %v857_v46  ;;  %v787_v57 = vadd.f32 %v786_v8, %v1778_v12 }
 0x15b   :  { %v788_v44 = vadd.f32 %v1760_v1, %v787_v57  ;;  %v921_v13 = vadd.f32 %v920_v40, %v858_v53  ;;  %v863_v1 = vmul.f32 %v1796_v41, %v1796_v41 }
 0x15d   :  { %v922_v21 = vadd.f32 %v921_v13, %v859_v43  ;;  %v789_v51 = vadd.f32 %v1772_v11, %v788_v44  ;;  %v864_v11 = vmul.f32 %v1808_v26, %v1808_v26 }
 0x15f   :  { %v790_v19 = vadd.f32 %v789_v51, %v1802_v18  ;;  %v923_v22 = vadd.f32 %v922_v21, %v860_v56  ;;  %v865_v18 = vmul.f32 %v1838_v33, %v1838_v33 }
 0x161   :  { %v924_v24 = vadd.f32 %v923_v22, %v861_v3  ;;  %v791_v12 = vadd.f32 %v790_v19, %v1814_v29 }
 0x163   :  { %v792_v30 = vadd.f32 %v1796_v41, %v791_v12  ;;  %v925_v31 = vadd.f32 %v924_v24, %v862_v25  ;;  %v867_v41 = vmul.f32 %v1832_v62, %v1832_v62 }
 0x165   :  { %v926_v59 = vadd.f32 %v925_v31, %v863_v1  ;;  %v793_v36 = vadd.f32 %v1808_v26, %v792_v30  ;;  %v868_v26 = vmul.f32 %v1844_v34, %v1844_v34 }
 0x167   :  { %v794_v37 = vadd.f32 %v793_v36, %v1838_v33  ;;  %v927_v42 = vadd.f32 %v926_v59, %v864_v11  ;;  %v869_v33 = vmul.f32 %v1868_v15, %v1868_v15 }
 0x169   :  { %v928_v47 = vadd.f32 %v927_v42, %v865_v18  ;;  %v795_v29 = vadd.f32 %v794_v37, %v1850_v35 }
 0x16b   :  { %v796_v58 = vadd.f32 %v1832_v62, %v795_v29  ;;  %v929_v55 = vadd.f32 %v928_v47, %v866_v48  ;;  %v871_v62 = vmul.f32 %v1862_v14, %v1862_v14 }
 0x16d   :  { %v930_v45 = vadd.f32 %v929_v55, %v867_v41  ;;  %v797_v49 = vadd.f32 %v1844_v34, %v796_v58  ;;  %v872_v34 = vmul.f32 %v1877_v60, %v1877_v60 }
 0x16f   :  { %v798_v4 = vadd.f32 %v797_v49, %v1868_v15  ;;  %v931_v61 = vadd.f32 %v930_v45, %v868_v26 }
 0x171   :  { %v932_v54 = vadd.f32 %v931_v61, %v869_v33  ;;  %v799_v35 = vadd.f32 %v798_v4, %v1883_v5 }
 0x173   :  { %v800_v32 = vadd.f32 %v1862_v14, %v799_v35  ;;  %v933_v27 = vadd.f32 %v932_v54, %v870_v50 }
 0x175   :  { %v801_v0 = vadd.f32 %v1877_v60, %v800_v32  ;;  %v934_v16 = vadd.f32 %v933_v27, %v871_v62 }
 0x177   :  { %v802_v15 = vrot.slane %v801_v0, 4  ;;  %v935_v9 = vadd.f32 %v934_v16, %v872_v34 }
 0x179   :  { %v803_v23 = vadd.f32 %v802_v15, %v801_v0  ;;  %v936_v39 = vrot.slane %v935_v9, 4 }
 0x17b   :  { %v804_v6 = vrot.slane %v803_v23, 2  ;;  %v937_v52 = vadd.f32 %v936_v39, %v935_v9 }
 0x17d   :  { %v805_v7 = vadd.f32 %v804_v6, %v803_v23  ;;  %v938_v5 = vrot.slane %v937_v52, 2 }
 0x17f   :  { %v806_v17 = vrot.slane %v805_v7, 1  ;;  %v939_v10 = vadd.f32 %v938_v5, %v937_v52 }
 0x181   :  { %v807_v20 = vadd.f32 %v806_v17, %v805_v7  ;;  %v940_v38 = vrot.slane %v939_v10, 1 }
 0x183   :  { %808 = vst [vmem:[%s1987_s5] sm:$0x1] %v807_v20  ;;  %v941_v14 = vadd.f32 %v940_v38, %v939_v10 }
 0x185   :  { %942 = vst [vmem:[%s1987_s5 + $0x1] sm:$0x1] %v941_v14 }

// kernel: decoder_forward.5
= control target key start
LH: loop header
LB: loop body
LE: loop exit
PB: predicated region body
PF: predicated region fallthrough
CT: control target
= control target key end

     0   :  { %s7842_s12 = smov 0   ;;  %s7844_s13 = smov 0   ;;  %s9007_s0 = inlined_call_operand.vmem [shape: bf16[2,18,18,128], index: 0, kind: input, shape index: {}]   ;;  %s9008_s1 = inlined_call_operand.vmem [shape: bf16[9,128,128], index: 1, kind: input, shape index: {}]   ;;  %s9009_s2 = inlined_call_operand.vmem [shape: f32[2,16,16,128], index: 2, kind: output, shape index: {0}]   ;;  %s9010_s3 = inlined_call_operand.vmem [shape: f32[2,1,2,128], index: 3, kind: output, shape index: {1}]  }
   0x1   :  { %s7846_s14 = smov 0  }
   0x2 LB: > { %s26_s15 = sadd.s32 1, %s7816_s13  ;;  %p6069_p0 = scmp.ge.s32.totalorder %s7820_s14, 1  ;;  %s7820_s14 = sphi %s7846_s14, %s14_s14   ;;  %s7816_s13 = sphi %s7844_s13, %s9016_s13   ;;  %s7812_s12 = sphi %s7842_s12, %s9015_s12  }
   0x3   : > { %p28_p1 = scmp.ge.s32.totalorder %s26_s15, 2  ;;  %p156_p2 = scmp.lt.s32.totalorder %s7820_s14, 3 }
   0x5   : > { %s9018_s15 = smov (%p28_p1, %s26_s15), 0  ;;  %p157_p3 = pnand %p6069_p0, %p156_p2 }
   0x6   : > { %v7670_v0 = vld [vmem:[%s9008_s1] sm:$0xff] (!%p157_p3)   ;;  %v7672_v2 = vld [vmem:[%s9008_s1 + $0x8] sm:$0xff] (!%p157_p3)   ;;  %p192_p4 = scmp.lt.s32.totalorder (!%p157_p3), %s7812_s12, 1  ;;  %v7674_v4 = vld [vmem:[%s9008_s1 + $0x10] sm:$0xff] (!%p157_p3)   ;;  %vm653_vm0 = vsmask.f32 (!%p157_p3), 3328 }
   0x7   : > { %160 = sbr.rel (%p157_p3) target bundleno = 572 (0x23c), region = 28  ;;  %v7671_v1 = vld [vmem:[%s9008_s1 + $0x100] sm:$0xff] (!%p157_p3)   ;;  %6941 = vmatprep.subr.bf16.mxu1 (!%p157_p3), %v7670_v0  ;;  %v7673_v3 = vld [vmem:[%s9008_s1 + $0x108] sm:$0xff] (!%p157_p3)   ;;  %v7675_v5 = vld [vmem:[%s9008_s1 + $0x110] sm:$0xff] (!%p157_p3)   ;;  %vm654_vm1 = vsmask.f32 (!%p157_p3), 7440 }
   0x8   : > { %7133 = vmatprep.subr.bf16.mxu0 (!%p157_p3), %v7671_v1  ;;  %6942 = vmatpush3.bf16.msra.mxu1 (!%p157_p3), %v7670_v0  ;;  %v7676_v6 = vld [vmem:[%s9008_s1 + $0x18] sm:$0xff] (!%p157_p3)   ;;  %v7678_v8 = vld [vmem:[%s9008_s1 + $0x20] sm:$0xff] (!%p157_p3)   ;;  %v7680_v10 = vld [vmem:[%s9008_s1 + $0x28] sm:$0xff] (!%p157_p3)   ;;  %vm1522_vm3 = vcmask (!%p157_p3), 1042432   ;;  %vm1523_vm4 = vcmask (!%p157_p3), 1046532  }
   0x9   : > { %7134 = vmatpush3.bf16.msra.mxu0 (!%p157_p3), %v7671_v1  ;;  %6943 = vmatprep.subr.bf16.mxu1 (!%p157_p3), %v7672_v2  ;;  %v7677_v7 = vld [vmem:[%s9008_s1 + $0x118] sm:$0xff] (!%p157_p3)   ;;  %v7679_v9 = vld [vmem:[%s9008_s1 + $0x120] sm:$0xff] (!%p157_p3)   ;;  %v7681_v11 = vld [vmem:[%s9008_s1 + $0x128] sm:$0xff] (!%p157_p3)  }
   0xa   : > { %7135 = vmatprep.subr.bf16.mxu0 (!%p157_p3), %v7673_v3  ;;  %v7682_v18 = vld [vmem:[%s9008_s1 + $0x30] sm:$0xff] (!%p157_p3)   ;;  %v7684_v32 = vld [vmem:[%s9008_s1 + $0x38] sm:$0xff] (!%p157_p3)   ;;  %vm7922_vm2 = vmor (!%p157_p3), %vm653_vm0, %vm654_vm1 }
   0xb   : > { %v7683_v24 = vld [vmem:[%s9008_s1 + $0x130] sm:$0xff] (!%p157_p3)   ;;  %v7685_v38 = vld [vmem:[%s9008_s1 + $0x138] sm:$0xff] (!%p157_p3)   ;;  %v7688_v47 = vld [vmem:[%s9008_s1 + $0x40] sm:$0xff] (!%p157_p3)  }
   0xc   : > { %6944 = vmatpush3.bf16.msra.mxu1 (!%p157_p3), %v7672_v2  ;;  %v7689_v52 = vld [vmem:[%s9008_s1 + $0x140] sm:$0xff] (!%p157_p3)   ;;  %vm8022_vm5 = vmor (!%p157_p3), %vm1522_vm3, %vm1523_vm4 }
   0xd   : > { %7136 = vmatpush3.bf16.msra.mxu0 (!%p157_p3), %v7673_v3  ;;  %6945 = vmatprep.subr.bf16.mxu1 (!%p157_p3), %v7674_v4 }
   0xe   : > { %s9020_s12 = smov (!%p192_p4, %s7812_s12), 1  ;;  %7137 = vmatprep.subr.bf16.mxu0 %v7675_v5 }
   0xf   : > { %s7645_s5 = smul.u32 216, %s9020_s12  ;;  %s6073_s28 = sshll.u32 %s9020_s12, 1 }
  0x10   : > { %6946 = vmatpush3.bf16.msra.mxu1 %v7674_v4  ;;  %s214_s4 = scalar_lea.vmem %s9010_s3, %s6073_s28 }
  0x11   : > { %7138 = vmatpush3.bf16.msra.mxu0 %v7675_v5  ;;  %6947 = vmatprep.subr.bf16.mxu1 %v7676_v6  ;;  %s7899_s18 = scalar_lea.vmem %s9007_s0, %s7645_s5 }
  0x12   : > { %7139 = vmatprep.subr.bf16.mxu0 %v7677_v7  ;;  %v7686_v12 = vld [vmem:[%s7899_s18] sm:$0xff]   ;;  %v6266_v13 = vld [vmem:[%s7899_s18 + $0xc] sm:$0xf]  ;;  %v6267_v14 = vld [vmem:[%s7899_s18 + $0x10] sm:$0xf] }
  0x13   : > { %6957 = vmatprep.mubr.bf16.mxu1 %v7686_v12  ;;  %v6268_v15 = vld [vmem:[%s7899_s18 + $0x14] sm:$0x1]  ;;  %v2526_v16 = vshrl.u32 %v6266_v13, 16  ;;  %v2529_v17 = vshll.u32 %v6266_v13, 16  ;;  %v2535_v19 = vshll.u32 %v6267_v14, 16  ;;  %v2539_v20 = vshrl.u32 %v6267_v14, 16 }
  0x14   : > { %6948 = vmatpush3.bf16.msra.mxu1 %v7676_v6  ;;  %v2545_v21 = vshll.u32 %v6268_v15, 16  ;;  %v6269_v29 = vld [vmem:[%s7899_s18 + $0x18] sm:$0xf]  ;;  %v6270_v30 = vld [vmem:[%s7899_s18 + $0x1c] sm:$0xf]  ;;  %v7687_v55 = vld [vmem:[%s7899_s18 + $0xc] sm:$0xff]  }
  0x15   : > { %7140 = vmatpush3.bf16.msra.mxu0 %v7677_v7  ;;  %6949 = vmatprep.subr.bf16.mxu1 %v7678_v8  ;;  %v2528_v22 = vrot.slane %v2526_v16, 4  ;;  %v2531_v23 = vrot.slane %v2529_v17, 5  ;;  %v2537_v25 = vrot.slane %v2535_v19, 5  ;;  %v2541_v26 = vrot.slane %v2539_v20, 4  ;;  %v6271_v31 = vld [vmem:[%s7899_s18 + $0x20] sm:$0x1] }
  0x16   : > { %7141 = vmatprep.subr.bf16.mxu0 %v7679_v9  ;;  %v2547_v27 = vrot.slane %v2545_v21, 5  ;;  %v2550_v35 = vshrl.u32 %v6269_v29, 16  ;;  %v2553_v36 = vshll.u32 %v6269_v29, 16  ;;  %v2559_v37 = vshll.u32 %v6270_v30, 16  ;;  %v6272_v53 = vld [vmem:[%s7899_s18 + $0x24] sm:$0xf] }
  0x17   : > { %v2532_v28 = vor.u32 %v2531_v23, %v2528_v22  ;;  %v2542_v34 = vor.u32 %v2541_v26, %v2537_v25  ;;  %v2563_v40 = vshrl.u32 %v6270_v30, 16  ;;  %v2569_v41 = vshll.u32 %v6271_v31, 16  ;;  %v6273_v57 = vld [vmem:[%s7899_s18 + $0x28] sm:$0xf]  ;;  %v6274_v58 = vld [vmem:[%s7899_s18 + $0x2c] sm:$0x1] }
  0x18   : > { %6950 = vmatpush3.bf16.msra.mxu1 %v7678_v8  ;;  %v2552_v43 = vrot.slane %v2550_v35, 4  ;;  %v2555_v44 = vrot.slane %v2553_v36, 5  ;;  %v2561_v45 = vrot.slane %v2559_v37, 5  ;;  %v2574_v59 = vshrl.u32 %v6272_v53, 16  ;;  %v7691_v2 = vld [vmem:[%s7899_s18 + $0x18] sm:$0xff]   ;;  %v7690_v6 = vld [vmem:[%s9008_s1 + $0x148] sm:$0xff]  }
  0x19   : > { %7142 = vmatpush3.bf16.msra.mxu0 %v7679_v9  ;;  %6951 = vmatprep.subr.bf16.mxu1 %v7680_v10  ;;  %v2533_v39 = vrot.slane %v2532_v28, 4  ;;  %v2543_v42 = vrot.slane %v2542_v34, 4  ;;  %v2565_v48 = vrot.slane %v2563_v40, 4  ;;  %v2571_v51 = vrot.slane %v2569_v41, 5  ;;  %v6275_v13 = vld [vmem:[%s7899_s18 + $0x30] sm:$0xf] }
  0x1a   : > { %7143 = vmatprep.subr.bf16.mxu0 %v7681_v11  ;;  %v2556_v50 = vor.u32 %v2555_v44, %v2552_v43  ;;  %v2577_v60 = vshll.u32 %v6272_v53, 16  ;;  %v2583_v62 = vshll.u32 %v6273_v57, 16  ;;  %v2587_v63 = vshrl.u32 %v6273_v57, 16  ;;  %v6276_v14 = vld [vmem:[%s7899_s18 + $0x34] sm:$0xf]  ;;  %v7692_v28 = vld [vmem:[%s7899_s18 + $0x24] sm:$0xff]  }
  0x1b   : > { %v2538_v46 = vsel %vm7922_vm2, %v2533_v39, %v2537_v25  ;;  %v2548_v49 = vsel %vm7922_vm2, %v2543_v42, %v2547_v27  ;;  %v2566_v56 = vor.u32 %v2565_v48, %v2561_v45  ;;  %v2593_v0 = vshll.u32 %v6274_v58, 16  ;;  %v6277_v17 = vld [vmem:[%s7899_s18 + $0x38] sm:$0x1]  ;;  %v7694_v31 = vld [vmem:[%s9008_s1 + $0x150] sm:$0xff]   ;;  %v6278_v39 = vld [vmem:[%s7899_s18 + $0x3c] sm:$0xf] }
  0x1c   : > { %6952 = vmatpush3.bf16.msra.mxu1 %v7680_v10  ;;  %v6330_v54 = vcombine.low %v2538_v46, %v2548_v49  ;;  %v2557_v61 = vrot.slane %v2556_v50, 4  ;;  %v2576_v3 = vrot.slane %v2574_v59, 4  ;;  %v2579_v4 = vrot.slane %v2577_v60, 5  ;;  %v7693_v10 = vld [vmem:[%s9008_s1 + $0x48] sm:$0xff]   ;;  %v7696_v36 = vld [vmem:[%s7899_s18 + $0x30] sm:$0xff]  }
  0x1d   : > { %7144 = vmatpush3.bf16.msra.mxu0 %v7681_v11  ;;  %6953 = vmatprep.subr.bf16.mxu1 %v7682_v18  ;;  %v2567_v1 = vrot.slane %v2566_v56, 4  ;;  %v2585_v7 = vrot.slane %v2583_v62, 5  ;;  %v2589_v8 = vrot.slane %v2587_v63, 4  ;;  %v2595_v9 = vrot.slane %v2593_v0, 5  ;;  %v6279_v40 = vld [vmem:[%s7899_s18 + $0x40] sm:$0xf] }
  0x1e   : > { %7145 = vmatprep.subr.bf16.mxu0 %v7683_v24  ;;  %7149 = vmatprep.mubr.bf16.mxu0 %v6330_v54  ;;  %v2562_v5 = vsel %vm7922_vm2, %v2557_v61, %v2561_v45  ;;  %v2580_v12 = vor.u32 %v2579_v4, %v2576_v3  ;;  %v2601_v19 = vshll.u32 %v6275_v13, 16  ;;  %v2607_v21 = vshll.u32 %v6276_v14, 16  ;;  %v6280_v41 = vld [vmem:[%s7899_s18 + $0x44] sm:$0x1]  ;;  %v7698_v54 = vld [vmem:[%s9008_s1 + $0x50] sm:$0xff]  }
  0x1f   : > { %v2572_v11 = vsel %vm7922_vm2, %v2567_v1, %v2571_v51  ;;  %v2590_v16 = vor.u32 %v2589_v8, %v2585_v7  ;;  %v2611_v22 = vshrl.u32 %v6276_v14, 16  ;;  %v2617_v23 = vshll.u32 %v6277_v17, 16  ;;  %v6281_v58 = vld [vmem:[%s7899_s18 + $0x48] sm:$0xf]  ;;  %v6282_v61 = vld [vmem:[%s7899_s18 + $0x4c] sm:$0xf] }
  0x20   : > { %6954 = vmatpush3.bf16.msra.mxu1 %v7682_v18  ;;  %v6331_v15 = vcombine.low %v2562_v5, %v2572_v11  ;;  %v2598_v18 = vshrl.u32 %v6275_v13, 16  ;;  %v2581_v20 = vrot.slane %v2580_v12, 4  ;;  %v2603_v26 = vrot.slane %v2601_v19, 5  ;;  %v6283_v62 = vld [vmem:[%s7899_s18 + $0x50] sm:$0x1]  ;;  %v7699_v8 = vld [vmem:[%s9008_s1 + $0x160] sm:$0xff]  }
  0x21   : > { %7146 = vmatpush3.bf16.msra.mxu0 %v7683_v24  ;;  %6955 = vmatprep.subr.bf16.mxu1 %v7684_v32  ;;  %v2591_v24 = vrot.slane %v2590_v16, 4  ;;  %v2609_v29 = vrot.slane %v2607_v21, 5  ;;  %v2613_v30 = vrot.slane %v2611_v22, 4  ;;  %v2619_v35 = vrot.slane %v2617_v23, 5  ;;  %v6284_v19 = vld [vmem:[%s7899_s18 + $0x54] sm:$0xf] }
  0x22   : > { %7147 = vmatprep.subr.bf16.mxu0 %v7685_v38  ;;  %v2600_v25 = vrot.slane %v2598_v18, 4  ;;  %v2586_v27 = vsel %vm7922_vm2, %v2581_v20, %v2585_v7  ;;  %v2622_v43 = vshrl.u32 %v6278_v39, 16  ;;  %v2625_v44 = vshll.u32 %v6278_v39, 16  ;;  %v7701_v18 = vld [vmem:[%s7899_s18 + $0x48] sm:$0xff]   ;;  %v6285_v20 = vld [vmem:[%s7899_s18 + $0x58] sm:$0xf] }
  0x23   : > { %v2631_v45 = vshll.u32 %v6279_v40, 16  ;;  %v2635_v48 = vshrl.u32 %v6279_v40, 16  ;;  %v2641_v49 = vshll.u32 %v6280_v41, 16  ;;  %v2646_v63 = vshrl.u32 %v6281_v58, 16  ;;  %v7700_v23 = vld [vmem:[%s9008_s1 + $0x168] sm:$0xff]   ;;  %v7702_v39 = vld [vmem:[%s7899_s18 + $0x54] sm:$0xff]  }
  0x24   : > { %6956 = vmatpush3.bf16.msra.mxu1 %v7684_v32  ;;  %v2596_v32 = vsel %vm7922_vm2, %v2591_v24, %v2595_v9  ;;  %v2604_v34 = vor.u32 %v2603_v26, %v2600_v25  ;;  %v2624_v51 = vrot.slane %v2622_v43, 4  ;;  %v2649_v0 = vshll.u32 %v6281_v58, 16  ;;  %v6286_v24 = vld [vmem:[%s7899_s18 + $0x5c] sm:$0x1]  ;;  %v6287_v43 = vld [vmem:[%s7899_s18 + $0x60] sm:$0xf] }
  0x25   : > { %7148 = vmatpush3.bf16.msra.mxu0 %v7685_v38  ;;  %6989 = vmatprep.subr.bf16.mxu1 %v7688_v47  ;;  %v6332_v37 = vcombine.low %v2586_v27, %v2596_v32  ;;  %v2614_v38 = vor.u32 %v2613_v30, %v2609_v29  ;;  %v2633_v53 = vrot.slane %v2631_v45, 5  ;;  %v2637_v56 = vrot.slane %v2635_v48, 4  ;;  %v7703_v40 = vld [vmem:[%s9008_s1 + $0x58] sm:$0xff]   ;;  %v6289_v45 = vld [vmem:[%s7899_s18 + $0x68] sm:$0x1] }
  0x26   : > { %7181 = vmatprep.subr.bf16.mxu0 %v7689_v52  ;;  %v2605_v42 = vrot.slane %v2604_v34, 4  ;;  %v2643_v57 = vrot.slane %v2641_v49, 5  ;;  %v2659_v3 = vshrl.u32 %v6282_v61, 16  ;;  %v2665_v4 = vshll.u32 %v6283_v62, 16 }
  0x27   : > { %6958 = vmatmul.mubr.bf16.vlgmr.msra.gmra.mrb[0].mxu1 %v7687_v55  ;;  %v2615_v46 = vrot.slane %v2614_v38, 4  ;;  %v2638_v1 = vor.u32 %v2637_v56, %v2633_v53  ;;  %v2651_v7 = vrot.slane %v2649_v0, 5  ;;  %v2670_v25 = vshrl.u32 %v6284_v19, 16  ;;  %v6354_v0 = vld [vmem:[%s7899_s18 + $0xc] sm:$0xe] }
  0x28   : > { %7150 = vmatmul.mubr.bf16.vlgmr.msra.gmra.mrb[0].mxu0 %v6331_v15  ;;  %6990 = vmatpush3.bf16.msra.mxu1 %v7688_v47  ;;  %v7695_v47 = vld [vmem:[%s9008_s1 + $0x158] sm:$0xff]   ;;  %v2610_v50 = vsel %vm7922_vm2, %v2605_v42, %v2609_v29  ;;  %v2661_v12 = vrot.slane %v2659_v3, 4  ;;  %v2667_v17 = vrot.slane %v2665_v4, 5  ;;  %v2673_v26 = vshll.u32 %v6284_v19, 16 }
  0x29   : > { %7182 = vmatpush3.bf16.msra.mxu0 %v7689_v52  ;;  %6961 = vmatprep.mubr.bf16.mxu1 %v7691_v2  ;;  %v2627_v52 = vrot.slane %v2625_v44, 5  ;;  %v2620_v55 = vsel %vm7922_vm2, %v2615_v46, %v2619_v35  ;;  %v2655_v2 = vshll.u32 %v6282_v61, 16  ;;  %v2639_v9 = vrot.slane %v2638_v1, 4  ;;  %v6288_v44 = vld [vmem:[%s7899_s18 + $0x64] sm:$0xf] }
  0x2a   : > { %7183 = vmatprep.subr.bf16.mxu0 %v7690_v6  ;;  %6991 = vmatprep.subr.bf16.mxu1 %v7693_v10  ;;  %v6333_v59 = vcombine.low %v2610_v50, %v2620_v55  ;;  %v2683_v29 = vshrl.u32 %v6285_v20, 16  ;;  %v2689_v30 = vshll.u32 %v6286_v24, 16  ;;  %v2672_v32 = vrot.slane %v2670_v25, 4  ;;  %v7704_v50 = vld [vmem:[%s9008_s1 + $0x170] sm:$0xff]  }
  0x2b   : > { %7153 = vmatprep.mubr.bf16.mxu0 %v6332_v37  ;;  %v2628_v60 = vor.u32 %v2627_v52, %v2624_v51  ;;  %v2657_v11 = vrot.slane %v2655_v2, 5  ;;  %v2644_v15 = vsel %vm7922_vm2, %v2639_v9, %v2643_v57  ;;  %v2675_v34 = vrot.slane %v2673_v26, 5 }
  0x2c   : > { %6992 = vmatpush3.bf16.msra.mxu1 %v7693_v10  ;;  %v7697_v10 = vld [vmem:[%s7899_s18 + $0x3c] sm:$0xff]   ;;  %v2685_v37 = vrot.slane %v2683_v29, 4  ;;  %v2691_v38 = vrot.slane %v2689_v30, 5  ;;  %v2697_v48 = vshll.u32 %v6287_v43, 16  ;;  %v2703_v49 = vshll.u32 %v6288_v44, 16 }
  0x2d   : > { %7184 = vmatpush3.bf16.msra.mxu0 %v7690_v6  ;;  %6993 = vmatprep.subr.bf16.mxu1 %v7698_v54  ;;  %v2629_v5 = vrot.slane %v2628_v60, 4  ;;  %v2648_v6 = vrot.slane %v2646_v63, 4  ;;  %v2662_v16 = vor.u32 %v2661_v12, %v2657_v11  ;;  %v2676_v42 = vor.u32 %v2675_v34, %v2672_v32  ;;  %v7705_v60 = vld [vmem:[%s9008_s1 + $0x178] sm:$0xff]   ;;  %v7706_v63 = vld [vmem:[%s7899_s18 + $0x60] sm:$0xff]   ;;  %v6362_v32 = vld [vmem:[%s7899_s18 + $0x2c] sm:$0x1] }
  0x2e   : > { %7185 = vmatprep.subr.bf16.mxu0 %v7694_v31  ;;  %v2707_v52 = vshrl.u32 %v6288_v44, 16  ;;  %v2699_v56 = vrot.slane %v2697_v48, 5  ;;  %v2705_v57 = vrot.slane %v2703_v49, 5  ;;  %v6360_v29 = vld [vmem:[%s7899_s18 + $0x24] sm:$0xe]  ;;  %v7713_v48 = vld [vmem:[%s9008_s1 + $0x188] sm:$0xff]  }
  0x2f   : > { %6962 = vmatmul.mubr.bf16.gmra.mrb[4].mxu1 %v7692_v28  ;;  %v2634_v13 = vsel %vm7922_vm2, %v2629_v5, %v2633_v53  ;;  %v2652_v14 = vor.u32 %v2651_v7, %v2648_v6  ;;  %v2663_v27 = vrot.slane %v2662_v16, 4  ;;  %v2679_v28 = vshll.u32 %v6285_v20, 16  ;;  %v6355_v5 = vld [vmem:[%s7899_s18 + $0x10] sm:$0xf]  ;;  %v6356_v6 = vld [vmem:[%s7899_s18 + $0x14] sm:$0x1] }
  0x30   : > { %6965 = vmatprep.mubr.bf16.mxu1 %v7696_v36  ;;  %6994 = vmatpush3.bf16.msra.mxu1 %v7698_v54  ;;  %v6334_v21 = vcombine.low %v2634_v13, %v2644_v15  ;;  %v2677_v51 = vrot.slane %v2676_v42, 4  ;;  %v2713_v53 = vshll.u32 %v6289_v45, 16  ;;  %v6402_v7 = vrot.slane %v6354_v0, 9  ;;  %v7709_v13 = vld [vmem:[%s9008_s1 + $0x180] sm:$0xff]   ;;  %v6358_v20 = vld [vmem:[%s7899_s18 + $0x1c] sm:$0xf] }
  0x31   : > { %7186 = vmatpush3.bf16.msra.mxu0 %v7694_v31  ;;  %v2653_v22 = vrot.slane %v2652_v14, 4  ;;  %v2668_v35 = vsel %vm7922_vm2, %v2663_v27, %v2667_v17  ;;  %v2681_v36 = vrot.slane %v2679_v28, 5  ;;  %6995 = vmatprep.subr.bf16.mxu1 %v7703_v40  ;;  %v3393_v9 = vrot.slane %v6355_v5, 5  ;;  %v7707_v17 = vld [vmem:[%s7899_s18 + $0x6c] sm:$0xff]   ;;  %v7711_v42 = vld [vmem:[%s7899_s18 + $0x84] sm:$0xff]  }
  0x32   : > { %7154 = vmatmul.mubr.bf16.gmra.mrb[4].mxu0 %v6333_v59  ;;  %7187 = vmatprep.subr.bf16.mxu0 %v7695_v47  ;;  %v2709_v59 = vrot.slane %v2707_v52, 4  ;;  %v2715_v3 = vrot.slane %v2713_v53, 5  ;;  %v3400_v26 = vrot.slane %v6358_v20, 5  ;;  %v6404_v34 = vrot.slane %v6360_v29, 9  ;;  %v6364_v44 = vld [vmem:[%s7899_s18 + $0x34] sm:$0xf] }
  0x33   : > { %7157 = vmatprep.mubr.bf16.mxu0 %v6334_v21  ;;  %v2658_v31 = vsel %vm7922_vm2, %v2653_v22, %v2657_v11  ;;  %v2686_v46 = vor.u32 %v2685_v37, %v2681_v36  ;;  %v2682_v58 = vsel %vm7922_vm2, %v2677_v51, %v2681_v36  ;;  %v7708_v11 = vld [vmem:[%s9008_s1 + $0x60] sm:$0xff]   ;;  %v3394_v15 = vsel %vm8022_vm5, %v6402_v7, %v3393_v9  ;;  %v6369_v0 = vld [vmem:[%s7899_s18 + $0x48] sm:$0xe]  ;;  %v6370_v5 = vld [vmem:[%s7899_s18 + $0x4c] sm:$0xf] }
  0x34   : > { %v6335_v41 = vcombine.low %v2658_v31, %v2668_v35  ;;  %6996 = vmatpush3.bf16.msra.mxu1 %v7703_v40  ;;  %v2710_v2 = vor.u32 %v2709_v59, %v2705_v57  ;;  %v3395_v16 = vrot.slane %v3393_v9, 4  ;;  %v6359_v21 = vld [vmem:[%s7899_s18 + $0x20] sm:$0x1]  ;;  %v3402_v30 = vrot.slane %v3400_v26, 4  ;;  %v6361_v31 = vld [vmem:[%s7899_s18 + $0x28] sm:$0xf] }
  0x35   : > { %7188 = vmatpush3.bf16.msra.mxu0 %v7695_v47  ;;  %v2694_v47 = vshrl.u32 %v6287_v43, 16  ;;  %v2687_v54 = vrot.slane %v2686_v46, 4  ;;  %6997 = vmatprep.subr.bf16.mxu1 %v7708_v11  ;;  %v3403_v27 = vrot.slane %v6359_v21, 5  ;;  %v3407_v36 = vrot.slane %v6361_v31, 5  ;;  %v6363_v43 = vld [vmem:[%s7899_s18 + $0x30] sm:$0xe] }
  0x36   : > { %7189 = vmatprep.subr.bf16.mxu0 %v7699_v8  ;;  %v2711_v12 = vrot.slane %v2710_v2, 4  ;;  %v3410_v37 = vrot.slane %v6362_v32, 5  ;;  %v6365_v46 = vld [vmem:[%s7899_s18 + $0x38] sm:$0x1]  ;;  %v7716_v59 = vld [vmem:[%s9008_s1 + $0x70] sm:$0xff]   ;;  %v6407_v7 = vrot.slane %v6369_v0, 9 }
  0x37   : > { %6966 = vmatmul.mubr.bf16.gmra.mrb[8].mxu1 %v7697_v10  ;;  %v2696_v55 = vrot.slane %v2694_v47, 4  ;;  %v2692_v61 = vsel %vm7922_vm2, %v2687_v54, %v2691_v38  ;;  %v3396_v10 = vrot.slane %v6356_v6, 5  ;;  %v3404_v38 = vsel %vm8022_vm5, %v3402_v30, %v3403_v27  ;;  %v7714_v54 = vld [vmem:[%s7899_s18 + $0x90] sm:$0xff]   ;;  %v6375_v27 = vld [vmem:[%s7899_s18 + $0x60] sm:$0xe]  ;;  %v7721_v31 = vld [vmem:[%s9008_s1 + $0x198] sm:$0xff]  }
  0x38   : > { %6969 = vmatprep.mubr.bf16.mxu1 %v7701_v18  ;;  %v6336_v1 = vcombine.low %v2682_v58, %v2692_v61  ;;  %v6357_v18 = vld [vmem:[%s7899_s18 + $0x18] sm:$0xe]  ;;  %v2716_v19 = vsel %vm7922_vm2, %v2711_v12, %v2715_v3  ;;  %6998 = vmatpush3.bf16.msra.mxu1 %v7708_v11  ;;  %v3408_v40 = vsel %vm8022_vm5, %v6404_v34, %v3407_v36  ;;  %v3414_v47 = vrot.slane %v6364_v44, 5  ;;  %v7715_v3 = vld [vmem:[%s7899_s18 + $0x9c] sm:$0xff]   ;;  %v6371_v6 = vld [vmem:[%s7899_s18 + $0x50] sm:$0x1] }
  0x39   : > { %7190 = vmatpush3.bf16.msra.mxu0 %v7699_v8  ;;  %v2700_v62 = vor.u32 %v2699_v56, %v2696_v55  ;;  %v6403_v22 = vrot.slane %v6357_v18, 9  ;;  %v3397_v25 = vsel %vm8022_vm5, %v3395_v16, %v3396_v10  ;;  %v3417_v51 = vrot.slane %v6365_v46, 5  ;;  %v6366_v55 = vld [vmem:[%s7899_s18 + $0x3c] sm:$0xe]  ;;  %v6367_v56 = vld [vmem:[%s7899_s18 + $0x40] sm:$0xf] }
  0x3a   : > { %7191 = vmatprep.subr.bf16.mxu0 %v7700_v23  ;;  %7158 = vmatmul.mubr.bf16.gmra.mrb[8].mxu0 %v6335_v41  ;;  %v6434_v28 = vcombine.low %v3394_v15, %v3397_v25  ;;  %v3409_v41 = vrot.slane %v3407_v36, 4  ;;  %v3416_v53 = vrot.slane %v3414_v47, 4  ;;  %v6406_v58 = vrot.slane %v6366_v55, 9  ;;  %v7717_v12 = vld [vmem:[%s9008_s1 + $0x190] sm:$0xff]   ;;  %v7718_v15 = vld [vmem:[%s7899_s18 + $0xa8] sm:$0xff]  }
  0x3b   : > { %v2701_v8 = vrot.slane %v2700_v62, 4  ;;  %7161 = vmatprep.mubr.bf16.mxu0 %v6336_v1  ;;  %v3401_v35 = vsel %vm8022_vm5, %v6403_v22, %v3400_v26  ;;  %v3431_v11 = vrot.slane %v6371_v6, 5  ;;  %v6372_v16 = vld [vmem:[%s7899_s18 + $0x54] sm:$0xe]  ;;  %v6374_v18 = vld [vmem:[%s7899_s18 + $0x5c] sm:$0x1] }
  0x3c   : > { %v6435_v45 = vcombine.low %v3401_v35, %v3404_v38  ;;  %v3411_v49 = vsel %vm8022_vm5, %v3409_v41, %v3410_v37  ;;  %v3438_v21 = vrot.slane %v6374_v18, 5  ;;  %v7720_v26 = vld [vmem:[%s9008_s1 + $0x78] sm:$0xff]   ;;  %v6377_v29 = vld [vmem:[%s7899_s18 + $0x68] sm:$0x1]  ;;  %v6409_v30 = vrot.slane %v6375_v27, 9 }
  0x3d   : > { %7192 = vmatpush3.bf16.msra.mxu0 %v7700_v23  ;;  %v2706_v14 = vsel %vm7922_vm2, %v2701_v8, %v2705_v57  ;;  %v7710_v23 = vld [vmem:[%s7899_s18 + $0x78] sm:$0xff]   ;;  %v6436_v52 = vcombine.low %v3408_v40, %v3411_v49  ;;  %v6368_v57 = vld [vmem:[%s7899_s18 + $0x44] sm:$0x1]  ;;  %v3428_v8 = vrot.slane %v6370_v5, 5  ;;  %v3445_v36 = vrot.slane %v6377_v29, 5 }
  0x3e   : > { %7193 = vmatprep.subr.bf16.mxu0 %v7704_v50  ;;  %v6337_v24 = vcombine.low %v2706_v14, %v2716_v19  ;;  %v3424_v61 = vrot.slane %v6368_v57, 5  ;;  %v6408_v19 = vrot.slane %v6372_v16, 9  ;;  %v7719_v34 = vld [vmem:[%s7899_s18 + $0xb4] sm:$0xff]   ;;  %v606_v40 = vld [vmem:[%s7899_s18 + $0x4] sm:$0xf] }
  0x3f   : > { %6970 = vmatmul.mubr.bf16.gmra.mrb[12].mxu1 %v7702_v39  ;;  %v7712_v39 = vld [vmem:[%s9008_s1 + $0x68] sm:$0xff]   ;;  %v3430_v14 = vrot.slane %v3428_v8, 4  ;;  %v3429_v22 = vsel %vm8022_vm5, %v6407_v7, %v3428_v8  ;;  %v670_v49 = vshrl.u32 %v606_v40, 16  ;;  %v609_v5 = vld [vmem:[%s7899_s18 + $0x10] sm:$0xf] }
  0x40   : > { %6973 = vmatprep.mubr.bf16.mxu1 %v7706_v63  ;;  %6999 = vmatprep.subr.bf16.mxu1 %v7712_v39  ;;  %v3418_v63 = vsel %vm8022_vm5, %v3416_v53, %v3417_v51  ;;  %v607_v41 = vld [vmem:[%s7899_s18 + $0x8] sm:$0x1]  ;;  %v6378_v46 = vld [vmem:[%s7899_s18 + $0x6c] sm:$0xe]  ;;  %v6379_v51 = vld [vmem:[%s7899_s18 + $0x70] sm:$0xf] }
  0x41   : > { %7194 = vmatpush3.bf16.msra.mxu0 %v7704_v50  ;;  %v6405_v50 = vrot.slane %v6363_v43, 9  ;;  %7000 = vmatpush3.bf16.msra.mxu1 %v7712_v39  ;;  %v605_v39 = vld [vmem:[%s7899_s18] sm:$0xf]  ;;  %v3449_v57 = vrot.slane %v6379_v51, 5  ;;  %v610_v6 = vld [vmem:[%s7899_s18 + $0x14] sm:$0x1] }
  0x42   : > { %7195 = vmatprep.subr.bf16.mxu0 %v7705_v60  ;;  %7162 = vmatmul.mubr.bf16.gmra.mrb[12].mxu0 %v6337_v24  ;;  %v657_v44 = vshrl.u32 %v605_v39, 16  ;;  %v6383_v29 = vld [vmem:[%s7899_s18 + $0x80] sm:$0x1] }
  0x43   : > { %7197 = vmatprep.mubr.bf16.mxu0 %v6434_v28  ;;  %v3415_v62 = vsel %vm8022_vm5, %v6405_v50, %v3414_v47  ;;  %7001 = vmatprep.subr.bf16.mxu1 %v7716_v59  ;;  %v6376_v28 = vld [vmem:[%s7899_s18 + $0x64] sm:$0xf]  ;;  %v676_v50 = vshll.u32 %v607_v41, 16  ;;  %v612_v41 = vld [vmem:[%s7899_s18 + $0x1c] sm:$0xf] }
  0x44   : > { %v6437_v9 = vcombine.low %v3415_v62, %v3418_v63  ;;  %v3442_v35 = vrot.slane %v6376_v28, 5  ;;  %v8123_v47 = vld [vmem:[%s9008_s1 + $0x80] sm:$0xff]   ;;  %v608_v63 = vld [vmem:[%s7899_s18 + $0xc] sm:$0xf]  ;;  %v718_v51 = vshrl.u32 %v612_v41, 16 }
  0x45   : > { %7196 = vmatpush3.bf16.msra.mxu0 %v7705_v60  ;;  %v3421_v60 = vrot.slane %v6367_v56, 5  ;;  %7002 = vmatpush3.bf16.msra.mxu1 %v7716_v59  ;;  %v6380_v56 = vld [vmem:[%s7899_s18 + $0x74] sm:$0x1]  ;;  %v678_v62 = vrot.slane %v676_v50, 5  ;;  %v681_v8 = vshrl.u32 %v608_v63, 16 }
  0x46   : > { %7229 = vmatprep.subr.bf16.mxu0 %v7709_v13  ;;  %7003 = vmatprep.subr.bf16.mxu1 %v7720_v26  ;;  %v3444_v43 = vrot.slane %v3442_v35, 4 }
  0x47   : > { %6974 = vmatmul.mubr.bf16.gmra.mrb[16].mxu1 %v7707_v17  ;;  %v3422_v1 = vsel %vm8022_vm5, %v6406_v58, %v3421_v60  ;;  %v3423_v2 = vrot.slane %v3421_v60, 4  ;;  %v6373_v17 = vld [vmem:[%s7899_s18 + $0x58] sm:$0xf]  ;;  %v7723_v58 = vld [vmem:[%s9008_s1 + $0x1a0] sm:$0xff]   ;;  %v683_v18 = vrot.slane %v681_v8, 4 }
  0x48   : > { %6977 = vmatprep.mubr.bf16.mxu1 %v7710_v23  ;;  %v3435_v20 = vrot.slane %v6373_v17, 5  ;;  %v3432_v23 = vsel %vm8022_vm5, %v3430_v14, %v3431_v11  ;;  %v3446_v53 = vsel %vm8022_vm5, %v3444_v43, %v3445_v36  ;;  %v7725_v11 = vld [vmem:[%s9008_s1 + $0x1a8] sm:$0xff]   ;;  %v694_v14 = vshrl.u32 %v609_v5, 16  ;;  %v611_v36 = vld [vmem:[%s7899_s18 + $0x18] sm:$0xf] }
  0x49   : > { %v3425_v10 = vsel %vm8022_vm5, %v3423_v2, %v3424_v61  ;;  %v6439_v37 = vcombine.low %v3429_v22, %v3432_v23  ;;  %7004 = vmatpush3.bf16.msra.mxu1 %v7720_v26  ;;  %v672_v61 = vrot.slane %v670_v49, 4  ;;  %v3451_v2 = vrot.slane %v3449_v57, 4  ;;  %v6382_v26 = vld [vmem:[%s7899_s18 + $0x7c] sm:$0xf] }
  0x4a   : > { %7198 = vmatmul.mubr.bf16.vlgmr.msra.gmra.mrb[0].mxu0 %v6435_v45  ;;  %v3436_v24 = vsel %vm8022_vm5, %v6408_v19, %v3435_v20  ;;  %v3437_v25 = vrot.slane %v3435_v20, 4  ;;  %v660_v45 = vshll.u32 %v605_v39, 16  ;;  %7037 = vmatprep.subr.bf16.mxu1 %v8123_v47  ;;  %v6381_v20 = vld [vmem:[%s7899_s18 + $0x78] sm:$0xe] }
  0x4b   : > { %7230 = vmatpush3.bf16.msra.mxu0 %v7709_v13  ;;  %7201 = vmatprep.mubr.bf16.mxu0 %v6436_v52  ;;  %v6438_v13 = vcombine.low %v3422_v1, %v3425_v10  ;;  %v6410_v52 = vrot.slane %v6378_v46, 9  ;;  %v690_v10 = vshll.u32 %v609_v5, 16  ;;  %v714_v46 = vshll.u32 %v612_v41, 16 }
  0x4c   : > { %7231 = vmatprep.subr.bf16.mxu0 %v7713_v48  ;;  %v3439_v32 = vsel %vm8022_vm5, %v3437_v25, %v3438_v21  ;;  %v662_v55 = vrot.slane %v660_v45, 5  ;;  %v7727_v21 = vld [vmem:[%s9008_s1 + $0x1b0] sm:$0xff]   ;;  %v708_v45 = vshll.u32 %v611_v36, 16 }
  0x4d   : > { %v6440_v38 = vcombine.low %v3436_v24, %v3439_v32  ;;  %v3450_v1 = vsel %vm8022_vm5, %v6410_v52, %v3449_v57  ;;  %v692_v23 = vrot.slane %v690_v10, 5  ;;  %v696_v24 = vrot.slane %v694_v14, 4 }
  0x4f   : > { %6978 = vmatmul.mubr.bf16.gmra.mrb[20].mxu1 %v7711_v42  ;;  %7232 = vmatpush3.bf16.msra.mxu0 %v7713_v48  ;;  %v8117_v42 = vsel %vm8022_vm5, %v6409_v30, %v3442_v35  ;;  %v666_v48 = vshll.u32 %v606_v40, 16  ;;  %v6411_v30 = vrot.slane %v6381_v20, 9  ;;  %v3459_v35 = vrot.slane %v6383_v29, 5 }
  0x50   : > { %6981 = vmatprep.mubr.bf16.mxu1 %v7714_v54  ;;  %7233 = vmatprep.subr.bf16.mxu0 %v7717_v12  ;;  %v659_v54 = vrot.slane %v657_v44, 4  ;;  %v6441_v59 = vcombine.low %v8117_v42, %v3446_v53  ;;  %v613_v42 = vld [vmem:[%s7899_s18 + $0x20] sm:$0x1]  ;;  %v705_v44 = vshrl.u32 %v611_v36, 16  ;;  %v6385_v53 = vld [vmem:[%s7899_s18 + $0x88] sm:$0xf] }
  0x51   : > { %v668_v60 = vrot.slane %v666_v48, 5  ;;  %v6384_v48 = vld [vmem:[%s7899_s18 + $0x84] sm:$0xe]  ;;  %v724_v52 = vshll.u32 %v613_v42, 16 }
  0x52   : > { %7202 = vmatmul.mubr.bf16.gmra.mrb[4].mxu0 %v6437_v9  ;;  %v663_v0 = vor.u32 %v662_v55, %v659_v54  ;;  %v684_v9 = vshll.u32 %v608_v63, 16  ;;  %v6386_v54 = vld [vmem:[%s7899_s18 + $0x8c] sm:$0x1]  ;;  %v707_v57 = vrot.slane %v705_v44, 4  ;;  %v720_v63 = vrot.slane %v718_v51, 4 }
  0x53   : > { %7205 = vmatprep.mubr.bf16.mxu0 %v6438_v13  ;;  %7234 = vmatpush3.bf16.msra.mxu0 %v7717_v12  ;;  %v673_v7 = vor.u32 %v672_v61, %v668_v60  ;;  %v6412_v5 = vrot.slane %v6384_v48, 9  ;;  %v6391_v51 = vld [vmem:[%s7899_s18 + $0xa0] sm:$0xf] }
  0x54   : > { %7235 = vmatprep.subr.bf16.mxu0 %v7721_v31  ;;  %v664_v12 = vrot.slane %v663_v0, 4  ;;  %v686_v19 = vrot.slane %v684_v9, 5  ;;  %v726_v0 = vrot.slane %v724_v52, 5 }
  0x55   : > { %v674_v16 = vrot.slane %v673_v7, 4  ;;  %v3466_v7 = vrot.slane %v6386_v54, 5 }
  0x56   : > { %v669_v22 = vsel %vm7922_vm2, %v664_v12, %v668_v60  ;;  %v687_v28 = vor.u32 %v686_v19, %v683_v18  ;;  %v615_v60 = vld [vmem:[%s7899_s18 + $0x28] sm:$0xf]  ;;  %v7726_v12 = vld [vmem:[%s9008_s1 + $0x90] sm:$0xff]   ;;  %v8187_v18 = vld [vmem:[%s9008_s1 + $0x1c0] sm:$0xff]  }
  0x57   : > { %6982 = vmatmul.mubr.bf16.gmra.mrb[24].mxu1 %v7715_v3  ;;  %7236 = vmatpush3.bf16.msra.mxu0 %v7721_v31  ;;  %v3452_v3 = vrot.slane %v6380_v56, 5  ;;  %v679_v27 = vsel %vm7922_vm2, %v674_v16, %v678_v62  ;;  %v3456_v31 = vrot.slane %v6382_v26, 5  ;;  %v716_v62 = vrot.slane %v714_v46, 5 }
  0x58   : > { %6985 = vmatprep.mubr.bf16.mxu1 %v7718_v15  ;;  %7237 = vmatprep.subr.bf16.mxu0 %v7723_v58  ;;  %v700_v15 = vshll.u32 %v610_v6, 16  ;;  %v6114_v32 = vcombine.low %v669_v22, %v679_v27  ;;  %v3463_v6 = vrot.slane %v6385_v53, 5  ;;  %v742_v16 = vshrl.u32 %v615_v60, 16  ;;  %v6389_v27 = vld [vmem:[%s7899_s18 + $0x98] sm:$0x1] }
  0x59   : > { %v3453_v13 = vsel %vm8022_vm5, %v3451_v2, %v3452_v3  ;;  %v3457_v39 = vsel %vm8022_vm5, %v6411_v30, %v3456_v31  ;;  %v3458_v40 = vrot.slane %v3456_v31, 4  ;;  %v7724_v2 = vld [vmem:[%s9008_s1 + $0x88] sm:$0xff]   ;;  %v721_v8 = vor.u32 %v720_v63, %v716_v62 }
  0x5a   : > { %7206 = vmatmul.mubr.bf16.gmra.mrb[8].mxu0 %v6439_v37  ;;  %v6442_v17 = vcombine.low %v3450_v1, %v3453_v13  ;;  %v702_v25 = vrot.slane %v700_v15, 5  ;;  %v7729_v37 = vld [vmem:[%s9008_s1 + $0x1b8] sm:$0xff]   ;;  %v616_v1 = vld [vmem:[%s7899_s18 + $0x2c] sm:$0x1]  ;;  %v3464_v14 = vsel %vm8022_vm5, %v6412_v5, %v3463_v6  ;;  %v3465_v15 = vrot.slane %v3463_v6, 4  ;;  %v7731_v5 = vld [vmem:[%s9008_s1 + $0xa0] sm:$0xff]  }
  0x5b   : > { %7209 = vmatprep.mubr.bf16.mxu0 %v6440_v38  ;;  %7238 = vmatpush3.bf16.msra.mxu0 %v7723_v58  ;;  %v688_v38 = vrot.slane %v687_v28, 4  ;;  %v3460_v50 = vsel %vm8022_vm5, %v3458_v40, %v3459_v35  ;;  %v710_v58 = vrot.slane %v708_v45, 5  ;;  %v722_v19 = vrot.slane %v721_v8, 4  ;;  %v619_v40 = vld [vmem:[%s7899_s18 + $0x38] sm:$0x1] }
  0x5c   : > { %7239 = vmatprep.subr.bf16.mxu0 %v7725_v11  ;;  %v6443_v56 = vcombine.low %v3457_v39, %v3460_v50  ;;  %v748_v26 = vshll.u32 %v616_v1, 16  ;;  %v618_v39 = vld [vmem:[%s7899_s18 + $0x34] sm:$0xf]  ;;  %v3473_v42 = vrot.slane %v6389_v27, 5  ;;  %v6390_v45 = vld [vmem:[%s7899_s18 + $0x9c] sm:$0xe] }
  0x5d   : > { %v693_v49 = vsel %vm7922_vm2, %v688_v38, %v692_v23  ;;  %v711_v3 = vor.u32 %v710_v58, %v707_v57  ;;  %v727_v28 = vsel %vm7922_vm2, %v722_v19, %v726_v0  ;;  %v762_v50 = vshll.u32 %v618_v39, 16 }
  0x5e   : > { %v3477_v8 = vrot.slane %v6391_v51, 5 }
  0x5f   : > { %6986 = vmatmul.mubr.bf16.gmra.mrb[28].mxu1 %v7719_v34  ;;  %v697_v34 = vor.u32 %v696_v24, %v692_v23  ;;  %7240 = vmatpush3.bf16.msra.mxu0 %v7725_v11  ;;  %v738_v11 = vshll.u32 %v615_v60, 16  ;;  %v712_v13 = vrot.slane %v711_v3, 4  ;;  %v3467_v24 = vsel %vm8022_vm5, %v3465_v15, %v3466_v7  ;;  %v622_v3 = vld [vmem:[%s7899_s18 + $0x44] sm:$0x1] }
  0x60   : > { %7241 = vmatprep.subr.bf16.mxu0 %v7727_v21  ;;  %7005 = vmatprep.mubr.bf16.mxu1 %v6114_v32  ;;  %v6444_v29 = vcombine.low %v3464_v14, %v3467_v24  ;;  %v617_v32 = vld [vmem:[%s7899_s18 + $0x30] sm:$0xf]  ;;  %v772_v60 = vshll.u32 %v619_v40, 16  ;;  %v6414_v7 = vrot.slane %v6390_v45, 9  ;;  %v6393_v14 = vld [vmem:[%s7899_s18 + $0xa8] sm:$0xe] }
  0x61   : > { %v698_v43 = vrot.slane %v697_v34, 4  ;;  %v740_v22 = vrot.slane %v738_v11, 5  ;;  %v717_v23 = vsel %vm7922_vm2, %v712_v13, %v716_v62  ;;  %v7728_v34 = vld [vmem:[%s9008_s1 + $0x98] sm:$0xff]   ;;  %v756_v44 = vshll.u32 %v617_v32, 16  ;;  %v621_v62 = vld [vmem:[%s7899_s18 + $0x40] sm:$0xf] }
  0x62   : > { %7210 = vmatmul.mubr.bf16.gmra.mrb[12].mxu0 %v6441_v59  ;;  %v614_v59 = vld [vmem:[%s7899_s18 + $0x24] sm:$0xf]  ;;  %v6116_v35 = vcombine.low %v717_v23, %v727_v28  ;;  %v774_v6 = vrot.slane %v772_v60, 5  ;;  %v3478_v15 = vsel %vm8022_vm5, %v6414_v7, %v3477_v8  ;;  %v790_v19 = vshrl.u32 %v621_v62, 16  ;;  %v6395_v24 = vld [vmem:[%s7899_s18 + $0xb0] sm:$0x1] }
  0x63   : > { %7213 = vmatprep.mubr.bf16.mxu0 %v6442_v17  ;;  %v703_v55 = vsel %vm7922_vm2, %v698_v43, %v702_v25  ;;  %7242 = vmatpush3.bf16.msra.mxu0 %v7727_v21  ;;  %v729_v9 = vshrl.u32 %v614_v59, 16  ;;  %v732_v10 = vshll.u32 %v614_v59, 16  ;;  %v6387_v17 = vld [vmem:[%s7899_s18 + $0x90] sm:$0xe]  ;;  %v744_v25 = vrot.slane %v742_v16, 4  ;;  %v7743_v7 = vld [vmem:[%s9008_s1 + $0xb8] sm:$0xff]  }
  0x64   : > { %v6115_v61 = vcombine.low %v693_v49, %v703_v55  ;;  %7243 = vmatprep.subr.bf16.mxu0 %v7729_v37  ;;  %v6413_v31 = vrot.slane %v6387_v17, 9  ;;  %v753_v43 = vshrl.u32 %v617_v32, 16  ;;  %v758_v54 = vrot.slane %v756_v44, 5 }
  0x65   : > { %v731_v20 = vrot.slane %v729_v9, 4  ;;  %v734_v21 = vrot.slane %v732_v10, 5  ;;  %v745_v36 = vor.u32 %v744_v25, %v740_v22  ;;  %v766_v55 = vshrl.u32 %v618_v39, 16  ;;  %v7735_v25 = vld [vmem:[%s9008_s1 + $0xa8] sm:$0xff]  }
  0x66   : > { %v755_v53 = vrot.slane %v753_v43, 4  ;;  %v764_v59 = vrot.slane %v762_v50, 5  ;;  %v3479_v16 = vrot.slane %v3477_v8, 4  ;;  %v786_v17 = vshll.u32 %v621_v62, 16 }
  0x67   : > { %7006 = vmatmul.mubr.bf16.vlgmr.msra.gmra.mrb[0].mxu1 %v6115_v61  ;;  %7244 = vmatpush3.bf16.msra.mxu0 %v7729_v37  ;;  %v735_v30 = vor.u32 %v734_v21, %v731_v20  ;;  %v750_v37 = vrot.slane %v748_v26, 5  ;;  %v746_v46 = vrot.slane %v745_v36, 4  ;;  %v620_v61 = vld [vmem:[%s7899_s18 + $0x3c] sm:$0xf]  ;;  %v6394_v20 = vld [vmem:[%s7899_s18 + $0xac] sm:$0xf] }
  0x68   : > { %7038 = vmatpush3.bf16.msra.mxu1 %v8123_v47  ;;  %v6388_v47 = vld [vmem:[%s7899_s18 + $0x94] sm:$0xf]  ;;  %7277 = vmatprep.subr.bf16.mxu0 %v8187_v18  ;;  %v759_v1 = vor.u32 %v758_v54, %v755_v53  ;;  %v780_v13 = vshll.u32 %v620_v61, 16  ;;  %v788_v27 = vrot.slane %v786_v17, 5  ;;  %v792_v28 = vrot.slane %v790_v19, 4 }
  0x69   : > { %7039 = vmatprep.subr.bf16.mxu1 %v7724_v2  ;;  %v3470_v38 = vrot.slane %v6388_v47, 5  ;;  %v736_v41 = vrot.slane %v735_v30, 4  ;;  %7009 = vmatprep.mubr.bf16.mxu1 %v6116_v35  ;;  %v751_v57 = vsel %vm7922_vm2, %v746_v46, %v750_v37  ;;  %v623_v35 = vld [vmem:[%s7899_s18 + $0x48] sm:$0xf]  ;;  %v7739_v36 = vld [vmem:[%s9008_s1 + $0xb0] sm:$0xff]   ;;  %v3484_v40 = vrot.slane %v6394_v20, 5 }
  0x6a   : > { %7214 = vmatmul.mubr.bf16.gmra.mrb[16].mxu0 %v6443_v56  ;;  %v6392_v56 = vld [vmem:[%s7899_s18 + $0xa4] sm:$0x1]  ;;  %v760_v10 = vrot.slane %v759_v1, 4  ;;  %v782_v23 = vrot.slane %v780_v13, 5  ;;  %v3487_v44 = vrot.slane %v6395_v24, 5  ;;  %v801_v45 = vshrl.u32 %v623_v35, 16 }
  0x6b   : > { %7217 = vmatprep.mubr.bf16.mxu0 %v6444_v29  ;;  %v3471_v48 = vsel %vm8022_vm5, %v6413_v31, %v3470_v38  ;;  %v3472_v49 = vrot.slane %v3470_v38, 4  ;;  %v741_v52 = vsel %vm7922_vm2, %v736_v41, %v740_v22  ;;  %v3480_v9 = vrot.slane %v6392_v56, 5  ;;  %v624_v41 = vld [vmem:[%s7899_s18 + $0x4c] sm:$0xf]  ;;  %v6397_v53 = vld [vmem:[%s7899_s18 + $0xb8] sm:$0xf] }
  0x6c   : > { %7040 = vmatpush3.bf16.msra.mxu1 %v7724_v2  ;;  %v6117_v63 = vcombine.low %v741_v52, %v751_v57  ;;  %v768_v2 = vrot.slane %v766_v55, 4  ;;  %v765_v21 = vsel %vm7922_vm2, %v760_v10, %v764_v59  ;;  %v796_v29 = vshll.u32 %v622_v3, 16 }
  0x6d   : > { %7041 = vmatprep.subr.bf16.mxu1 %v7726_v12  ;;  %v3474_v58 = vsel %vm8022_vm5, %v3472_v49, %v3473_v42  ;;  %v3481_v26 = vsel %vm8022_vm5, %v3479_v16, %v3480_v9  ;;  %v793_v38 = vor.u32 %v792_v28, %v788_v27  ;;  %v625_v42 = vld [vmem:[%s7899_s18 + $0x50] sm:$0x1]  ;;  %v804_v46 = vshll.u32 %v623_v35, 16  ;;  %v6399_v16 = vld [vmem:[%s7899_s18 + $0xc0] sm:$0xe] }
  0x6e   : > { %v6445_v0 = vcombine.low %v3471_v48, %v3474_v58  ;;  %v769_v11 = vor.u32 %v768_v2, %v764_v59  ;;  %v6446_v31 = vcombine.low %v3478_v15, %v3481_v26  ;;  %v798_v39 = vrot.slane %v796_v29, 5  ;;  %v6396_v48 = vld [vmem:[%s7899_s18 + $0xb4] sm:$0xe]  ;;  %v6398_v58 = vld [vmem:[%s7899_s18 + $0xbc] sm:$0x1] }
  0x6f   : > { %7010 = vmatmul.mubr.bf16.gmra.mrb[4].mxu1 %v6117_v63  ;;  %v794_v49 = vrot.slane %v793_v38, 4  ;;  %v3486_v51 = vrot.slane %v3484_v40, 4  ;;  %v810_v52 = vshll.u32 %v624_v41, 16  ;;  %v803_v55 = vrot.slane %v801_v45, 4  ;;  %v626_v63 = vld [vmem:[%s7899_s18 + $0x54] sm:$0xf] }
  0x70   : > { %7042 = vmatpush3.bf16.msra.mxu1 %v7726_v12  ;;  %v777_v12 = vshrl.u32 %v620_v61, 16  ;;  %v770_v22 = vrot.slane %v769_v11, 4  ;;  %v806_v56 = vrot.slane %v804_v46, 5  ;;  %v814_v57 = vshrl.u32 %v624_v41, 16  ;;  %v6401_v26 = vld [vmem:[%s7899_s18 + $0xc8] sm:$0x1] }
  0x71   : > { %7043 = vmatprep.subr.bf16.mxu1 %v7728_v34  ;;  %v799_v59 = vsel %vm7922_vm2, %v794_v49, %v798_v39  ;;  %v3488_v60 = vsel %vm8022_vm5, %v3486_v51, %v3487_v44  ;;  %v812_v61 = vrot.slane %v810_v52, 5  ;;  %v820_v62 = vshll.u32 %v625_v42, 16  ;;  %v630_v42 = vld [vmem:[%s7899_s18 + $0x64] sm:$0xf] }
  0x72   : > { %7218 = vmatmul.mubr.bf16.gmra.mrb[20].mxu0 %v6445_v0  ;;  %v779_v47 = vrot.slane %v777_v12, 4  ;;  %v775_v30 = vsel %vm7922_vm2, %v770_v22, %v774_v6  ;;  %v627_v0 = vld [vmem:[%s7899_s18 + $0x58] sm:$0xf]  ;;  %v807_v3 = vor.u32 %v806_v56, %v803_v55  ;;  %v628_v6 = vld [vmem:[%s7899_s18 + $0x5c] sm:$0x1]  ;;  %v6416_v9 = vrot.slane %v6396_v48, 9 }
  0x73   : > { %v6118_v37 = vcombine.low %v765_v21, %v775_v30  ;;  %7221 = vmatprep.mubr.bf16.mxu0 %v6446_v31  ;;  %v822_v8 = vrot.slane %v820_v62, 5  ;;  %v3491_v10 = vrot.slane %v6397_v53, 5  ;;  %v3494_v11 = vrot.slane %v6398_v58, 5  ;;  %v6400_v22 = vld [vmem:[%s7899_s18 + $0xc4] sm:$0xf] }
  0x74   : > { %7044 = vmatpush3.bf16.msra.mxu1 %v7728_v34  ;;  %v783_v32 = vor.u32 %v782_v23, %v779_v47  ;;  %v6415_v34 = vrot.slane %v6393_v14, 9  ;;  %v808_v12 = vrot.slane %v807_v3, 4  ;;  %v825_v14 = vshrl.u32 %v626_v63, 16  ;;  %v632_v58 = vld [vmem:[%s7899_s18 + $0x6c] sm:$0xf] }
  0x75   : > { %7045 = vmatprep.subr.bf16.mxu1 %v7731_v5  ;;  %7013 = vmatprep.mubr.bf16.mxu1 %v6118_v37  ;;  %v828_v15 = vshll.u32 %v626_v63, 16  ;;  %v3492_v17 = vsel %vm8022_vm5, %v6416_v9, %v3491_v10  ;;  %v3493_v19 = vrot.slane %v3491_v10, 4  ;;  %v834_v20 = vshll.u32 %v627_v0, 16  ;;  %v629_v37 = vld [vmem:[%s7899_s18 + $0x60] sm:$0xf] }
  0x76   : > { %v784_v43 = vrot.slane %v783_v32, 4  ;;  %v3485_v50 = vsel %vm8022_vm5, %v6415_v34, %v3484_v40  ;;  %v838_v21 = vshrl.u32 %v627_v0, 16  ;;  %v813_v47 = vsel %vm7922_vm2, %v808_v12, %v812_v61  ;;  %v633_v63 = vld [vmem:[%s7899_s18 + $0x70] sm:$0xf]  ;;  %v634_v0 = vld [vmem:[%s7899_s18 + $0x74] sm:$0x1] }
  0x77   : > { %v6447_v2 = vcombine.low %v3485_v50, %v3488_v60  ;;  %v827_v24 = vrot.slane %v825_v14, 4  ;;  %v3495_v28 = vsel %vm8022_vm5, %v3493_v19, %v3494_v11  ;;  %v836_v29 = vrot.slane %v834_v20, 5 }
  0x78   : > { %7046 = vmatpush3.bf16.msra.mxu1 %v7731_v5  ;;  %v789_v54 = vsel %vm7922_vm2, %v784_v43, %v788_v27  ;;  %v816_v5 = vrot.slane %v814_v57, 4  ;;  %v8268_v27 = vld [vmem:[%s9008_s1 + $0xc0] sm:$0xff]   ;;  %v840_v30 = vrot.slane %v838_v21, 4  ;;  %v844_v31 = vshll.u32 %v628_v6, 16  ;;  %v631_v43 = vld [vmem:[%s7899_s18 + $0x68] sm:$0x1] }
  0x79   : > { %7047 = vmatprep.subr.bf16.mxu1 %v7735_v25  ;;  %v6119_v1 = vcombine.low %v789_v54, %v799_v59  ;;  %v6448_v34 = vcombine.low %v3492_v17, %v3495_v28  ;;  %v3498_v41 = vrot.slane %v6400_v22, 5  ;;  %v3501_v45 = vrot.slane %v6401_v26, 5  ;;  %v7730_v57 = vld [vmem:[%s7899_s18 + $0x18] sm:$0xff]   ;;  %v7732_v22 = vld [vmem:[%s7899_s18 + $0x24] sm:$0xff]   ;;  %v7734_v26 = vld [vmem:[%s7899_s18 + $0x30] sm:$0xff]  }
  0x7a   : > { %7222 = vmatmul.mubr.bf16.gmra.mrb[24].mxu0 %v6447_v2  ;;  %v817_v13 = vor.u32 %v816_v5, %v812_v61  ;;  %v841_v39 = vor.u32 %v840_v30, %v836_v29  ;;  %v846_v40 = vrot.slane %v844_v31, 5  ;;  %v849_v46 = vshrl.u32 %v629_v37, 16 }
  0x7b   : > { %7014 = vmatmul.mubr.bf16.gmra.mrb[8].mxu1 %v6119_v1  ;;  %7225 = vmatprep.mubr.bf16.mxu0 %v6448_v34  ;;  %v852_v48 = vshll.u32 %v629_v37, 16  ;;  %v3500_v51 = vrot.slane %v3498_v41, 4  ;;  %v858_v52 = vshll.u32 %v630_v42, 16  ;;  %v862_v56 = vshrl.u32 %v630_v42, 16  ;;  %v638_v37 = vld [vmem:[%s7899_s18 + $0x84] sm:$0xf] }
  0x7c   : > { %7048 = vmatpush3.bf16.msra.mxu1 %v7735_v25  ;;  %v818_v23 = vrot.slane %v817_v13, 4  ;;  %v830_v25 = vrot.slane %v828_v15, 5  ;;  %v842_v49 = vrot.slane %v841_v39, 4  ;;  %v851_v54 = vrot.slane %v849_v46, 4 }
  0x7d   : > { %7049 = vmatprep.subr.bf16.mxu1 %v7739_v36  ;;  %v854_v55 = vrot.slane %v852_v48, 5  ;;  %v3502_v60 = vsel %vm8022_vm5, %v3500_v51, %v3501_v45  ;;  %v860_v61 = vrot.slane %v858_v52, 5  ;;  %v868_v62 = vshll.u32 %v631_v43, 16  ;;  %v639_v43 = vld [vmem:[%s7899_s18 + $0x88] sm:$0xf] }
  0x7e   : > { %v823_v32 = vsel %vm7922_vm2, %v818_v23, %v822_v8  ;;  %v831_v35 = vor.u32 %v830_v25, %v827_v24  ;;  %v847_v59 = vsel %vm7922_vm2, %v842_v49, %v846_v40  ;;  %v864_v5 = vrot.slane %v862_v56, 4  ;;  %v635_v23 = vld [vmem:[%s7899_s18 + $0x78] sm:$0xf]  ;;  %v636_v24 = vld [vmem:[%s7899_s18 + $0x7c] sm:$0xf] }
  0x7f   : > { %v6120_v38 = vcombine.low %v813_v47, %v823_v32  ;;  %v855_v3 = vor.u32 %v854_v55, %v851_v54  ;;  %v870_v6 = vrot.slane %v868_v62, 5  ;;  %v876_v8 = vshll.u32 %v632_v58, 16  ;;  %v637_v25 = vld [vmem:[%s7899_s18 + $0x80] sm:$0x1]  ;;  %v640_v48 = vld [vmem:[%s7899_s18 + $0x8c] sm:$0x1] }
  0x80   : > { %7050 = vmatpush3.bf16.msra.mxu1 %v7739_v36  ;;  %v6417_v36 = vrot.slane %v6399_v16, 9  ;;  %v832_v44 = vrot.slane %v831_v35, 4  ;;  %v882_v9 = vshll.u32 %v633_v63, 16  ;;  %v865_v11 = vor.u32 %v864_v5, %v860_v61  ;;  %v7741_v54 = vld [vmem:[%s9008_s1 + $0x1d0] sm:$0xff]  }
  0x81   : > { %7051 = vmatprep.subr.bf16.mxu1 %v7743_v7  ;;  %7017 = vmatprep.mubr.bf16.mxu1 %v6120_v38  ;;  %v856_v10 = vrot.slane %v855_v3, 4  ;;  %v886_v12 = vshrl.u32 %v633_v63, 16  ;;  %v892_v13 = vshll.u32 %v634_v0, 16  ;;  %v878_v15 = vrot.slane %v876_v8, 5  ;;  %v7737_v38 = vld [vmem:[%s9008_s1 + $0x1c8] sm:$0xff]   ;;  %v7736_v63 = vld [vmem:[%s7899_s18 + $0x3c] sm:$0xff]  }
  0x82   : > { %v3499_v50 = vsel %vm8022_vm5, %v6417_v36, %v3498_v41  ;;  %v837_v53 = vsel %vm7922_vm2, %v832_v44, %v836_v29  ;;  %v884_v16 = vrot.slane %v882_v9, 5  ;;  %v866_v19 = vrot.slane %v865_v11, 4  ;;  %v7738_v3 = vld [vmem:[%s7899_s18 + $0x48] sm:$0xff]   ;;  %v642_v8 = vld [vmem:[%s7899_s18 + $0x94] sm:$0xf] }
  0x83   : > { %v6121_v1 = vcombine.low %v837_v53, %v847_v59  ;;  %v6449_v2 = vcombine.low %v3499_v50, %v3502_v60  ;;  %v861_v17 = vsel %vm7922_vm2, %v856_v10, %v860_v61  ;;  %v888_v20 = vrot.slane %v886_v12, 4  ;;  %v643_v9 = vld [vmem:[%s7899_s18 + $0x98] sm:$0x1] }
  0x84   : > { %7052 = vmatpush3.bf16.msra.mxu1 %v7743_v7  ;;  %v873_v7 = vshrl.u32 %v632_v58, 16  ;;  %v894_v21 = vrot.slane %v892_v13, 5  ;;  %v871_v28 = vsel %vm7922_vm2, %v866_v19, %v870_v6  ;;  %v897_v30 = vshrl.u32 %v635_v23, 16 }
  0x85   : > { %7085 = vmatprep.subr.bf16.mxu1 %v8268_v27  ;;  %7018 = vmatmul.mubr.bf16.gmra.mrb[12].mxu1 %v6121_v1  ;;  %v889_v29 = vor.u32 %v888_v20, %v884_v16  ;;  %v900_v31 = vshll.u32 %v635_v23, 16  ;;  %v6122_v32 = vcombine.low %v861_v17, %v871_v28  ;;  %v906_v35 = vshll.u32 %v636_v24, 16  ;;  %v644_v20 = vld [vmem:[%s7899_s18 + $0x9c] sm:$0xf] }
  0x86   : > { %7226 = vmatmul.mubr.bf16.gmra.mrb[28].mxu0 %v6449_v2  ;;  %v875_v14 = vrot.slane %v873_v7, 4  ;;  %v910_v36 = vshrl.u32 %v636_v24, 16  ;;  %v899_v40 = vrot.slane %v897_v30, 4  ;;  %v916_v42 = vshll.u32 %v637_v25, 16  ;;  %v641_v2 = vld [vmem:[%s7899_s18 + $0x90] sm:$0xf] }
  0x87   : > { %7245 = vmatprep.mubr.bf16.mxu0 %v7730_v57  ;;  %v890_v39 = vrot.slane %v889_v29, 4  ;;  %v902_v41 = vrot.slane %v900_v31, 5  ;;  %7021 = vmatprep.mubr.bf16.mxu1 %v6122_v32  ;;  %v908_v45 = vrot.slane %v906_v35, 5  ;;  %v921_v49 = vshrl.u32 %v638_v37, 16  ;;  %v645_v24 = vld [vmem:[%s7899_s18 + $0xa0] sm:$0xf] }
  0x88   : > { %v879_v47 = vor.u32 %v878_v15, %v875_v14  ;;  %v912_v46 = vrot.slane %v910_v36, 4  ;;  %v918_v52 = vrot.slane %v916_v42, 5  ;;  %v924_v53 = vshll.u32 %v638_v37, 16  ;;  %v7745_v14 = vld [vmem:[%s9008_s1 + $0x1d8] sm:$0xff]   ;;  %v646_v29 = vld [vmem:[%s7899_s18 + $0xa4] sm:$0x1] }
  0x89   : > { %v895_v50 = vsel %vm7922_vm2, %v890_v39, %v894_v21  ;;  %v903_v51 = vor.u32 %v902_v41, %v899_v40  ;;  %v923_v57 = vrot.slane %v921_v49, 4  ;;  %v930_v58 = vshll.u32 %v639_v43, 16  ;;  %v7749_v36 = vld [vmem:[%s9008_s1 + $0x1e0] sm:$0xff]  }
  0x8a   : > { %v880_v34 = vrot.slane %v879_v47, 4  ;;  %v913_v56 = vor.u32 %v912_v46, %v908_v45  ;;  %v926_v60 = vrot.slane %v924_v53, 5  ;;  %v934_v61 = vshrl.u32 %v639_v43, 16  ;;  %v647_v53 = vld [vmem:[%s7899_s18 + $0xa8] sm:$0xf] }
  0x8b   : > { %v904_v59 = vrot.slane %v903_v51, 4  ;;  %v940_v62 = vshll.u32 %v640_v48, 16  ;;  %v932_v1 = vrot.slane %v930_v58, 5  ;;  %v945_v11 = vshrl.u32 %v641_v2, 16  ;;  %v649_v58 = vld [vmem:[%s7899_s18 + $0xb0] sm:$0x1] }
  0x8c   : > { %v885_v44 = vsel %vm7922_vm2, %v880_v34, %v884_v16  ;;  %v914_v0 = vrot.slane %v913_v56, 4  ;;  %v927_v5 = vor.u32 %v926_v60, %v923_v57  ;;  %v936_v6 = vrot.slane %v934_v61, 4 }
  0x8d   : > { %v6123_v55 = vcombine.low %v885_v44, %v895_v50  ;;  %v942_v7 = vrot.slane %v940_v62, 5  ;;  %v948_v12 = vshll.u32 %v641_v2, 16  ;;  %v954_v13 = vshll.u32 %v642_v8, 16  ;;  %v7742_v50 = vld [vmem:[%s7899_s18 + $0x60] sm:$0xff]  }
  0x8e   : > { %7246 = vmatmul.mubr.bf16.vlgmr.msra.gmra.mrb[0].mxu0 %v7732_v22  ;;  %v919_v10 = vsel %vm7922_vm2, %v914_v0, %v918_v52  ;;  %v928_v16 = vrot.slane %v927_v5, 4  ;;  %v937_v17 = vor.u32 %v936_v6, %v932_v1  ;;  %v958_v19 = vshrl.u32 %v642_v8, 16  ;;  %v7753_v0 = vld [vmem:[%s9008_s1 + $0x1e8] sm:$0xff]   ;;  %v650_v5 = vld [vmem:[%s7899_s18 + $0xb4] sm:$0xf] }
  0x8f   : > { %7278 = vmatpush3.bf16.msra.mxu0 %v8187_v18  ;;  %7249 = vmatprep.mubr.bf16.mxu0 %v7734_v26  ;;  %v909_v18 = vsel %vm7922_vm2, %v904_v59, %v908_v45  ;;  %v947_v21 = vrot.slane %v945_v11, 4  ;;  %v950_v22 = vrot.slane %v948_v12, 5  ;;  %v956_v47 = vrot.slane %v954_v13, 5  ;;  %v7740_v45 = vld [vmem:[%s7899_s18 + $0x54] sm:$0xff]  }
  0x90   : > { %7279 = vmatprep.subr.bf16.mxu0 %v7737_v38  ;;  %7022 = vmatmul.mubr.bf16.gmra.mrb[16].mxu1 %v6123_v55  ;;  %v6124_v15 = vcombine.low %v909_v18, %v919_v10  ;;  %v964_v23 = vshll.u32 %v643_v9, 16  ;;  %v933_v25 = vsel %vm7922_vm2, %v928_v16, %v932_v1  ;;  %v938_v26 = vrot.slane %v937_v17, 4  ;;  %v651_v9 = vld [vmem:[%s7899_s18 + $0xb8] sm:$0xf]  ;;  %v652_v10 = vld [vmem:[%s7899_s18 + $0xbc] sm:$0x1] }
  0x91   : > { %v960_v28 = vrot.slane %v958_v19, 4  ;;  %v969_v30 = vshrl.u32 %v644_v20, 16  ;;  %v951_v31 = vor.u32 %v950_v22, %v947_v21  ;;  %v972_v34 = vshll.u32 %v644_v20, 16 }
  0x92   : > { %7025 = vmatprep.mubr.bf16.mxu1 %v6124_v15  ;;  %v966_v32 = vrot.slane %v964_v23, 5  ;;  %v978_v35 = vshll.u32 %v645_v24, 16  ;;  %v943_v37 = vsel %vm7922_vm2, %v938_v26, %v942_v7  ;;  %v982_v40 = vshrl.u32 %v645_v24, 16  ;;  %v7757_v15 = vld [vmem:[%s9008_s1 + $0x1f0] sm:$0xff]  }
  0x93   : > { %7280 = vmatpush3.bf16.msra.mxu0 %v7737_v38  ;;  %v961_v38 = vor.u32 %v960_v28, %v956_v47  ;;  %v971_v39 = vrot.slane %v969_v30, 4  ;;  %v6125_v41 = vcombine.low %v933_v25, %v943_v37  ;;  %v952_v42 = vrot.slane %v951_v31, 4  ;;  %v7744_v24 = vld [vmem:[%s7899_s18 + $0x6c] sm:$0xff]   ;;  %v1426_v37 = vld [vmem:[%s7899_s18] sm:$0xe] }
  0x94   : > { %7281 = vmatprep.subr.bf16.mxu0 %v7741_v54  ;;  %v974_v43 = vrot.slane %v972_v34, 5  ;;  %v980_v44 = vrot.slane %v978_v35, 5  ;;  %v984_v48 = vrot.slane %v982_v40, 4  ;;  %v988_v49 = vshll.u32 %v646_v29, 16  ;;  %v7746_v29 = vld [vmem:[%s7899_s18 + $0x78] sm:$0xff]  }
  0x95   : > { %v962_v46 = vrot.slane %v961_v38, 4  ;;  %v957_v51 = vsel %vm7922_vm2, %v952_v42, %v956_v47  ;;  %v993_v59 = vshrl.u32 %v647_v53, 16  ;;  %v996_v62 = vshll.u32 %v647_v53, 16  ;;  %v7761_v34 = vld [vmem:[%s9008_s1 + $0x1f8] sm:$0xff]   ;;  %v1427_v38 = vld [vmem:[%s7899_s18 + $0x4] sm:$0xf] }
  0x96   : > { %7250 = vmatmul.mubr.bf16.gmra.mrb[4].mxu0 %v7736_v63  ;;  %v975_v52 = vor.u32 %v974_v43, %v971_v39  ;;  %v985_v56 = vor.u32 %v984_v48, %v980_v44  ;;  %v990_v57 = vrot.slane %v988_v49, 5  ;;  %v1012_v18 = vshll.u32 %v649_v58, 16  ;;  %v1428_v39 = vld [vmem:[%s7899_s18 + $0x8] sm:$0x1]  ;;  %v1429_v48 = vld [vmem:[%s7899_s18 + $0xc] sm:$0xe] }
  0x97   : > { %7253 = vmatprep.mubr.bf16.mxu0 %v7738_v3  ;;  %7282 = vmatpush3.bf16.msra.mxu0 %v7741_v54  ;;  %v648_v54 = vld [vmem:[%s7899_s18 + $0xac] sm:$0xf]  ;;  %v967_v55 = vsel %vm7922_vm2, %v962_v46, %v966_v32  ;;  %v995_v2 = vrot.slane %v993_v59, 4  ;;  %v998_v7 = vrot.slane %v996_v62, 5  ;;  %v1020_v19 = vshll.u32 %v650_v5, 16 }
  0x98   : > { %7283 = vmatprep.subr.bf16.mxu0 %v7745_v14  ;;  %7026 = vmatmul.mubr.bf16.gmra.mrb[20].mxu1 %v6125_v41  ;;  %v6126_v60 = vcombine.low %v957_v51, %v967_v55  ;;  %v976_v61 = vrot.slane %v975_v52, 4  ;;  %v1002_v63 = vshll.u32 %v648_v54, 16  ;;  %v986_v1 = vrot.slane %v985_v56, 4  ;;  %v1430_v49 = vld [vmem:[%s7899_s18 + $0x10] sm:$0xf]  ;;  %v7748_v55 = vld [vmem:[%s7899_s18 + $0x84] sm:$0xff]  }
  0x99   : > { %v1006_v3 = vshrl.u32 %v648_v54, 16  ;;  %v1014_v13 = vrot.slane %v1012_v18, 5  ;;  %v999_v17 = vor.u32 %v998_v7, %v995_v2  ;;  %v1026_v20 = vshll.u32 %v651_v9, 16  ;;  %v1431_v53 = vld [vmem:[%s7899_s18 + $0x14] sm:$0x1]  ;;  %v8378_v56 = vld [vmem:[%s9008_s1 + $0x200] sm:$0xff]  }
  0x9a   : > { %7029 = vmatprep.mubr.bf16.mxu1 %v6126_v60  ;;  %v981_v6 = vsel %vm7922_vm2, %v976_v61, %v980_v44  ;;  %v1004_v8 = vrot.slane %v1002_v63, 5  ;;  %v991_v11 = vsel %vm7922_vm2, %v986_v1, %v990_v57  ;;  %v1030_v47 = vshrl.u32 %v651_v9, 16  ;;  %v1432_v1 = vld [vmem:[%s7899_s18 + $0x18] sm:$0xe]  ;;  %v7750_v2 = vld [vmem:[%s7899_s18 + $0x90] sm:$0xff]  }
  0x9b   : > { %7284 = vmatpush3.bf16.msra.mxu0 %v7745_v14  ;;  %v1008_v12 = vrot.slane %v1006_v3, 4  ;;  %v1017_v14 = vshrl.u32 %v650_v5, 16  ;;  %v6127_v16 = vcombine.low %v981_v6, %v991_v11  ;;  %v1036_v23 = vshll.u32 %v652_v10, 16  ;;  %v1433_v3 = vld [vmem:[%s7899_s18 + $0x1c] sm:$0xf] }
  0x9c   : > { %7285 = vmatprep.subr.bf16.mxu0 %v7749_v36  ;;  %v1000_v25 = vrot.slane %v999_v17, 4  ;;  %v1022_v26 = vrot.slane %v1020_v19, 5  ;;  %v1028_v28 = vrot.slane %v1026_v20, 5  ;;  %v1032_v31 = vrot.slane %v1030_v47, 4  ;;  %v1434_v18 = vld [vmem:[%s7899_s18 + $0x20] sm:$0x1] }
  0x9d   : > { %v1009_v21 = vor.u32 %v1008_v12, %v1004_v8  ;;  %v1019_v22 = vrot.slane %v1017_v14, 4  ;;  %v1038_v32 = vrot.slane %v1036_v23, 5  ;;  %v6138_v42 = vrot.slane %v1426_v37, 9  ;;  %v1435_v10 = vld [vmem:[%s7899_s18 + $0x24] sm:$0xe]  ;;  %v7752_v47 = vld [vmem:[%s7899_s18 + $0x9c] sm:$0xff]  }
  0x9e   : > { %7254 = vmatmul.mubr.bf16.gmra.mrb[8].mxu0 %v7740_v45  ;;  %v1005_v35 = vsel %vm7922_vm2, %v1000_v25, %v1004_v8  ;;  %v1033_v41 = vor.u32 %v1032_v31, %v1028_v28  ;;  %v1527_v43 = vrot.slane %v1427_v38, 5  ;;  %v1530_v46 = vrot.slane %v1428_v39, 5  ;;  %v1436_v11 = vld [vmem:[%s7899_s18 + $0x28] sm:$0xf]  ;;  %v1437_v12 = vld [vmem:[%s7899_s18 + $0x2c] sm:$0x1] }
  0x9f   : > { %7257 = vmatprep.mubr.bf16.mxu0 %v7742_v50  ;;  %7286 = vmatpush3.bf16.msra.mxu0 %v7749_v36  ;;  %v1010_v30 = vrot.slane %v1009_v21, 4  ;;  %v1023_v36 = vor.u32 %v1022_v26, %v1019_v22  ;;  %v6139_v54 = vrot.slane %v1429_v48, 9  ;;  %v1534_v58 = vrot.slane %v1430_v49, 5  ;;  %v7751_v22 = vld [vmem:[%s9008_s1 + $0xc8] sm:$0xff]   ;;  %v1439_v25 = vld [vmem:[%s7899_s18 + $0x34] sm:$0xf] }
  0xa0   : > { %7287 = vmatprep.subr.bf16.mxu0 %v7753_v0  ;;  %7030 = vmatmul.mubr.bf16.gmra.mrb[24].mxu1 %v6127_v16  ;;  %v1034_v50 = vrot.slane %v1033_v41, 4  ;;  %v1528_v51 = vsel %vm8022_vm5, %v6138_v42, %v1527_v43  ;;  %v1529_v52 = vrot.slane %v1527_v43, 4  ;;  %v1537_v59 = vrot.slane %v1431_v53, 5  ;;  %v1440_v26 = vld [vmem:[%s7899_s18 + $0x38] sm:$0x1]  ;;  %v7754_v31 = vld [vmem:[%s7899_s18 + $0xa8] sm:$0xff]  }
  0xa1   : > { %v1015_v40 = vsel %vm7922_vm2, %v1010_v30, %v1014_v13  ;;  %v1024_v45 = vrot.slane %v1023_v36, 4  ;;  %v6140_v5 = vrot.slane %v1432_v1, 9  ;;  %v1541_v6 = vrot.slane %v1433_v3, 5  ;;  %v1443_v36 = vld [vmem:[%s7899_s18 + $0x44] sm:$0x1]  ;;  %v7756_v48 = vld [vmem:[%s7899_s18 + $0xb4] sm:$0xff]  }
  0xa2   : > { %v6128_v44 = vcombine.low %v1005_v35, %v1015_v40  ;;  %v1039_v60 = vsel %vm7922_vm2, %v1034_v50, %v1038_v32  ;;  %v1531_v61 = vsel %vm8022_vm5, %v1529_v52, %v1530_v46  ;;  %v1544_v7 = vrot.slane %v1434_v18, 5  ;;  %v1441_v32 = vld [vmem:[%s7899_s18 + $0x3c] sm:$0xe]  ;;  %v1442_v35 = vld [vmem:[%s7899_s18 + $0x40] sm:$0xf]  ;;  %v7755_v40 = vld [vmem:[%s9008_s1 + $0xd0] sm:$0xff]  }
  0xa3   : > { %7288 = vmatpush3.bf16.msra.mxu0 %v7753_v0  ;;  %v1029_v57 = vsel %vm7922_vm2, %v1024_v45, %v1028_v28  ;;  %v6170_v63 = vcombine.low %v1528_v51, %v1531_v61  ;;  %v1536_v0 = vrot.slane %v1534_v58, 4  ;;  %v1535_v8 = vsel %vm8022_vm5, %v6139_v54, %v1534_v58  ;;  %v1445_v49 = vld [vmem:[%s7899_s18 + $0x4c] sm:$0xf]  ;;  %v1446_v50 = vld [vmem:[%s7899_s18 + $0x50] sm:$0x1]  ;;  %v7759_v52 = vld [vmem:[%s9008_s1 + $0xd8] sm:$0xff]  }
  0xa4   : > { %7289 = vmatprep.subr.bf16.mxu0 %v7757_v15  ;;  %7033 = vmatprep.mubr.bf16.mxu1 %v6128_v44  ;;  %v6129_v62 = vcombine.low %v1029_v57, %v1039_v60  ;;  %v1542_v13 = vsel %vm8022_vm5, %v6140_v5, %v1541_v6  ;;  %v1543_v14 = vrot.slane %v1541_v6, 4  ;;  %v6141_v16 = vrot.slane %v1435_v10, 9  ;;  %v1444_v44 = vld [vmem:[%s7899_s18 + $0x48] sm:$0xe]  ;;  %v1447_v57 = vld [vmem:[%s7899_s18 + $0x54] sm:$0xe] }
  0xa5   : > { %v1538_v9 = vsel %vm8022_vm5, %v1536_v0, %v1537_v59  ;;  %v1551_v21 = vrot.slane %v1437_v12, 5  ;;  %v1558_v30 = vrot.slane %v1440_v26, 5  ;;  %v1562_v39 = vrot.slane %v1442_v35, 5  ;;  %v1448_v58 = vld [vmem:[%s7899_s18 + $0x58] sm:$0xf]  ;;  %v7758_v61 = vld [vmem:[%s7899_s18 + $0xc0] sm:$0xff]  }
  0xa6   : > { %7258 = vmatmul.mubr.bf16.gmra.mrb[12].mxu0 %v7744_v24  ;;  %v6171_v17 = vcombine.low %v1535_v8, %v1538_v9  ;;  %v1545_v19 = vsel %vm8022_vm5, %v1543_v14, %v1544_v7  ;;  %v1438_v24 = vld [vmem:[%s7899_s18 + $0x30] sm:$0xe]  ;;  %v6143_v42 = vrot.slane %v1441_v32, 9  ;;  %v1565_v43 = vrot.slane %v1443_v36, 5  ;;  %v1449_v59 = vld [vmem:[%s7899_s18 + $0x5c] sm:$0x1] }
  0xa7   : > { %7261 = vmatprep.mubr.bf16.mxu0 %v7746_v29  ;;  %7290 = vmatpush3.bf16.msra.mxu0 %v7757_v15  ;;  %v1548_v15 = vrot.slane %v1436_v11, 5  ;;  %v6172_v23 = vcombine.low %v1542_v13, %v1545_v19  ;;  %v6142_v28 = vrot.slane %v1438_v24, 9  ;;  %v1555_v29 = vrot.slane %v1439_v25, 5  ;;  %v7762_v6 = vld [vmem:[%s9008_s1 + $0xe0] sm:$0xff]   ;;  %v1452_v11 = vld [vmem:[%s7899_s18 + $0x68] sm:$0x1] }
  0xa8   : > { %7291 = vmatprep.subr.bf16.mxu0 %v7761_v34  ;;  %7034 = vmatmul.mubr.bf16.gmra.mrb[28].mxu1 %v6129_v62  ;;  %v1564_v46 = vrot.slane %v1562_v39, 4  ;;  %v6144_v51 = vrot.slane %v1444_v44, 9  ;;  %v1569_v54 = vrot.slane %v1445_v49, 5  ;;  %v6145_v62 = vrot.slane %v1447_v57, 9  ;;  %v1450_v7 = vld [vmem:[%s7899_s18 + $0x60] sm:$0xe] }
  0xa9   : > { %7053 = vmatprep.mubr.bf16.mxu1 %v6170_v63  ;;  %v1550_v20 = vrot.slane %v1548_v15, 4  ;;  %v1549_v37 = vsel %vm8022_vm5, %v6141_v16, %v1548_v15  ;;  %v1576_v63 = vrot.slane %v1448_v58, 5  ;;  %v1563_v0 = vsel %vm8022_vm5, %v6143_v42, %v1562_v39  ;;  %v1451_v8 = vld [vmem:[%s7899_s18 + $0x64] sm:$0xf]  ;;  %v6530_v13 = vld [vmem:[%s7899_s18 + $0x18] sm:$0xf] }
  0xaa   : > { %v1571_v60 = vrot.slane %v1569_v54, 4  ;;  %v1566_v1 = vsel %vm8022_vm5, %v1564_v46, %v1565_v43  ;;  %v1570_v3 = vsel %vm8022_vm5, %v6144_v51, %v1569_v54  ;;  %v1583_v12 = vrot.slane %v1451_v8, 5  ;;  %v7760_v16 = vld [vmem:[%s7899_s18 + $0xcc] sm:$0xff]   ;;  %v6531_v19 = vld [vmem:[%s7899_s18 + $0x1c] sm:$0xf] }
  0xab   : > { %7292 = vmatpush3.bf16.msra.mxu0 %v7761_v34  ;;  %v1557_v34 = vrot.slane %v1555_v29, 4  ;;  %v1552_v38 = vsel %vm8022_vm5, %v1550_v20, %v1551_v21  ;;  %v1578_v5 = vrot.slane %v1576_v63, 4  ;;  %v6175_v9 = vcombine.low %v1563_v0, %v1566_v1  ;;  %v6532_v20 = vld [vmem:[%s7899_s18 + $0x20] sm:$0x1]  ;;  %v1453_v26 = vld [vmem:[%s7899_s18 + $0x6c] sm:$0xe] }
  0xac   : > { %7325 = vmatprep.subr.bf16.mxu0 %v8378_v56  ;;  %v6173_v45 = vcombine.low %v1549_v37, %v1552_v38  ;;  %v8451_v10 = vsel %vm8022_vm5, %v6145_v62, %v1576_v63  ;;  %v4392_v21 = vshrl.u32 %v6530_v13, 16  ;;  %v4395_v24 = vshll.u32 %v6530_v13, 16  ;;  %v1455_v36 = vld [vmem:[%s7899_s18 + $0x74] sm:$0x1]  ;;  %v6533_v46 = vld [vmem:[%s7899_s18 + $0x24] sm:$0xf] }
  0xad   : > { %v1559_v41 = vsel %vm8022_vm5, %v1557_v34, %v1558_v30  ;;  %v4401_v25 = vshll.u32 %v6531_v19, 16  ;;  %v4411_v30 = vshll.u32 %v6532_v20, 16  ;;  %v6147_v32 = vrot.slane %v1453_v26, 9  ;;  %v6535_v51 = vld [vmem:[%s7899_s18 + $0x2c] sm:$0x1] }
  0xae   : > { %7262 = vmatmul.mubr.bf16.gmra.mrb[16].mxu0 %v7748_v55  ;;  %v1572_v55 = vrot.slane %v1446_v50, 5  ;;  %v4397_v34 = vrot.slane %v4395_v24, 5  ;;  %v6534_v50 = vld [vmem:[%s7899_s18 + $0x28] sm:$0xf]  ;;  %v1458_v8 = vld [vmem:[%s7899_s18 + $0x80] sm:$0x1] }
  0xaf   : > { %7265 = vmatprep.mubr.bf16.mxu0 %v7750_v2  ;;  %v1579_v2 = vrot.slane %v1449_v59, 5  ;;  %v4403_v35 = vrot.slane %v4401_v25, 5  ;;  %v4413_v44 = vrot.slane %v4411_v30, 5  ;;  %v4425_v57 = vshll.u32 %v6534_v50, 16  ;;  %v6538_v20 = vld [vmem:[%s7899_s18 + $0x38] sm:$0x1] }
  0xb0   : > { %7054 = vmatmul.mubr.bf16.vlgmr.msra.gmra.mrb[0].mxu1 %v6171_v17  ;;  %v1573_v18 = vsel %vm8022_vm5, %v1571_v60, %v1572_v55  ;;  %v6146_v17 = vrot.slane %v1450_v7, 9  ;;  %v4429_v58 = vshrl.u32 %v6534_v50, 16  ;;  %v1457_v7 = vld [vmem:[%s7899_s18 + $0x7c] sm:$0xf]  ;;  %v1459_v26 = vld [vmem:[%s7899_s18 + $0x84] sm:$0xe] }
  0xb1   : > { %7086 = vmatpush3.bf16.msra.mxu1 %v8268_v27  ;;  %7057 = vmatprep.mubr.bf16.mxu1 %v6172_v23  ;;  %v1556_v27 = vsel %vm8022_vm5, %v6142_v28, %v1555_v29  ;;  %v6176_v14 = vcombine.low %v1570_v3, %v1573_v18  ;;  %v8457_v15 = vsel %vm8022_vm5, %v1578_v5, %v1579_v2  ;;  %v1586_v23 = vrot.slane %v1452_v11, 5  ;;  %v1456_v3 = vld [vmem:[%s7899_s18 + $0x78] sm:$0xe] }
  0xb2   : > { %7087 = vmatprep.subr.bf16.mxu1 %v7751_v22  ;;  %v6174_v53 = vcombine.low %v1556_v27, %v1559_v41  ;;  %v4394_v28 = vrot.slane %v4392_v21, 4  ;;  %v4405_v29 = vshrl.u32 %v6531_v19, 16  ;;  %v6177_v38 = vcombine.low %v8451_v10, %v8457_v15  ;;  %v7766_v41 = vld [vmem:[%s9008_s1 + $0xf0] sm:$0xff]   ;;  %v7768_v10 = vld [vmem:[%s9008_s1 + $0xf8] sm:$0xff]  }
  0xb3   : > { %v1584_v39 = vsel %vm8022_vm5, %v6146_v17, %v1583_v12  ;;  %v1593_v27 = vrot.slane %v1455_v36, 5  ;;  %v4427_v0 = vrot.slane %v4425_v57, 5  ;;  %v4431_v1 = vrot.slane %v4429_v58, 4  ;;  %v6536_v15 = vld [vmem:[%s7899_s18 + $0x30] sm:$0xf] }
  0xb4   : > { %v4398_v43 = vor.u32 %v4397_v34, %v4394_v28  ;;  %v4435_v2 = vshll.u32 %v6535_v51, 16  ;;  %v1600_v19 = vrot.slane %v1458_v8, 5  ;;  %v4440_v21 = vshrl.u32 %v6536_v15, 16 }
  0xb5   : > { %7088 = vmatpush3.bf16.msra.mxu1 %v7751_v22  ;;  %v7764_v22 = vld [vmem:[%s9008_s1 + $0xe8] sm:$0xff]  }
  0xb6   : > { %7266 = vmatmul.mubr.bf16.gmra.mrb[20].mxu0 %v7752_v47  ;;  %7089 = vmatprep.subr.bf16.mxu1 %v7755_v40  ;;  %v1585_v47 = vrot.slane %v1583_v12, 4  ;;  %v4399_v54 = vrot.slane %v4398_v43, 4  ;;  %v4432_v12 = vor.u32 %v4431_v1, %v4427_v0  ;;  %v4437_v13 = vrot.slane %v4435_v2, 5  ;;  %v6539_v43 = vld [vmem:[%s7899_s18 + $0x3c] sm:$0xf] }
  0xb7   : > { %7269 = vmatprep.mubr.bf16.mxu0 %v7754_v31  ;;  %v1454_v31 = vld [vmem:[%s7899_s18 + $0x70] sm:$0xf] }
  0xb8   : > { %7058 = vmatmul.mubr.bf16.gmra.mrb[4].mxu1 %v6173_v45  ;;  %v1590_v37 = vrot.slane %v1454_v31, 5  ;;  %v1587_v42 = vsel %vm8022_vm5, %v1585_v47, %v1586_v23  ;;  %v4404_v63 = vsel %vm7922_vm2, %v4399_v54, %v4403_v35  ;;  %v4433_v47 = vrot.slane %v4432_v12, 4  ;;  %v7769_v12 = vld [vmem:[%s9008_s1 + $0x218] sm:$0xff]  }
  0xb9   : > { %7061 = vmatprep.mubr.bf16.mxu1 %v6174_v53  ;;  %7090 = vmatpush3.bf16.msra.mxu1 %v7755_v40  ;;  %v4407_v40 = vrot.slane %v4405_v29, 4  ;;  %v4419_v53 = vshll.u32 %v6533_v46, 16  ;;  %v6178_v59 = vcombine.low %v1584_v39, %v1587_v42  ;;  %v4442_v29 = vrot.slane %v4440_v21, 4 }
  0xba   : > { %7091 = vmatprep.subr.bf16.mxu1 %v7759_v52  ;;  %v1592_v45 = vrot.slane %v1590_v37, 4  ;;  %v8480_v49 = vsel %vm8022_vm5, %v6147_v32, %v1590_v37  ;;  %v1460_v32 = vld [vmem:[%s7899_s18 + $0x88] sm:$0xf]  ;;  %v4438_v34 = vsel %vm7922_vm2, %v4433_v47, %v4437_v13  ;;  %v4459_v37 = vshll.u32 %v6538_v20, 16 }
  0xbb   : > { %v4421_v62 = vrot.slane %v4419_v53, 5  ;;  %v4464_v53 = vshrl.u32 %v6539_v43, 16  ;;  %v4467_v54 = vshll.u32 %v6539_v43, 16 }
  0xbc   : > { %v8486_v55 = vsel %vm8022_vm5, %v1592_v45, %v1593_v27  ;;  %v6149_v45 = vrot.slane %v1459_v26, 9 }
  0xbd   : > { %7092 = vmatpush3.bf16.msra.mxu1 %v7759_v52  ;;  %v4416_v52 = vshrl.u32 %v6533_v46, 16  ;;  %v6179_v5 = vcombine.low %v8480_v49, %v8486_v55  ;;  %v1604_v46 = vrot.slane %v1460_v32, 5  ;;  %v6540_v49 = vld [vmem:[%s7899_s18 + $0x40] sm:$0xf] }
  0xbe   : > { %7270 = vmatmul.mubr.bf16.gmra.mrb[24].mxu0 %v7756_v48  ;;  %7093 = vmatprep.subr.bf16.mxu1 %v7762_v6  ;;  %v4408_v48 = vor.u32 %v4407_v40, %v4403_v35  ;;  %v4473_v58 = vshll.u32 %v6540_v49, 16 }
  0xbf   : > { %7273 = vmatprep.mubr.bf16.mxu0 %v7758_v61  ;;  %v4418_v61 = vrot.slane %v4416_v52, 4  ;;  %v6541_v52 = vld [vmem:[%s7899_s18 + $0x44] sm:$0x1]  ;;  %v1605_v55 = vsel %vm8022_vm5, %v6149_v45, %v1604_v46  ;;  %v1606_v57 = vrot.slane %v1604_v46, 4 }
  0xc0   : > { %7062 = vmatmul.mubr.bf16.gmra.mrb[8].mxu1 %v6175_v9  ;;  %v4409_v60 = vrot.slane %v4408_v48, 4  ;;  %v6148_v9 = vrot.slane %v1456_v3, 9  ;;  %v4475_v2 = vrot.slane %v4473_v58, 5  ;;  %v7772_v45 = vld [vmem:[%s9008_s1 + $0x220] sm:$0xff]  }
  0xc1   : > { %7065 = vmatprep.mubr.bf16.mxu1 %v6176_v14  ;;  %7094 = vmatpush3.bf16.msra.mxu1 %v7762_v6  ;;  %v4422_v6 = vor.u32 %v4421_v62, %v4418_v61  ;;  %v1597_v14 = vrot.slane %v1457_v7, 5  ;;  %v4466_v62 = vrot.slane %v4464_v53, 4 }
  0xc2   : > { %7095 = vmatprep.subr.bf16.mxu1 %v7764_v22  ;;  %v4414_v18 = vsel %vm7922_vm2, %v4409_v60, %v4413_v44  ;;  %v4461_v44 = vrot.slane %v4459_v37, 5  ;;  %v8526_v60 = vld [vmem:[%s9008_s1 + $0x100] sm:$0xff]  }
  0xc3   : > { %v6594_v11 = vcombine.low %v4404_v63, %v4414_v18  ;;  %v4423_v17 = vrot.slane %v4422_v6, 4  ;;  %v1598_v23 = vsel %vm8022_vm5, %v6148_v9, %v1597_v14  ;;  %v1599_v24 = vrot.slane %v1597_v14, 4  ;;  %v1463_v9 = vld [vmem:[%s7899_s18 + $0x94] sm:$0xf] }
  0xc4   : > { %v4469_v63 = vrot.slane %v4467_v54, 5  ;;  %v4483_v18 = vshll.u32 %v6541_v52, 16  ;;  %v6547_v54 = vld [vmem:[%s7899_s18 + $0x5c] sm:$0x1] }
  0xc5   : > { %7096 = vmatpush3.bf16.msra.mxu1 %v7764_v22  ;;  %v4443_v22 = vshll.u32 %v6536_v15, 16  ;;  %v4428_v28 = vsel %vm7922_vm2, %v4423_v17, %v4427_v0  ;;  %v1601_v35 = vsel %vm8022_vm5, %v1599_v24, %v1600_v19  ;;  %v7767_v0 = vld [vmem:[%s9008_s1 + $0x210] sm:$0xff]   ;;  %v6542_v17 = vld [vmem:[%s7899_s18 + $0x48] sm:$0xf]  ;;  %v6543_v19 = vld [vmem:[%s7899_s18 + $0x4c] sm:$0xf] }
  0xc6   : > { %7274 = vmatmul.mubr.bf16.gmra.mrb[28].mxu0 %v7760_v16  ;;  %7097 = vmatprep.subr.bf16.mxu1 %v7766_v41  ;;  %v6537_v16 = vld [vmem:[%s7899_s18 + $0x34] sm:$0xf]  ;;  %v6595_v39 = vcombine.low %v4428_v28, %v4438_v34  ;;  %v6180_v40 = vcombine.low %v1598_v23, %v1601_v35  ;;  %v4470_v8 = vor.u32 %v4469_v63, %v4466_v62  ;;  %v4485_v15 = vrot.slane %v4483_v18, 5  ;;  %v1466_v35 = vld [vmem:[%s7899_s18 + $0xa0] sm:$0xf] }
  0xc7   : > { %7293 = vmatprep.mubr.bf16.mxu0 %v6594_v11  ;;  %v4449_v25 = vshll.u32 %v6537_v16, 16  ;;  %v4445_v30 = vrot.slane %v4443_v22, 5  ;;  %v4453_v31 = vshrl.u32 %v6537_v16, 16  ;;  %v1611_v16 = vrot.slane %v1463_v9, 5  ;;  %v6544_v22 = vld [vmem:[%s7899_s18 + $0x50] sm:$0x1] }
  0xc8   : > { %7066 = vmatmul.mubr.bf16.gmra.mrb[12].mxu1 %v6177_v38  ;;  %v1461_v38 = vld [vmem:[%s7899_s18 + $0x8c] sm:$0x1]  ;;  %v4471_v20 = vrot.slane %v4470_v8, 4  ;;  %v4488_v47 = vshrl.u32 %v6542_v17, 16  ;;  %v4491_v23 = vshll.u32 %v6542_v17, 16  ;;  %v4497_v28 = vshll.u32 %v6543_v19, 16 }
  0xc9   : > { %7069 = vmatprep.mubr.bf16.mxu1 %v6178_v59  ;;  %7098 = vmatpush3.bf16.msra.mxu1 %v7766_v41  ;;  %v4451_v36 = vrot.slane %v4449_v25, 5  ;;  %v4446_v27 = vor.u32 %v4445_v30, %v4442_v29  ;;  %v4455_v42 = vrot.slane %v4453_v31, 4  ;;  %v7765_v41 = vld [vmem:[%s9008_s1 + $0x208] sm:$0xff]   ;;  %v1607_v48 = vrot.slane %v1461_v38, 5  ;;  %v1465_v29 = vld [vmem:[%s7899_s18 + $0x9c] sm:$0xe] }
  0xca   : > { %7099 = vmatprep.subr.bf16.mxu1 %v7768_v10  ;;  %v4477_v59 = vshrl.u32 %v6540_v49, 16  ;;  %v1613_v26 = vrot.slane %v1611_v16, 4  ;;  %v4476_v30 = vsel %vm7922_vm2, %v4471_v20, %v4475_v2  ;;  %v4490_v31 = vrot.slane %v4488_v47, 4  ;;  %v6548_v20 = vld [vmem:[%s7899_s18 + $0x60] sm:$0xf] }
  0xcb   : > { %v4447_v50 = vrot.slane %v4446_v27, 4  ;;  %v4456_v51 = vor.u32 %v4455_v42, %v4451_v36  ;;  %v1608_v1 = vsel %vm8022_vm5, %v1606_v57, %v1607_v48  ;;  %v4493_v32 = vrot.slane %v4491_v23, 5  ;;  %v6550_v23 = vld [vmem:[%s7899_s18 + $0x68] sm:$0x1] }
  0xcc   : > { %v4479_v3 = vrot.slane %v4477_v59, 4  ;;  %v6181_v7 = vcombine.low %v1605_v55, %v1608_v1  ;;  %v4501_v34 = vshrl.u32 %v6543_v19, 16  ;;  %v4499_v38 = vrot.slane %v4497_v28, 5 }
  0xcd   : > { %7100 = vmatpush3.bf16.msra.mxu1 %v7768_v10  ;;  %v4452_v61 = vsel %vm7922_vm2, %v4447_v50, %v4451_v36  ;;  %v1464_v10 = vld [vmem:[%s7899_s18 + $0x98] sm:$0x1]  ;;  %v4494_v43 = vor.u32 %v4493_v32, %v4490_v31  ;;  %v6151_v48 = vrot.slane %v1465_v29, 9  ;;  %v1618_v49 = vrot.slane %v1466_v35, 5  ;;  %v1471_v31 = vld [vmem:[%s7899_s18 + $0xb4] sm:$0xe] }
  0xce   : > { %7294 = vmatmul.mubr.bf16.vlgmr.msra.gmra.mrb[0].mxu0 %v6595_v39  ;;  %7373 = vmatprep.subr.bf16.mxu1 %v8526_v60  ;;  %v4480_v14 = vor.u32 %v4479_v3, %v4475_v2  ;;  %v1614_v21 = vrot.slane %v1464_v10, 5  ;;  %v4507_v39 = vshll.u32 %v6544_v22, 16  ;;  %v7775_v2 = vld [vmem:[%s9008_s1 + $0x228] sm:$0xff]  }
  0xcf   : > { %7326 = vmatpush3.bf16.msra.mxu0 %v8378_v56  ;;  %v4457_v56 = vrot.slane %v4456_v51, 4  ;;  %v6546_v51 = vld [vmem:[%s7899_s18 + $0x58] sm:$0xf]  ;;  %v4495_v52 = vrot.slane %v4494_v43, 4  ;;  %v1619_v58 = vsel %vm8022_vm5, %v6151_v48, %v1618_v49  ;;  %v1620_v59 = vrot.slane %v1618_v49, 4 }
  0xd0   : > { %7070 = vmatmul.mubr.bf16.gmra.mrb[16].mxu1 %v6179_v5  ;;  %7327 = vmatprep.subr.bf16.mxu0 %v7765_v41  ;;  %v1462_v5 = vld [vmem:[%s7899_s18 + $0x90] sm:$0xe]  ;;  %v4481_v24 = vrot.slane %v4480_v14, 4  ;;  %v1615_v37 = vsel %vm8022_vm5, %v1613_v26, %v1614_v21  ;;  %v4509_v46 = vrot.slane %v4507_v39, 5  ;;  %v6549_v21 = vld [vmem:[%s7899_s18 + $0x64] sm:$0xf] }
  0xd1   : > { %7073 = vmatprep.mubr.bf16.mxu1 %v6180_v40  ;;  %v4462_v6 = vsel %vm7922_vm2, %v4457_v56, %v4461_v44  ;;  %v6150_v11 = vrot.slane %v1462_v5, 9  ;;  %v1467_v40 = vld [vmem:[%s7899_s18 + $0xa4] sm:$0x1]  ;;  %v6545_v44 = vld [vmem:[%s7899_s18 + $0x54] sm:$0xf]  ;;  %v4525_v56 = vshrl.u32 %v6546_v51, 16  ;;  %v4500_v62 = vsel %vm7922_vm2, %v4495_v52, %v4499_v38 }
  0xd2   : > { %v6596_v13 = vcombine.low %v4452_v61, %v4462_v6  ;;  %v4486_v36 = vsel %vm7922_vm2, %v4481_v24, %v4485_v15  ;;  %v1621_v50 = vrot.slane %v1467_v40, 5  ;;  %v4512_v55 = vshrl.u32 %v6545_v44, 16  ;;  %v7778_v14 = vld [vmem:[%s9008_s1 + $0x230] sm:$0xff]   ;;  %v7781_v48 = vld [vmem:[%s9008_s1 + $0x238] sm:$0xff]  }
  0xd3   : > { %7328 = vmatpush3.bf16.msra.mxu0 %v7765_v41  ;;  %v1612_v25 = vsel %vm8022_vm5, %v6150_v11, %v1611_v16  ;;  %v6597_v27 = vcombine.low %v4476_v30, %v4486_v36  ;;  %v4503_v41 = vrot.slane %v4501_v34, 4  ;;  %v4515_v57 = vshll.u32 %v6545_v44, 16  ;;  %v1469_v11 = vld [vmem:[%s7899_s18 + $0xac] sm:$0xf] }
  0xd4   : > { %7329 = vmatprep.subr.bf16.mxu0 %v7767_v0  ;;  %7297 = vmatprep.mubr.bf16.mxu0 %v6596_v13  ;;  %v6182_v42 = vcombine.low %v1612_v25, %v1615_v37  ;;  %v4521_v61 = vshll.u32 %v6546_v51, 16  ;;  %v1622_v3 = vsel %vm8022_vm5, %v1620_v59, %v1621_v50  ;;  %v4527_v5 = vrot.slane %v4525_v56, 4  ;;  %v1472_v37 = vld [vmem:[%s7899_s18 + $0xb8] sm:$0xf] }
  0xd5   : > { %v4504_v53 = vor.u32 %v4503_v41, %v4499_v38  ;;  %v4517_v1 = vrot.slane %v4515_v57, 5  ;;  %v4531_v6 = vshll.u32 %v6547_v54, 16  ;;  %v6183_v9 = vcombine.low %v1619_v58, %v1622_v3  ;;  %v6553_v57 = vld [vmem:[%s7899_s18 + $0x74] sm:$0x1] }
  0xd6   : > { %7298 = vmatmul.mubr.bf16.gmra.mrb[4].mxu0 %v6597_v27  ;;  %v4523_v18 = vrot.slane %v4521_v61, 5  ;;  %v1625_v19 = vrot.slane %v1469_v11, 5  ;;  %v4536_v24 = vshrl.u32 %v6548_v20, 16  ;;  %v4539_v25 = vshll.u32 %v6548_v20, 16 }
  0xd7   : > { %7330 = vmatpush3.bf16.msra.mxu0 %v7767_v0  ;;  %v4505_v63 = vrot.slane %v4504_v53, 4  ;;  %v4514_v0 = vrot.slane %v4512_v55, 4  ;;  %v4533_v17 = vrot.slane %v4531_v6, 5  ;;  %v4545_v30 = vshll.u32 %v6549_v21, 16  ;;  %v6552_v53 = vld [vmem:[%s7899_s18 + $0x70] sm:$0xf] }
  0xd8   : > { %7074 = vmatmul.mubr.bf16.gmra.mrb[20].mxu1 %v6181_v7  ;;  %7331 = vmatprep.subr.bf16.mxu0 %v7769_v12  ;;  %v1468_v7 = vld [vmem:[%s7899_s18 + $0xa8] sm:$0xe]  ;;  %v4528_v16 = vor.u32 %v4527_v5, %v4523_v18  ;;  %v1627_v29 = vrot.slane %v1625_v19, 4  ;;  %v4538_v34 = vrot.slane %v4536_v24, 4  ;;  %v4541_v35 = vrot.slane %v4539_v25, 5 }
  0xd9   : > { %7077 = vmatprep.mubr.bf16.mxu1 %v6182_v42  ;;  %v4510_v8 = vsel %vm7922_vm2, %v4505_v63, %v4509_v46  ;;  %v4518_v10 = vor.u32 %v4517_v1, %v4514_v0  ;;  %v6152_v13 = vrot.slane %v1468_v7, 9  ;;  %v4549_v36 = vshrl.u32 %v6549_v21, 16  ;;  %v1473_v42 = vld [vmem:[%s7899_s18 + $0xbc] sm:$0x1]  ;;  %v6551_v46 = vld [vmem:[%s7899_s18 + $0x6c] sm:$0xf] }
  0xda   : > { %v6598_v15 = vcombine.low %v4500_v62, %v4510_v8  ;;  %v4529_v26 = vrot.slane %v4528_v16, 4  ;;  %v4547_v40 = vrot.slane %v4545_v30, 5  ;;  %v4555_v27 = vshll.u32 %v6550_v23, 16  ;;  %v7770_v8 = vld [vmem:[%s7899_s18 + $0xc] sm:$0xff]  }
  0xdb   : > { %7332 = vmatpush3.bf16.msra.mxu0 %v7769_v12  ;;  %v1470_v12 = vld [vmem:[%s7899_s18 + $0xb0] sm:$0x1]  ;;  %v4519_v22 = vrot.slane %v4518_v10, 4  ;;  %v1626_v28 = vsel %vm8022_vm5, %v6152_v13, %v1625_v19  ;;  %v4542_v44 = vor.u32 %v4541_v35, %v4538_v34  ;;  %v6153_v50 = vrot.slane %v1471_v31, 9  ;;  %v6555_v13 = vld [vmem:[%s7899_s18 + $0x7c] sm:$0xf] }
  0xdc   : > { %7333 = vmatprep.subr.bf16.mxu0 %v7772_v45  ;;  %v1628_v47 = vrot.slane %v1470_v12, 5  ;;  %7301 = vmatprep.mubr.bf16.mxu0 %v6598_v15  ;;  %v4534_v38 = vsel %vm7922_vm2, %v4529_v26, %v4533_v17  ;;  %v4557_v49 = vrot.slane %v4555_v27, 5  ;;  %v1632_v51 = vrot.slane %v1472_v37, 5  ;;  %v6554_v12 = vld [vmem:[%s7899_s18 + $0x78] sm:$0xf] }
  0xdd   : > { %v4524_v32 = vsel %vm7922_vm2, %v4519_v22, %v4523_v18  ;;  %v1635_v52 = vrot.slane %v1473_v42, 5  ;;  %v4543_v54 = vrot.slane %v4542_v44, 4  ;;  %v4560_v58 = vshrl.u32 %v6551_v46, 16  ;;  %v6556_v17 = vld [vmem:[%s7899_s18 + $0x80] sm:$0x1] }
  0xde   : > { %v1629_v39 = vsel %vm8022_vm5, %v1627_v29, %v1628_v47  ;;  %v6599_v43 = vcombine.low %v4524_v32, %v4534_v38  ;;  %v4563_v59 = vshll.u32 %v6551_v46, 16  ;;  %v1633_v61 = vsel %vm8022_vm5, %v6153_v50, %v1632_v51  ;;  %v6557_v26 = vld [vmem:[%s7899_s18 + $0x84] sm:$0xf]  ;;  %v6558_v32 = vld [vmem:[%s7899_s18 + $0x88] sm:$0xf] }
  0xdf   : > { %7334 = vmatpush3.bf16.msra.mxu0 %v7772_v45  ;;  %v6184_v41 = vcombine.low %v1626_v28, %v1629_v39  ;;  %v4551_v45 = vrot.slane %v4549_v36, 4  ;;  %v1634_v56 = vrot.slane %v1632_v51, 4  ;;  %v4569_v62 = vshll.u32 %v6552_v53, 16  ;;  %v7771_v36 = vld [vmem:[%s7899_s18 + $0x18] sm:$0xff]   ;;  %v6559_v37 = vld [vmem:[%s7899_s18 + $0x8c] sm:$0x1] }
  0xe0   : > { %7078 = vmatmul.mubr.bf16.gmra.mrb[24].mxu1 %v6183_v9  ;;  %7335 = vmatprep.subr.bf16.mxu0 %v7775_v2  ;;  %v4573_v63 = vshrl.u32 %v6552_v53, 16  ;;  %v4548_v0 = vsel %vm7922_vm2, %v4543_v54, %v4547_v40  ;;  %v4565_v3 = vrot.slane %v4563_v59, 5  ;;  %v4579_v7 = vshll.u32 %v6553_v57, 16  ;;  %v6561_v57 = vld [vmem:[%s7899_s18 + $0x94] sm:$0xf] }
  0xe1   : > { %7302 = vmatmul.mubr.bf16.gmra.mrb[8].mxu0 %v6599_v43  ;;  %7081 = vmatprep.mubr.bf16.mxu1 %v6184_v41  ;;  %v4552_v55 = vor.u32 %v4551_v45, %v4547_v40  ;;  %v1636_v18 = vsel %vm8022_vm5, %v1634_v56, %v1635_v52  ;;  %v4571_v5 = vrot.slane %v4569_v62, 5  ;;  %v4584_v19 = vshrl.u32 %v6554_v12, 16  ;;  %v7773_v41 = vld [vmem:[%s7899_s18 + $0x24] sm:$0xff]  }
  0xe2   : > { %v4575_v6 = vrot.slane %v4573_v63, 4  ;;  %v6185_v10 = vcombine.low %v1633_v61, %v1636_v18  ;;  %v4581_v16 = vrot.slane %v4579_v7, 5  ;;  %v4587_v21 = vshll.u32 %v6554_v12, 16  ;;  %v6562_v61 = vld [vmem:[%s7899_s18 + $0x98] sm:$0x1] }
  0xe3   : > { %7336 = vmatpush3.bf16.msra.mxu0 %v7775_v2  ;;  %v4553_v1 = vrot.slane %v4552_v55, 4  ;;  %v4562_v2 = vrot.slane %v4560_v58, 4  ;;  %v4593_v22 = vshll.u32 %v6555_v13, 16  ;;  %v4597_v47 = vshrl.u32 %v6555_v13, 16  ;;  %v6560_v55 = vld [vmem:[%s7899_s18 + $0x90] sm:$0xf] }
  0xe4   : > { %7337 = vmatprep.subr.bf16.mxu0 %v7778_v14  ;;  %v4576_v15 = vor.u32 %v4575_v6, %v4571_v5  ;;  %v4586_v24 = vrot.slane %v4584_v19, 4  ;;  %v4603_v25 = vshll.u32 %v6556_v17, 16  ;;  %v4589_v29 = vrot.slane %v4587_v21, 5  ;;  %v6565_v12 = vld [vmem:[%s7899_s18 + $0xa4] sm:$0x1]  ;;  %v7774_v17 = vld [vmem:[%s7899_s18 + $0x30] sm:$0xff]  }
  0xe5   : > { %v4558_v9 = vsel %vm7922_vm2, %v4553_v1, %v4557_v49  ;;  %v4566_v11 = vor.u32 %v4565_v3, %v4562_v2  ;;  %v4595_v30 = vrot.slane %v4593_v22, 5  ;;  %v4599_v31 = vrot.slane %v4597_v47, 4  ;;  %v6563_v3 = vld [vmem:[%s7899_s18 + $0x9c] sm:$0xf] }
  0xe6   : > { %v4577_v23 = vrot.slane %v4576_v15, 4  ;;  %v4605_v35 = vrot.slane %v4603_v25, 5  ;;  %v4608_v38 = vshrl.u32 %v6557_v26, 16  ;;  %v4611_v39 = vshll.u32 %v6557_v26, 16 }
  0xe7   : > { %7338 = vmatpush3.bf16.msra.mxu0 %v7778_v14  ;;  %v6600_v14 = vcombine.low %v4548_v0, %v4558_v9  ;;  %v4567_v20 = vrot.slane %v4566_v11, 4  ;;  %v4590_v27 = vor.u32 %v4589_v29, %v4586_v24  ;;  %v4600_v42 = vor.u32 %v4599_v31, %v4595_v30  ;;  %v6564_v9 = vld [vmem:[%s7899_s18 + $0xa0] sm:$0xf]  ;;  %v7792_v29 = vld [vmem:[%s9008_s1 + $0x110] sm:$0xff]  }
  0xe8   : > { %7339 = vmatprep.subr.bf16.mxu0 %v7781_v48  ;;  %7082 = vmatmul.mubr.bf16.gmra.mrb[28].mxu1 %v6185_v10  ;;  %v4582_v34 = vsel %vm7922_vm2, %v4577_v23, %v4581_v16  ;;  %v4617_v43 = vshll.u32 %v6558_v32, 16  ;;  %v4610_v44 = vrot.slane %v4608_v38, 4  ;;  %v4613_v45 = vrot.slane %v4611_v39, 5  ;;  %v7776_v23 = vld [vmem:[%s7899_s18 + $0x3c] sm:$0xff]   ;;  %v6567_v38 = vld [vmem:[%s7899_s18 + $0xac] sm:$0xf] }
  0xe9   : > { %7305 = vmatprep.mubr.bf16.mxu0 %v6600_v14  ;;  %7101 = vmatprep.mubr.bf16.mxu1 %v7770_v8  ;;  %v4572_v28 = vsel %vm7922_vm2, %v4567_v20, %v4571_v5  ;;  %v4621_v46 = vshrl.u32 %v6558_v32, 16  ;;  %v4591_v49 = vrot.slane %v4590_v27, 4  ;;  %v4601_v50 = vrot.slane %v4600_v42, 4  ;;  %v7791_v8 = vld [vmem:[%s9008_s1 + $0x108] sm:$0xff]   ;;  %v6568_v39 = vld [vmem:[%s7899_s18 + $0xb0] sm:$0x1] }
  0xea   : > { %v6601_v40 = vcombine.low %v4572_v28, %v4582_v34  ;;  %v4619_v51 = vrot.slane %v4617_v43, 5  ;;  %v4614_v52 = vor.u32 %v4613_v45, %v4610_v44  ;;  %v4632_v56 = vshrl.u32 %v6560_v55, 16  ;;  %v6566_v34 = vld [vmem:[%s7899_s18 + $0xa8] sm:$0xf] }
  0xeb   : > { %7340 = vmatpush3.bf16.msra.mxu0 %v7781_v48  ;;  %v4627_v48 = vshll.u32 %v6559_v37, 16  ;;  %v4623_v53 = vrot.slane %v4621_v46, 4  ;;  %v4596_v58 = vsel %vm7922_vm2, %v4591_v49, %v4595_v30  ;;  %v4606_v59 = vsel %vm7922_vm2, %v4601_v50, %v4605_v35  ;;  %v7777_v49 = vld [vmem:[%s7899_s18 + $0x48] sm:$0xff]   ;;  %v7793_v50 = vld [vmem:[%s9008_s1 + $0x118] sm:$0xff]  }
  0xec   : > { %7306 = vmatmul.mubr.bf16.gmra.mrb[12].mxu0 %v6601_v40  ;;  %v4635_v62 = vshll.u32 %v6560_v55, 16  ;;  %v6602_v63 = vcombine.low %v4596_v58, %v4606_v59  ;;  %v4615_v0 = vrot.slane %v4614_v52, 4  ;;  %v4641_v2 = vshll.u32 %v6561_v57, 16  ;;  %v6569_v55 = vld [vmem:[%s7899_s18 + $0xb4] sm:$0xf] }
  0xed   : > { %v4629_v54 = vrot.slane %v4627_v48, 5  ;;  %v4624_v1 = vor.u32 %v4623_v53, %v4619_v51  ;;  %v4634_v18 = vrot.slane %v4632_v56, 4  ;;  %v4645_v6 = vshrl.u32 %v6561_v57, 16  ;;  %v7779_v57 = vld [vmem:[%s7899_s18 + $0x54] sm:$0xff]  }
  0xee   : > { %v4637_v5 = vrot.slane %v4635_v62, 5  ;;  %v4651_v7 = vshll.u32 %v6562_v61, 16  ;;  %7309 = vmatprep.mubr.bf16.mxu0 %v6602_v63  ;;  %v4620_v10 = vsel %vm7922_vm2, %v4615_v0, %v4619_v51  ;;  %v4643_v11 = vrot.slane %v4641_v2, 5  ;;  %v6570_v56 = vld [vmem:[%s7899_s18 + $0xb8] sm:$0xf] }
  0xef   : > { %v4656_v13 = vshrl.u32 %v6563_v3, 16  ;;  %v4647_v15 = vrot.slane %v4645_v6, 4  ;;  %v4659_v19 = vshll.u32 %v6563_v3, 16  ;;  %v4665_v22 = vshll.u32 %v6564_v9, 16  ;;  %v6571_v62 = vld [vmem:[%s7899_s18 + $0xbc] sm:$0x1] }
  0xf0   : > { %7102 = vmatmul.mubr.bf16.vlgmr.msra.gmra.mrb[0].mxu1 %v7771_v36  ;;  %v4638_v14 = vor.u32 %v4637_v5, %v4634_v18  ;;  %v4653_v16 = vrot.slane %v4651_v7, 5  ;;  %v4669_v47 = vshrl.u32 %v6564_v9, 16  ;;  %v4675_v32 = vshll.u32 %v6565_v12, 16  ;;  %v7794_v7 = vld [vmem:[%s9008_s1 + $0x120] sm:$0xff]  }
  0xf1   : > { %7381 = vmatpush3.bf16.msra.mxu1 %v8526_v60  ;;  %7105 = vmatprep.mubr.bf16.mxu1 %v7773_v41  ;;  %v4625_v60 = vrot.slane %v4624_v1, 4  ;;  %v4658_v21 = vrot.slane %v4656_v13, 4  ;;  %v4648_v26 = vor.u32 %v4647_v15, %v4643_v11  ;;  %v4661_v28 = vrot.slane %v4659_v19, 5  ;;  %v6573_v15 = vld [vmem:[%s7899_s18 + $0xc4] sm:$0xf] }
  0xf2   : > { %7374 = vmatprep.subr.bf16.mxu1 %v7791_v8  ;;  %v4639_v25 = vrot.slane %v4638_v14, 4  ;;  %v4667_v30 = vrot.slane %v4665_v22, 5  ;;  %v4671_v31 = vrot.slane %v4669_v47, 4  ;;  %v4680_v40 = vshrl.u32 %v6566_v34, 16 }
  0xf3   : > { %v4630_v20 = vsel %vm7922_vm2, %v4625_v60, %v4629_v54  ;;  %v4649_v36 = vrot.slane %v4648_v26, 4  ;;  %v4662_v37 = vor.u32 %v4661_v28, %v4658_v21  ;;  %v4677_v42 = vrot.slane %v4675_v32, 5  ;;  %v6574_v21 = vld [vmem:[%s7899_s18 + $0xc8] sm:$0x1]  ;;  %v7780_v26 = vld [vmem:[%s7899_s18 + $0x60] sm:$0xff]  }
  0xf4   : > { %v6603_v24 = vcombine.low %v4620_v10, %v4630_v20  ;;  %v4644_v35 = vsel %vm7922_vm2, %v4639_v25, %v4643_v11  ;;  %v4672_v27 = vor.u32 %v4671_v31, %v4667_v30  ;;  %v4683_v43 = vshll.u32 %v6566_v34, 16  ;;  %v6572_v11 = vld [vmem:[%s7899_s18 + $0xc0] sm:$0xf]  ;;  %v7795_v28 = vld [vmem:[%s9008_s1 + $0x128] sm:$0xff]  }
  0xf5   : > { %7382 = vmatpush3.bf16.msra.mxu1 %v7791_v8  ;;  %v4689_v41 = vshll.u32 %v6567_v38, 16  ;;  %v4654_v44 = vsel %vm7922_vm2, %v4649_v36, %v4653_v16  ;;  %v4663_v45 = vrot.slane %v4662_v37, 4  ;;  %v4682_v46 = vrot.slane %v4680_v40, 4  ;;  %v6575_v34 = vld [vmem:[%s7899_s18 + $0xcc] sm:$0xf] }
  0xf6   : > { %7375 = vmatprep.subr.bf16.mxu1 %v7792_v29  ;;  %7310 = vmatmul.mubr.bf16.gmra.mrb[16].mxu0 %v6603_v24  ;;  %v4693_v48 = vshrl.u32 %v6567_v38, 16  ;;  %v6604_v51 = vcombine.low %v4644_v35, %v4654_v44  ;;  %v4673_v52 = vrot.slane %v4672_v27, 4  ;;  %v4685_v53 = vrot.slane %v4683_v43, 5  ;;  %v6576_v35 = vld [vmem:[%s7899_s18 + $0xd0] sm:$0xf] }
  0xf7   : > { %v4691_v54 = vrot.slane %v4689_v41, 5  ;;  %v4668_v58 = vsel %vm7922_vm2, %v4663_v45, %v4667_v30  ;;  %v4699_v61 = vshll.u32 %v6568_v39, 16  ;;  %v4704_v1 = vshrl.u32 %v6569_v55, 16  ;;  %v7782_v36 = vld [vmem:[%s7899_s18 + $0x6c] sm:$0xff]   ;;  %v6577_v40 = vld [vmem:[%s7899_s18 + $0xd4] sm:$0x1] }
  0xf8   : > { %7106 = vmatmul.mubr.bf16.gmra.mrb[4].mxu1 %v7774_v17  ;;  %v4695_v59 = vrot.slane %v4693_v48, 4  ;;  %7313 = vmatprep.mubr.bf16.mxu0 %v6604_v51  ;;  %v4678_v63 = vsel %vm7922_vm2, %v4673_v52, %v4677_v42  ;;  %v4686_v0 = vor.u32 %v4685_v53, %v4682_v46  ;;  %v4707_v2 = vshll.u32 %v6569_v55, 16 }
  0xf9   : > { %7109 = vmatprep.mubr.bf16.mxu1 %v7776_v23  ;;  %7383 = vmatpush3.bf16.msra.mxu1 %v7792_v29  ;;  %v6605_v3 = vcombine.low %v4668_v58, %v4678_v63  ;;  %v4701_v5 = vrot.slane %v4699_v61, 5  ;;  %v4713_v6 = vshll.u32 %v6570_v56, 16  ;;  %v4706_v9 = vrot.slane %v4704_v1, 4  ;;  %v6618_v61 = vld [vmem:[%s7899_s18 + $0x18] sm:$0xe] }
  0xfa   : > { %7376 = vmatprep.subr.bf16.mxu1 %v7793_v50  ;;  %v4696_v18 = vor.u32 %v4695_v59, %v4691_v54  ;;  %v4687_v8 = vrot.slane %v4686_v0, 4  ;;  %v4709_v10 = vrot.slane %v4707_v2, 5  ;;  %v4717_v60 = vshrl.u32 %v6570_v56, 16  ;;  %v6619_v56 = vld [vmem:[%s7899_s18 + $0x1c] sm:$0xf] }
  0xfb   : > { %v4715_v13 = vrot.slane %v4713_v6, 5  ;;  %v4723_v14 = vshll.u32 %v6571_v62, 16  ;;  %v4728_v16 = vshrl.u32 %v6572_v11, 16  ;;  %v4731_v22 = vshll.u32 %v6572_v11, 16  ;;  %v6620_v0 = vld [vmem:[%s7899_s18 + $0x20] sm:$0x1] }
  0xfc   : > { %v4697_v12 = vrot.slane %v4696_v18, 4  ;;  %v4692_v17 = vsel %vm7922_vm2, %v4687_v8, %v4691_v54  ;;  %v4710_v19 = vor.u32 %v4709_v10, %v4706_v9  ;;  %v4719_v20 = vrot.slane %v4717_v60, 4  ;;  %v7783_v6 = vld [vmem:[%s7899_s18 + $0x78] sm:$0xff]   ;;  %v6621_v60 = vld [vmem:[%s7899_s18 + $0x24] sm:$0xe] }
  0xfd   : > { %7384 = vmatpush3.bf16.msra.mxu1 %v7793_v50  ;;  %v4725_v23 = vrot.slane %v4723_v14, 5  ;;  %v4730_v24 = vrot.slane %v4728_v16, 4  ;;  %v4737_v25 = vshll.u32 %v6573_v15, 16  ;;  %v4733_v32 = vrot.slane %v4731_v22, 5  ;;  %v7796_v50 = vld [vmem:[%s9008_s1 + $0x130] sm:$0xff]   ;;  %v7784_v16 = vld [vmem:[%s7899_s18 + $0x84] sm:$0xff]  }
  0xfe   : > { %7377 = vmatprep.subr.bf16.mxu1 %v7794_v7  ;;  %7314 = vmatmul.mubr.bf16.gmra.mrb[20].mxu0 %v6605_v3  ;;  %v4702_v47 = vsel %vm7922_vm2, %v4697_v12, %v4701_v5  ;;  %v4711_v30 = vrot.slane %v4710_v19, 4  ;;  %v4720_v31 = vor.u32 %v4719_v20, %v4715_v13  ;;  %v4741_v38 = vshrl.u32 %v6573_v15, 16  ;;  %v6622_v11 = vld [vmem:[%s7899_s18 + $0x28] sm:$0xf]  ;;  %v6623_v15 = vld [vmem:[%s7899_s18 + $0x2c] sm:$0x1] }
  0xff   : > { %v6606_v29 = vcombine.low %v4692_v17, %v4702_v47  ;;  %v4739_v37 = vrot.slane %v4737_v25, 5  ;;  %v4747_v39 = vshll.u32 %v6574_v21, 16  ;;  %v4752_v27 = vshrl.u32 %v6575_v34, 16  ;;  %v6624_v22 = vld [vmem:[%s7899_s18 + $0x30] sm:$0xe] }
 0x100   : > { %7110 = vmatmul.mubr.bf16.gmra.mrb[8].mxu1 %v7777_v49  ;;  %v4716_v42 = vsel %vm7922_vm2, %v4711_v30, %v4715_v13  ;;  %v4721_v43 = vrot.slane %v4720_v31, 4  ;;  %v4734_v41 = vor.u32 %v4733_v32, %v4730_v24  ;;  %v4755_v44 = vshll.u32 %v6575_v34, 16  ;;  %v6625_v25 = vld [vmem:[%s7899_s18 + $0x34] sm:$0xf] }
 0x101   : > { %7113 = vmatprep.mubr.bf16.mxu1 %v7779_v57  ;;  %7385 = vmatpush3.bf16.msra.mxu1 %v7794_v7  ;;  %v4743_v45 = vrot.slane %v4741_v38, 4  ;;  %v4749_v46 = vrot.slane %v4747_v39, 5  ;;  %v4754_v48 = vrot.slane %v4752_v27, 4  ;;  %v4761_v49 = vshll.u32 %v6576_v35, 16  ;;  %v7797_v7 = vld [vmem:[%s9008_s1 + $0x138] sm:$0xff]  }
 0x102   : > { %7378 = vmatprep.subr.bf16.mxu1 %v7795_v28  ;;  %7317 = vmatprep.mubr.bf16.mxu0 %v6606_v29  ;;  %v4726_v51 = vsel %vm7922_vm2, %v4721_v43, %v4725_v23  ;;  %v4735_v52 = vrot.slane %v4734_v41, 4  ;;  %v4757_v53 = vrot.slane %v4755_v44, 5  ;;  %v4765_v54 = vshrl.u32 %v6576_v35, 16  ;;  %v6629_v38 = vld [vmem:[%s7899_s18 + $0x44] sm:$0x1] }
 0x103   : > { %v6607_v55 = vcombine.low %v4716_v42, %v4726_v51  ;;  %v4744_v57 = vor.u32 %v4743_v45, %v4739_v37  ;;  %v4763_v58 = vrot.slane %v4761_v49, 5  ;;  %v4771_v59 = vshll.u32 %v6577_v40, 16  ;;  %v7785_v42 = vld [vmem:[%s7899_s18 + $0x90] sm:$0xff]   ;;  %v6630_v41 = vld [vmem:[%s7899_s18 + $0x48] sm:$0xe] }
 0x104   : > { %v4758_v62 = vor.u32 %v4757_v53, %v4754_v48  ;;  %v4767_v63 = vrot.slane %v4765_v54, 4  ;;  %v6666_v1 = vrot.slane %v6618_v61, 9  ;;  %v4740_v2 = vsel %vm7922_vm2, %v4735_v52, %v4739_v37  ;;  %v6628_v37 = vld [vmem:[%s7899_s18 + $0x40] sm:$0xf]  ;;  %v6631_v49 = vld [vmem:[%s7899_s18 + $0x4c] sm:$0xf] }
 0x105   : > { %7386 = vmatpush3.bf16.msra.mxu1 %v7795_v28  ;;  %v4745_v3 = vrot.slane %v4744_v57, 4  ;;  %v5259_v18 = vrot.slane %v6619_v56, 5  ;;  %v5262_v5 = vrot.slane %v6620_v0, 5  ;;  %v4773_v10 = vrot.slane %v4771_v59, 5  ;;  %v7786_v48 = vld [vmem:[%s7899_s18 + $0x9c] sm:$0xff]  }
 0x106   : > { %7379 = vmatprep.subr.bf16.mxu1 %v7796_v50  ;;  %7318 = vmatmul.mubr.bf16.gmra.mrb[24].mxu0 %v6607_v55  ;;  %v4759_v8 = vrot.slane %v4758_v62, 4  ;;  %v4768_v9 = vor.u32 %v4767_v63, %v4763_v58  ;;  %v5266_v21 = vrot.slane %v6622_v11, 5  ;;  %v6667_v23 = vrot.slane %v6621_v60, 9  ;;  %v6633_v57 = vld [vmem:[%s7899_s18 + $0x54] sm:$0xe] }
 0x107   : > { %v4750_v12 = vsel %vm7922_vm2, %v4745_v3, %v4749_v46  ;;  %v5260_v13 = vsel %vm8022_vm5, %v6666_v1, %v5259_v18  ;;  %v5261_v14 = vrot.slane %v5259_v18, 4  ;;  %v5269_v24 = vrot.slane %v6623_v15, 5  ;;  %v6635_v59 = vld [vmem:[%s7899_s18 + $0x5c] sm:$0x1]  ;;  %v6636_v18 = vld [vmem:[%s7899_s18 + $0x60] sm:$0xe] }
 0x108   : > { %7114 = vmatmul.mubr.bf16.gmra.mrb[12].mxu1 %v7780_v26  ;;  %v6608_v17 = vcombine.low %v4740_v2, %v4750_v12  ;;  %v4764_v19 = vsel %vm7922_vm2, %v4759_v8, %v4763_v58  ;;  %v4769_v20 = vrot.slane %v4768_v9, 4  ;;  %v6626_v26 = vld [vmem:[%s7899_s18 + $0x38] sm:$0x1]  ;;  %v5268_v30 = vrot.slane %v5266_v21, 4  ;;  %v6638_v8 = vld [vmem:[%s7899_s18 + $0x68] sm:$0x1] }
 0x109   : > { %7117 = vmatprep.mubr.bf16.mxu1 %v7782_v36  ;;  %7387 = vmatpush3.bf16.msra.mxu1 %v7796_v50  ;;  %v5263_v47 = vsel %vm8022_vm5, %v5261_v14, %v5262_v5  ;;  %v6668_v31 = vrot.slane %v6624_v22, 9  ;;  %v5273_v34 = vrot.slane %v6625_v25, 5  ;;  %v5276_v35 = vrot.slane %v6626_v26, 5  ;;  %v6627_v36 = vld [vmem:[%s7899_s18 + $0x3c] sm:$0xe]  ;;  %v7787_v15 = vld [vmem:[%s7899_s18 + $0xa8] sm:$0xff]  }
 0x10a   : > { %7380 = vmatprep.subr.bf16.mxu1 %v7797_v7  ;;  %7321 = vmatprep.mubr.bf16.mxu0 %v6608_v17  ;;  %v4774_v28 = vsel %vm7922_vm2, %v4769_v20, %v4773_v10  ;;  %v6698_v29 = vcombine.low %v5260_v13, %v5263_v47  ;;  %v6669_v39 = vrot.slane %v6627_v36, 9  ;;  %v5280_v40 = vrot.slane %v6628_v37, 5  ;;  %v6632_v50 = vld [vmem:[%s7899_s18 + $0x50] sm:$0x1]  ;;  %v6634_v58 = vld [vmem:[%s7899_s18 + $0x58] sm:$0xf] }
 0x10b   : > { %v6609_v32 = vcombine.low %v4764_v19, %v4774_v28  ;;  %v5275_v27 = vrot.slane %v5273_v34, 4  ;;  %v5283_v43 = vrot.slane %v6629_v38, 5  ;;  %v5267_v44 = vsel %vm8022_vm5, %v6667_v23, %v5266_v21  ;;  %v6637_v5 = vld [vmem:[%s7899_s18 + $0x64] sm:$0xf]  ;;  %v6639_v13 = vld [vmem:[%s7899_s18 + $0x6c] sm:$0xe] }
 0x10c   : > { %v5270_v45 = vsel %vm8022_vm5, %v5268_v30, %v5269_v24  ;;  %v5282_v46 = vrot.slane %v5280_v40, 4  ;;  %v6670_v51 = vrot.slane %v6630_v41, 9  ;;  %v5274_v52 = vsel %vm8022_vm5, %v6668_v31, %v5273_v34  ;;  %v6640_v19 = vld [vmem:[%s7899_s18 + $0x70] sm:$0xf]  ;;  %v6641_v20 = vld [vmem:[%s7899_s18 + $0x74] sm:$0x1] }
 0x10d   : > { %7388 = vmatpush3.bf16.msra.mxu1 %v7797_v7  ;;  %v5277_v53 = vsel %vm8022_vm5, %v5275_v27, %v5276_v35  ;;  %v5287_v54 = vrot.slane %v6631_v49, 5  ;;  %v5290_v55 = vrot.slane %v6632_v50, 5  ;;  %v6699_v61 = vcombine.low %v5267_v44, %v5270_v45  ;;  %v7788_v23 = vld [vmem:[%s7899_s18 + $0xb4] sm:$0xff]   ;;  %v6290_v26 = vld [vmem:[%s7899_s18 + $0x6c] sm:$0xf] }
 0x10e   : > { %7322 = vmatmul.mubr.bf16.gmra.mrb[28].mxu0 %v6609_v32  ;;  %v8736_v56 = vsel %vm8022_vm5, %v6669_v39, %v5280_v40  ;;  %v6671_v63 = vrot.slane %v6633_v57, 9  ;;  %v6700_v0 = vcombine.low %v5274_v52, %v5277_v53  ;;  %v8740_v1 = vsel %vm8022_vm5, %v5282_v46, %v5283_v43  ;;  %v6291_v28 = vld [vmem:[%s7899_s18 + $0x70] sm:$0xf]  ;;  %v6292_v31 = vld [vmem:[%s7899_s18 + $0x74] sm:$0x1] }
 0x10f   : > { %7341 = vmatprep.mubr.bf16.mxu0 %v6698_v29  ;;  %v5289_v62 = vrot.slane %v5287_v54, 4  ;;  %v5294_v2 = vrot.slane %v6634_v58, 5  ;;  %v5297_v3 = vrot.slane %v6635_v59, 5  ;;  %v6672_v9 = vrot.slane %v6636_v18, 9  ;;  %v6642_v35 = vld [vmem:[%s7899_s18 + $0x78] sm:$0xe] }
 0x110   : > { %7118 = vmatmul.mubr.bf16.gmra.mrb[16].mxu1 %v7783_v6  ;;  %v8746_v6 = vsel %vm8022_vm5, %v6670_v51, %v5287_v54  ;;  %v5301_v10 = vrot.slane %v6637_v5, 5  ;;  %v5304_v12 = vrot.slane %v6638_v8, 5  ;;  %v6701_v14 = vcombine.low %v8736_v56, %v8740_v1  ;;  %v6643_v40 = vld [vmem:[%s7899_s18 + $0x7c] sm:$0xf]  ;;  %v6644_v27 = vld [vmem:[%s7899_s18 + $0x80] sm:$0x1] }
 0x111   : > { %7121 = vmatprep.mubr.bf16.mxu1 %v7784_v16  ;;  %v8750_v7 = vsel %vm8022_vm5, %v5289_v62, %v5290_v55  ;;  %v8755_v60 = vsel %vm8022_vm5, %v6671_v63, %v5294_v2  ;;  %v5296_v11 = vrot.slane %v5294_v2, 4  ;;  %v6673_v21 = vrot.slane %v6639_v13, 9  ;;  %v6293_v45 = vld [vmem:[%s7899_s18 + $0x78] sm:$0xf]  ;;  %v6294_v51 = vld [vmem:[%s7899_s18 + $0x7c] sm:$0xf] }
 0x112   : > { %v8763_v16 = vsel %vm8022_vm5, %v6672_v9, %v5301_v10  ;;  %v5303_v17 = vrot.slane %v5301_v10, 4  ;;  %v6702_v22 = vcombine.low %v8746_v6, %v8750_v7  ;;  %v5308_v24 = vrot.slane %v6640_v19, 5  ;;  %v6295_v57 = vld [vmem:[%s7899_s18 + $0x80] sm:$0x1]  ;;  %v6645_v62 = vld [vmem:[%s7899_s18 + $0x84] sm:$0xe] }
 0x113   : > { %v8771_v47 = vsel %vm8022_vm5, %v5296_v11, %v5297_v3  ;;  %v5311_v25 = vrot.slane %v6641_v20, 5  ;;  %v2718_v32 = vshrl.u32 %v6290_v26, 16  ;;  %v2721_v34 = vshll.u32 %v6290_v26, 16  ;;  %v6646_v3 = vld [vmem:[%s7899_s18 + $0x88] sm:$0xf]  ;;  %v7789_v9 = vld [vmem:[%s7899_s18 + $0xc0] sm:$0xff]  }
 0x114   : > { %v6703_v29 = vcombine.low %v8755_v60, %v8771_v47  ;;  %v8780_v30 = vsel %vm8022_vm5, %v5303_v17, %v5304_v12  ;;  %v8788_v37 = vsel %vm8022_vm5, %v6673_v21, %v5308_v24  ;;  %v5310_v38 = vrot.slane %v5308_v24, 4  ;;  %v6647_v8 = vld [vmem:[%s7899_s18 + $0x8c] sm:$0x1]  ;;  %v6297_v21 = vld [vmem:[%s7899_s18 + $0x88] sm:$0xf] }
 0x115   : > { %v6704_v36 = vcombine.low %v8763_v16, %v8780_v30  ;;  %v2727_v39 = vshll.u32 %v6291_v28, 16  ;;  %v2723_v43 = vrot.slane %v2721_v34, 5  ;;  %v2731_v41 = vshrl.u32 %v6291_v28, 16 }
 0x116   : > { %7342 = vmatmul.mubr.bf16.vlgmr.msra.gmra.mrb[0].mxu0 %v6699_v61  ;;  %v2737_v44 = vshll.u32 %v6292_v31, 16  ;;  %v8795_v46 = vsel %vm8022_vm5, %v5310_v38, %v5311_v25  ;;  %v6674_v49 = vrot.slane %v6642_v35, 9  ;;  %v5315_v50 = vrot.slane %v6643_v40, 5  ;;  %v6298_v31 = vld [vmem:[%s7899_s18 + $0x8c] sm:$0x1] }
 0x117   : > { %7345 = vmatprep.mubr.bf16.mxu0 %v6700_v0  ;;  %v6705_v52 = vcombine.low %v8788_v37, %v8795_v46  ;;  %v2733_v54 = vrot.slane %v2731_v41, 4  ;;  %v5318_v61 = vrot.slane %v6644_v27, 5  ;;  %v2742_v56 = vshrl.u32 %v6293_v45, 16  ;;  %v6648_v27 = vld [vmem:[%s7899_s18 + $0x90] sm:$0xe] }
 0x118   : > { %7122 = vmatmul.mubr.bf16.gmra.mrb[20].mxu1 %v7785_v42  ;;  %v2720_v42 = vrot.slane %v2718_v32, 4  ;;  %v2739_v55 = vrot.slane %v2737_v44, 5  ;;  %v8803_v58 = vsel %vm8022_vm5, %v6674_v49, %v5315_v50  ;;  %v5317_v59 = vrot.slane %v5315_v50, 4 }
 0x119   : > { %7125 = vmatprep.mubr.bf16.mxu1 %v7786_v48  ;;  %v2729_v48 = vrot.slane %v2727_v39, 5  ;;  %v2745_v1 = vshll.u32 %v6293_v45, 16  ;;  %v2751_v2 = vshll.u32 %v6294_v51, 16  ;;  %v2744_v5 = vrot.slane %v2742_v56, 4  ;;  %v6649_v45 = vld [vmem:[%s7899_s18 + $0x94] sm:$0xf] }
 0x11a   : > { %v2724_v53 = vor.u32 %v2723_v43, %v2720_v42  ;;  %v8809_v18 = vsel %vm8022_vm5, %v5317_v59, %v5318_v61  ;;  %v2755_v6 = vshrl.u32 %v6294_v51, 16  ;;  %v2761_v7 = vshll.u32 %v6295_v57, 16  ;;  %v6300_v57 = vld [vmem:[%s7899_s18 + $0x94] sm:$0xf] }
 0x11b   : > { %v2734_v0 = vor.u32 %v2733_v54, %v2729_v48  ;;  %v6706_v12 = vcombine.low %v8803_v58, %v8809_v18  ;;  %v2747_v13 = vrot.slane %v2745_v1, 5  ;;  %v6675_v20 = vrot.slane %v6645_v62, 9  ;;  %v6299_v54 = vld [vmem:[%s7899_s18 + $0x90] sm:$0xf]  ;;  %v6651_v1 = vld [vmem:[%s7899_s18 + $0x9c] sm:$0xe] }
 0x11c   : > { %v2725_v63 = vrot.slane %v2724_v53, 4  ;;  %v2757_v17 = vrot.slane %v2755_v6, 4  ;;  %v2763_v19 = vrot.slane %v2761_v7, 5  ;;  %v5322_v24 = vrot.slane %v6646_v3, 5  ;;  %v6650_v53 = vld [vmem:[%s7899_s18 + $0x98] sm:$0x1] }
 0x11d   : > { %v2735_v11 = vrot.slane %v2734_v0, 4  ;;  %v5325_v25 = vrot.slane %v6647_v8, 5  ;;  %v2775_v40 = vshll.u32 %v6297_v21, 16  ;;  %v2779_v44 = vshrl.u32 %v6297_v21, 16  ;;  %v6652_v7 = vld [vmem:[%s7899_s18 + $0xa0] sm:$0xf] }
 0x11e   : > { %7346 = vmatmul.mubr.bf16.gmra.mrb[4].mxu0 %v6701_v14  ;;  %v2730_v10 = vsel %vm7922_vm2, %v2725_v63, %v2729_v48  ;;  %v6296_v14 = vld [vmem:[%s7899_s18 + $0x84] sm:$0xf]  ;;  %v8824_v38 = vsel %vm8022_vm5, %v6675_v20, %v5322_v24  ;;  %v5324_v39 = vrot.slane %v5322_v24, 4  ;;  %v2785_v51 = vshll.u32 %v6298_v31, 16  ;;  %v6301_v63 = vld [vmem:[%s7899_s18 + $0x98] sm:$0x1] }
 0x11f   : > { %7349 = vmatprep.mubr.bf16.mxu0 %v6702_v22  ;;  %v2740_v22 = vsel %vm7922_vm2, %v2735_v11, %v2739_v55  ;;  %v2766_v32 = vshrl.u32 %v6296_v14, 16  ;;  %v2769_v34 = vshll.u32 %v6296_v14, 16  ;;  %v2777_v50 = vrot.slane %v2775_v40, 5  ;;  %v6302_v20 = vld [vmem:[%s7899_s18 + $0x9c] sm:$0xf] }
 0x120   : > { %7126 = vmatmul.mubr.bf16.gmra.mrb[24].mxu1 %v7787_v15  ;;  %v2753_v15 = vrot.slane %v2751_v2, 5  ;;  %v6338_v26 = vcombine.low %v2730_v10, %v2740_v22  ;;  %v8835_v49 = vsel %vm8022_vm5, %v5324_v39, %v5325_v25  ;;  %v2781_v55 = vrot.slane %v2779_v44, 4  ;;  %v6303_v25 = vld [vmem:[%s7899_s18 + $0xa0] sm:$0xf]  ;;  %v6304_v39 = vld [vmem:[%s7899_s18 + $0xa4] sm:$0x1] }
 0x121   : > { %7129 = vmatprep.mubr.bf16.mxu1 %v7788_v23  ;;  %v2748_v23 = vor.u32 %v2747_v13, %v2744_v5  ;;  %v2768_v43 = vrot.slane %v2766_v32, 4  ;;  %v2771_v41 = vrot.slane %v2769_v34, 5  ;;  %v6707_v47 = vcombine.low %v8824_v38, %v8835_v49  ;;  %v6653_v13 = vld [vmem:[%s7899_s18 + $0xa4] sm:$0x1]  ;;  %v6655_v44 = vld [vmem:[%s7899_s18 + $0xac] sm:$0xf] }
 0x122   : > { %v2758_v28 = vor.u32 %v2757_v17, %v2753_v15  ;;  %v2787_v61 = vrot.slane %v2785_v51, 5  ;;  %v6676_v56 = vrot.slane %v6648_v27, 9  ;;  %v5329_v62 = vrot.slane %v6649_v45, 5 }
 0x123   : > { %v2749_v35 = vrot.slane %v2748_v23, 4  ;;  %v2782_v16 = vor.u32 %v2781_v55, %v2777_v50  ;;  %v5332_v30 = vrot.slane %v6650_v53, 5  ;;  %v2793_v5 = vshll.u32 %v6299_v54, 16  ;;  %v6656_v53 = vld [vmem:[%s7899_s18 + $0xb0] sm:$0x1] }
 0x124   : > { %v2759_v42 = vrot.slane %v2758_v28, 4  ;;  %v8851_v2 = vsel %vm8022_vm5, %v6676_v56, %v5329_v62  ;;  %v5331_v3 = vrot.slane %v5329_v62, 4  ;;  %v2799_v6 = vshll.u32 %v6300_v57, 16 }
 0x125   : > { %v2754_v48 = vsel %vm7922_vm2, %v2749_v35, %v2753_v15  ;;  %v2803_v11 = vshrl.u32 %v6300_v57, 16  ;;  %v2795_v15 = vrot.slane %v2793_v5, 5  ;;  %v6677_v24 = vrot.slane %v6651_v1, 9 }
 0x126   : > { %7350 = vmatmul.mubr.bf16.gmra.mrb[8].mxu0 %v6703_v29  ;;  %v2764_v60 = vsel %vm7922_vm2, %v2759_v42, %v2763_v19  ;;  %v2772_v29 = vor.u32 %v2771_v41, %v2768_v43  ;;  %v5333_v14 = vsel %vm8022_vm5, %v5331_v3, %v5332_v30  ;;  %v2801_v17 = vrot.slane %v2799_v6, 5  ;;  %v6654_v43 = vld [vmem:[%s7899_s18 + $0xa8] sm:$0xe] }
 0x127   : > { %7353 = vmatprep.mubr.bf16.mxu0 %v6704_v36  ;;  %v6339_v59 = vcombine.low %v2754_v48, %v2764_v60  ;;  %v2790_v36 = vshrl.u32 %v6299_v54, 16  ;;  %v2809_v19 = vshll.u32 %v6301_v63, 16  ;;  %v6708_v22 = vcombine.low %v8851_v2, %v5333_v14  ;;  %v6305_v54 = vld [vmem:[%s7899_s18 + $0xa8] sm:$0xf]  ;;  %v6657_v2 = vld [vmem:[%s7899_s18 + $0xb4] sm:$0xe] }
 0x128   : > { %7130 = vmatmul.mubr.bf16.gmra.mrb[28].mxu1 %v7789_v9  ;;  %v2773_v0 = vrot.slane %v2772_v29, 4  ;;  %v2783_v9 = vrot.slane %v2782_v16, 4  ;;  %v2805_v23 = vrot.slane %v2803_v11, 4  ;;  %v5336_v32 = vrot.slane %v6652_v7, 5  ;;  %v6659_v14 = vld [vmem:[%s7899_s18 + $0xbc] sm:$0x1] }
 0x129   : > { %7165 = vmatprep.mubr.bf16.mxu1 %v6338_v26  ;;  %v2792_v10 = vrot.slane %v2790_v36, 4  ;;  %v2811_v31 = vrot.slane %v2809_v19, 5  ;;  %v5339_v35 = vrot.slane %v6653_v13, 5  ;;  %v2814_v40 = vshrl.u32 %v6302_v20, 16 }
 0x12a   : > { %v2778_v8 = vsel %vm7922_vm2, %v2773_v0, %v2777_v50  ;;  %v2788_v21 = vsel %vm7922_vm2, %v2783_v9, %v2787_v61  ;;  %v2806_v34 = vor.u32 %v2805_v23, %v2801_v17  ;;  %v2817_v27 = vshll.u32 %v6302_v20, 16  ;;  %v6307_v0 = vld [vmem:[%s7899_s18 + $0xb0] sm:$0x1]  ;;  %v6309_v23 = vld [vmem:[%s7899_s18 + $0xb8] sm:$0xf] }
 0x12b   : > { %v6340_v26 = vcombine.low %v2778_v8, %v2788_v21  ;;  %v2796_v28 = vor.u32 %v2795_v15, %v2792_v10  ;;  %v8873_v46 = vsel %vm8022_vm5, %v6677_v24, %v5336_v32  ;;  %v2823_v42 = vshll.u32 %v6303_v25, 16  ;;  %v6658_v8 = vld [vmem:[%s7899_s18 + $0xb8] sm:$0xf] }
 0x12c   : > { %v2807_v58 = vrot.slane %v2806_v34, 4  ;;  %v2816_v18 = vrot.slane %v2814_v40, 4  ;;  %v2827_v41 = vshrl.u32 %v6303_v25, 16  ;;  %v2833_v51 = vshll.u32 %v6304_v39, 16  ;;  %v6310_v34 = vld [vmem:[%s7899_s18 + $0xbc] sm:$0x1] }
 0x12d   : > { %v2797_v37 = vrot.slane %v2796_v28, 4  ;;  %v2825_v50 = vrot.slane %v2823_v42, 5  ;;  %v6678_v62 = vrot.slane %v6654_v43, 9  ;;  %v5343_v63 = vrot.slane %v6655_v44, 5 }
 0x12e   : > { %7354 = vmatmul.mubr.bf16.gmra.mrb[12].mxu0 %v6705_v52  ;;  %v5338_v52 = vrot.slane %v5336_v32, 4  ;;  %v2812_v60 = vsel %vm7922_vm2, %v2807_v58, %v2811_v31  ;;  %v2829_v57 = vrot.slane %v2827_v41, 4  ;;  %v2835_v56 = vrot.slane %v2833_v51, 5  ;;  %v6311_v51 = vld [vmem:[%s7899_s18 + $0xc0] sm:$0xf] }
 0x12f   : > { %7357 = vmatprep.mubr.bf16.mxu0 %v6706_v12  ;;  %v2819_v12 = vrot.slane %v2817_v27, 5  ;;  %v2802_v45 = vsel %vm7922_vm2, %v2797_v37, %v2801_v17  ;;  %v5346_v36 = vrot.slane %v6656_v53, 5  ;;  %v2838_v1 = vshrl.u32 %v6305_v54, 16  ;;  %v6308_v17 = vld [vmem:[%s7899_s18 + $0xb4] sm:$0xf] }
 0x130   : > { %7166 = vmatmul.mubr.bf16.vlgmr.msra.gmra.mrb[16].mxu1 %v6339_v59  ;;  %v8881_v48 = vsel %vm8022_vm5, %v5338_v52, %v5339_v35  ;;  %v6306_v59 = vld [vmem:[%s7899_s18 + $0xac] sm:$0xf]  ;;  %v6341_v61 = vcombine.low %v2802_v45, %v2812_v60  ;;  %v2830_v30 = vor.u32 %v2829_v57, %v2825_v50  ;;  %v5344_v3 = vsel %vm8022_vm5, %v6678_v62, %v5343_v63  ;;  %v6660_v52 = vld [vmem:[%s7899_s18 + $0xc0] sm:$0xe] }
 0x131   : > { %7169 = vmatprep.mubr.bf16.mxu1 %v6340_v26  ;;  %v6709_v29 = vcombine.low %v8873_v46, %v8881_v48  ;;  %v2820_v55 = vor.u32 %v2819_v12, %v2816_v18  ;;  %v5345_v5 = vrot.slane %v5343_v63, 4  ;;  %v2841_v6 = vshll.u32 %v6305_v54, 16  ;;  %v6661_v12 = vld [vmem:[%s7899_s18 + $0xc4] sm:$0xf] }
 0x132   : > { %v2847_v7 = vshll.u32 %v6306_v59, 16  ;;  %v2831_v10 = vrot.slane %v2830_v30, 4  ;;  %v2840_v11 = vrot.slane %v2838_v1, 4  ;;  %v2851_v13 = vshrl.u32 %v6306_v59, 16 }
 0x133   : > { %v2821_v16 = vrot.slane %v2820_v55, 4  ;;  %v5347_v38 = vsel %vm8022_vm5, %v5345_v5, %v5346_v36  ;;  %v2843_v49 = vrot.slane %v2841_v6, 5  ;;  %v2857_v15 = vshll.u32 %v6307_v0, 16  ;;  %v6663_v5 = vld [vmem:[%s7899_s18 + $0xcc] sm:$0xe] }
 0x134   : > { %v2836_v19 = vsel %vm7922_vm2, %v2831_v10, %v2835_v56  ;;  %v6710_v20 = vcombine.low %v5344_v3, %v5347_v38  ;;  %v2853_v21 = vrot.slane %v2851_v13, 4  ;;  %v5350_v28 = vrot.slane %v6658_v8, 5  ;;  %v6664_v10 = vld [vmem:[%s7899_s18 + $0xd0] sm:$0xf] }
 0x135   : > { %v2826_v9 = vsel %vm7922_vm2, %v2821_v16, %v2825_v50  ;;  %v2844_v25 = vor.u32 %v2843_v49, %v2840_v11  ;;  %v2859_v26 = vrot.slane %v2857_v15, 5  ;;  %v5353_v32 = vrot.slane %v6659_v14, 5  ;;  %v6662_v50 = vld [vmem:[%s7899_s18 + $0xc8] sm:$0x1]  ;;  %v6665_v49 = vld [vmem:[%s7899_s18 + $0xd4] sm:$0x1] }
 0x136   : > { %7358 = vmatmul.mubr.bf16.gmra.mrb[16].mxu0 %v6707_v47  ;;  %v2849_v47 = vrot.slane %v2847_v7, 5  ;;  %v6342_v24 = vcombine.low %v2826_v9, %v2836_v19  ;;  %v2862_v35 = vshrl.u32 %v6308_v17, 16  ;;  %v2865_v39 = vshll.u32 %v6308_v17, 16  ;;  %v6313_v16 = vld [vmem:[%s7899_s18 + $0xc8] sm:$0x1] }
 0x137   : > { %7361 = vmatprep.mubr.bf16.mxu0 %v6708_v22  ;;  %v6679_v22 = vrot.slane %v6657_v2, 9  ;;  %v2845_v40 = vrot.slane %v2844_v25, 4  ;;  %v5352_v37 = vrot.slane %v5350_v28, 4  ;;  %v2871_v46 = vshll.u32 %v6309_v23, 16 }
 0x138   : > { %7170 = vmatmul.mubr.bf16.gmra.mrb[20].mxu1 %v6341_v61  ;;  %v2854_v31 = vor.u32 %v2853_v21, %v2849_v47  ;;  %v2864_v43 = vrot.slane %v2862_v35, 4  ;;  %v2867_v58 = vrot.slane %v2865_v39, 5  ;;  %v2875_v18 = vshrl.u32 %v6309_v23, 16 }
 0x139   : > { %7173 = vmatprep.mubr.bf16.mxu1 %v6342_v24  ;;  %v5351_v27 = vsel %vm8022_vm5, %v6679_v22, %v5350_v28  ;;  %v2850_v41 = vsel %vm7922_vm2, %v2845_v40, %v2849_v47  ;;  %v5354_v44 = vsel %vm8022_vm5, %v5352_v37, %v5353_v32  ;;  %v2873_v45 = vrot.slane %v2871_v46, 5 }
 0x13a   : > { %v2855_v42 = vrot.slane %v2854_v31, 4  ;;  %v2881_v48 = vshll.u32 %v6310_v34, 16  ;;  %v6711_v54 = vcombine.low %v5351_v27, %v5354_v44  ;;  %v2868_v60 = vor.u32 %v2867_v58, %v2864_v43 }
 0x13b   : > { %v2877_v55 = vrot.slane %v2875_v18, 4  ;;  %v6680_v61 = vrot.slane %v6660_v52, 9  ;;  %v5357_v56 = vrot.slane %v6661_v12, 5  ;;  %v5360_v0 = vrot.slane %v6662_v50, 5 }
 0x13c   : > { %v2860_v53 = vsel %vm7922_vm2, %v2855_v42, %v2859_v26  ;;  %v2883_v59 = vrot.slane %v2881_v48, 5  ;;  %v2869_v62 = vrot.slane %v2868_v60, 4  ;;  %v2886_v30 = vshrl.u32 %v6311_v51, 16 }
 0x13d   : > { %v6343_v57 = vcombine.low %v2850_v41, %v2860_v53  ;;  %v2878_v63 = vor.u32 %v2877_v55, %v2873_v45  ;;  %v5358_v36 = vsel %vm8022_vm5, %v6680_v61, %v5357_v56  ;;  %v5359_v1 = vrot.slane %v5357_v56, 4 }
 0x13e   : > { %7362 = vmatmul.mubr.bf16.gmra.mrb[20].mxu0 %v6709_v29  ;;  %v6312_v29 = vld [vmem:[%s7899_s18 + $0xc4] sm:$0xf]  ;;  %v2889_v2 = vshll.u32 %v6311_v51, 16  ;;  %v2874_v6 = vsel %vm7922_vm2, %v2869_v62, %v2873_v45  ;;  %v2888_v8 = vrot.slane %v2886_v30, 4  ;;  %v2905_v38 = vshll.u32 %v6313_v16, 16  ;;  %s6724_s18 = sshll.u32 %s9020_s12, 8 }
 0x13f   : > { %7365 = vmatprep.mubr.bf16.mxu0 %v6710_v20  ;;  %v2895_v3 = vshll.u32 %v6312_v29, 16  ;;  %v2879_v7 = vrot.slane %v2878_v63, 4  ;;  %v2899_v9 = vshrl.u32 %v6312_v29, 16  ;;  %v5361_v11 = vsel %vm8022_vm5, %v5359_v1, %v5360_v0  ;;  %s8955_s27 = scalar_lea.vmem %s9009_s2, %s6724_s18 }
 0x140   : > { %7174 = vmatmul.mubr.bf16.gmra.mrb[24].mxu1 %v6343_v57  ;;  %v2891_v13 = vrot.slane %v2889_v2, 5  ;;  %v6712_v15 = vcombine.low %v5358_v36, %v5361_v11  ;;  %v6681_v19 = vrot.slane %v6663_v5, 9  ;;  %v5364_v22 = vrot.slane %v6664_v10, 5 }
 0x141   : > { %v2897_v14 = vrot.slane %v2895_v3, 5  ;;  %v2884_v47 = vsel %vm7922_vm2, %v2879_v7, %v2883_v59  ;;  %v2901_v17 = vrot.slane %v2899_v9, 4  ;;  %v2907_v24 = vrot.slane %v2905_v38, 5 }
 0x142   : > { %v6344_v20 = vcombine.low %v2874_v6, %v2884_v47  ;;  %v2892_v21 = vor.u32 %v2891_v13, %v2888_v8  ;;  %v5367_v25 = vrot.slane %v6665_v49, 5  ;;  %v5365_v28 = vsel %vm8022_vm5, %v6681_v19, %v5364_v22 }
 0x143   : > { %v2902_v23 = vor.u32 %v2901_v17, %v2897_v14  ;;  %v5366_v31 = vrot.slane %v5364_v22, 4 }
 0x144   : > { %7177 = vmatprep.mubr.bf16.mxu1 %v6344_v20  ;;  %v2893_v26 = vrot.slane %v2892_v21, 4 }
 0x145   : > { %v2903_v32 = vrot.slane %v2902_v23, 4  ;;  %v5368_v35 = vsel %vm8022_vm5, %v5366_v31, %v5367_v25 }
 0x146   : > { %7366 = vmatmul.mubr.bf16.gmra.mrb[24].mxu0 %v6711_v54  ;;  %v2898_v34 = vsel %vm7922_vm2, %v2893_v26, %v2897_v14  ;;  %v6713_v40 = vcombine.low %v5365_v28, %v5368_v35 }
 0x147   : > { %7369 = vmatprep.mubr.bf16.mxu0 %v6712_v15  ;;  %v2908_v39 = vsel %vm7922_vm2, %v2903_v32, %v2907_v24 }
 0x148   : > { %v6345_v27 = vcombine.low %v2898_v34, %v2908_v39 }
 0x14a   : > { %7178 = vmatmul.mubr.bf16.gmra.mrb[28].mxu1 %v6345_v27 }
 0x14e   : > { %7370 = vmatmul.mubr.bf16.gmra.mrb[28].mxu0 %v6713_v40 }
 0x1c3   : > { %v7103_v37 = vpop.f32.mrb[0].mxu1 }
 0x1c4   : > { %v2254_v46 = vpop.f32.mrb[1].mxu1 }
 0x1c5   : > { %v7104_v52 = vpop.f32.mrb[2].mxu1 }
 0x1c6   : > { %v2257_v42 = vpop.f32.mrb[3].mxu1 }
 0x1cb   : > { %v7107_v43 = vpop.f32.mrb[4].mxu1 }
 0x1cc   : > { %v2270_v58 = vpop.f32.mrb[5].mxu1 }
 0x1cd   : > { %v7108_v18 = vpop.f32.mrb[6].mxu1 }
 0x1ce   : > { %v2273_v12 = vpop.f32.mrb[7].mxu1 }
 0x1d3   : > { %v7111_v41 = vpop.f32.mrb[8].mxu1 }
 0x1d4   : > { %v2286_v44 = vpop.f32.mrb[9].mxu1 }
 0x1d5   : > { %v7112_v4 = vpop.f32.mrb[10].mxu1 }
 0x1d6   : > { %v8941_v45 = vpop.f32.mrb[11].mxu1 }
 0x1db   : > { %v8943_v33 = vpop.f32.mrb[12].mxu1 }
 0x1dc   : > { %v8945_v48 = vpop.f32.mrb[13].mxu1 }
 0x1dd   : > { %v8947_v50 = vpop.f32.mrb[14].mxu1 }
 0x1de   : > { %v8949_v51 = vpop.f32.mrb[15].mxu1 }
 0x1e9   : > { %v7343_v53 = vpop.f32.mrb[0].mxu0 }
 0x1ea   : > { %v7389_v54 = vadd.f32 %v7343_v53, %v7103_v37  ;;  %v5532_v60 = vpop.f32.mrb[1].mxu0 }
 0x1eb   : > { %v7390_v55 = vadd.f32 %v5532_v60, %v2254_v46  ;;  %v7344_v29 = vpop.f32.mrb[2].mxu0 }
 0x1ec   : > { %5789 = vst [vmem:[%s8955_s27 + $0x10] sm:$0xff] %v7389_v54  ;;  %v7391_v57 = vadd.f32 %v7344_v29, %v7104_v52  ;;  %v5535_v59 = vpop.f32.mrb[3].mxu0  ;;  %v5859_v0 = vmul.f32 %v7389_v54, %v7389_v54 }
 0x1ed   : > { %5787 = vst [vmem:[%s8955_s27] sm:$0xff] %v7390_v55  ;;  %v7392_v61 = vadd.f32 %v5535_v59, %v2257_v42  ;;  %v5857_v56 = vmul.f32 %v7390_v55, %v7390_v55 }
 0x1ee   : > { %5790 = vst [vmem:[%s8955_s27 + $0x18] sm:$0xff] %v7391_v57  ;;  %v5860_v3 = vmul.f32 %v7391_v57, %v7391_v57 }
 0x1ef   : > { %5788 = vst [vmem:[%s8955_s27 + $0x8] sm:$0xff] %v7392_v61  ;;  %v5819_v62 = vadd.f32 %v7392_v61, %v7390_v55  ;;  %v5858_v63 = vmul.f32 %v7392_v61, %v7392_v61 }
 0x1f1   : > { %v5820_v16 = vadd.f32 %v7389_v54, %v5819_v62  ;;  %v5889_v30 = vadd.f32 %v5858_v63, %v5857_v56  ;;  %v7347_v36 = vpop.f32.mrb[4].mxu0 }
 0x1f2   : > { %v7393_v1 = vadd.f32 %v7347_v36, %v7107_v43  ;;  %v5548_v2 = vpop.f32.mrb[5].mxu0 }
 0x1f3   : > { %v5890_v5 = vadd.f32 %v5889_v30, %v5859_v0  ;;  %v7394_v6 = vadd.f32 %v5548_v2, %v2270_v58  ;;  %v5821_v7 = vadd.f32 %v7391_v57, %v5820_v16  ;;  %v7348_v8 = vpop.f32.mrb[6].mxu0 }
 0x1f4   : > { %5793 = vst [vmem:[%s8955_s27 + $0x30] sm:$0xff] %v7393_v1  ;;  %v7395_v9 = vadd.f32 %v7348_v8, %v7108_v18  ;;  %v5551_v10 = vpop.f32.mrb[7].mxu0  ;;  %v5863_v17 = vmul.f32 %v7393_v1, %v7393_v1 }
 0x1f5   : > { %5791 = vst [vmem:[%s8955_s27 + $0x20] sm:$0xff] %v7394_v6  ;;  %v5822_v11 = vadd.f32 %v7394_v6, %v5821_v7  ;;  %v5861_v13 = vmul.f32 %v7394_v6, %v7394_v6  ;;  %v5891_v14 = vadd.f32 %v5890_v5, %v5860_v3  ;;  %v7396_v38 = vadd.f32 %v5551_v10, %v2273_v12 }
 0x1f6   : > { %5794 = vst [vmem:[%s8955_s27 + $0x38] sm:$0xff] %v7395_v9  ;;  %v5864_v24 = vmul.f32 %v7395_v9, %v7395_v9 }
 0x1f7   : > { %v5892_v49 = vadd.f32 %v5891_v14, %v5861_v13  ;;  %5792 = vst [vmem:[%s8955_s27 + $0x28] sm:$0xff] %v7396_v38  ;;  %v5823_v47 = vadd.f32 %v7396_v38, %v5822_v11  ;;  %v5862_v15 = vmul.f32 %v7396_v38, %v7396_v38 }
 0x1f9   : > { %v5824_v19 = vadd.f32 %v7393_v1, %v5823_v47  ;;  %v5893_v20 = vadd.f32 %v5892_v49, %v5862_v15  ;;  %v7351_v21 = vpop.f32.mrb[8].mxu0 }
 0x1fa   : > { %v7397_v22 = vadd.f32 %v7351_v21, %v7111_v41  ;;  %v5564_v23 = vpop.f32.mrb[9].mxu0 }
 0x1fb   : > { %v5894_v25 = vadd.f32 %v5893_v20, %v5863_v17  ;;  %v7398_v26 = vadd.f32 %v5564_v23, %v2286_v44  ;;  %v5825_v28 = vadd.f32 %v7395_v9, %v5824_v19  ;;  %v7352_v31 = vpop.f32.mrb[10].mxu0 }
 0x1fc   : > { %5797 = vst [vmem:[%s8955_s27 + $0x50] sm:$0xff] %v7397_v22  ;;  %v7399_v32 = vadd.f32 %v7352_v31, %v7112_v4  ;;  %v5567_v34 = vpop.f32.mrb[11].mxu0  ;;  %v5867_v58 = vmul.f32 %v7397_v22, %v7397_v22 }
 0x1fd   : > { %5795 = vst [vmem:[%s8955_s27 + $0x40] sm:$0xff] %v7398_v26  ;;  %v5826_v35 = vadd.f32 %v7398_v26, %v5825_v28  ;;  %v5865_v39 = vmul.f32 %v7398_v26, %v7398_v26  ;;  %v5895_v40 = vadd.f32 %v5894_v25, %v5864_v24  ;;  %v7400_v27 = vadd.f32 %v5567_v34, %v8941_v45 }
 0x1fe   : > { %5798 = vst [vmem:[%s8955_s27 + $0x58] sm:$0xff] %v7399_v32  ;;  %v5868_v45 = vmul.f32 %v7399_v32, %v7399_v32 }
 0x1ff   : > { %v5896_v37 = vadd.f32 %v5895_v40, %v5865_v39  ;;  %5796 = vst [vmem:[%s8955_s27 + $0x48] sm:$0xff] %v7400_v27  ;;  %v5827_v46 = vadd.f32 %v7400_v27, %v5826_v35  ;;  %v5866_v52 = vmul.f32 %v7400_v27, %v7400_v27 }
 0x201   : > { %v5828_v18 = vadd.f32 %v7397_v22, %v5827_v46  ;;  %v5897_v12 = vadd.f32 %v5896_v37, %v5866_v52  ;;  %v7355_v41 = vpop.f32.mrb[12].mxu0 }
 0x202   : > { %v7401_v4 = vadd.f32 %v7355_v41, %v8943_v33  ;;  %v5580_v53 = vpop.f32.mrb[13].mxu0 }
 0x203   : > { %v7167_v42 = vpop.f32.mrb[16].mxu1  ;;  %v5898_v60 = vadd.f32 %v5897_v12, %v5867_v58  ;;  %v7402_v55 = vadd.f32 %v5580_v53, %v8945_v48  ;;  %v5829_v29 = vadd.f32 %v7399_v32, %v5828_v18  ;;  %v7356_v57 = vpop.f32.mrb[14].mxu0 }
 0x204   : > { %v3136_v43 = vpop.f32.mrb[17].mxu1  ;;  %5801 = vst [vmem:[%s8955_s27 + $0x70] sm:$0xff] %v7401_v4  ;;  %v7403_v59 = vadd.f32 %v7356_v57, %v8947_v50  ;;  %v5583_v61 = vpop.f32.mrb[15].mxu0  ;;  %v5871_v36 = vmul.f32 %v7401_v4, %v7401_v4 }
 0x205   : > { %v7168_v44 = vpop.f32.mrb[18].mxu1  ;;  %5799 = vst [vmem:[%s8955_s27 + $0x60] sm:$0xff] %v7402_v55  ;;  %v5830_v56 = vadd.f32 %v7402_v55, %v5829_v29  ;;  %v5869_v62 = vmul.f32 %v7402_v55, %v7402_v55  ;;  %v5899_v63 = vadd.f32 %v5898_v60, %v5868_v45  ;;  %v7404_v33 = vadd.f32 %v5583_v61, %v8949_v51 }
 0x206   : > { %v3139_v54 = vpop.f32.mrb[19].mxu1  ;;  %5802 = vst [vmem:[%s8955_s27 + $0x78] sm:$0xff] %v7403_v59  ;;  %v5872_v7 = vmul.f32 %v7403_v59, %v7403_v59 }
 0x207   : > { %v5900_v0 = vadd.f32 %v5899_v63, %v5869_v62  ;;  %5800 = vst [vmem:[%s8955_s27 + $0x68] sm:$0xff] %v7404_v33  ;;  %v5831_v16 = vadd.f32 %v7404_v33, %v5830_v56  ;;  %v5870_v30 = vmul.f32 %v7404_v33, %v7404_v33 }
 0x209   : > { %v5832_v48 = vadd.f32 %v7401_v4, %v5831_v16  ;;  %v5901_v1 = vadd.f32 %v5900_v0, %v5870_v30  ;;  %v7359_v2 = vpop.f32.mrb[16].mxu0 }
 0x20a   : > { %v7405_v50 = vadd.f32 %v7359_v2, %v7167_v42  ;;  %v5596_v5 = vpop.f32.mrb[17].mxu0 }
 0x20b   : > { %v7171_v3 = vpop.f32.mrb[20].mxu1  ;;  %v5902_v8 = vadd.f32 %v5901_v1, %v5871_v36  ;;  %v7406_v51 = vadd.f32 %v5596_v5, %v3136_v43  ;;  %v5833_v9 = vadd.f32 %v7403_v59, %v5832_v48  ;;  %v7360_v10 = vpop.f32.mrb[18].mxu0 }
 0x20c   : > { %v3152_v6 = vpop.f32.mrb[21].mxu1  ;;  %5805 = vst [vmem:[%s8955_s27 + $0x90] sm:$0xff] %v7405_v50  ;;  %v7407_v13 = vadd.f32 %v7360_v10, %v7168_v44  ;;  %v5599_v14 = vpop.f32.mrb[19].mxu0  ;;  %v5875_v22 = vmul.f32 %v7405_v50, %v7405_v50 }
 0x20d   : > { %v7172_v11 = vpop.f32.mrb[22].mxu1  ;;  %5803 = vst [vmem:[%s8955_s27 + $0x80] sm:$0xff] %v7406_v51  ;;  %v5834_v49 = vadd.f32 %v7406_v51, %v5833_v9  ;;  %v5873_v47 = vmul.f32 %v7406_v51, %v7406_v51  ;;  %v5903_v15 = vadd.f32 %v5902_v8, %v5872_v7  ;;  %v7408_v17 = vadd.f32 %v5599_v14, %v3139_v54 }
 0x20e   : > { %v3155_v38 = vpop.f32.mrb[23].mxu1  ;;  %5806 = vst [vmem:[%s8955_s27 + $0x98] sm:$0xff] %v7407_v13  ;;  %v5876_v31 = vmul.f32 %v7407_v13, %v7407_v13 }
 0x20f   : > { %v5904_v19 = vadd.f32 %v5903_v15, %v5873_v47  ;;  %5804 = vst [vmem:[%s8955_s27 + $0x88] sm:$0xff] %v7408_v17  ;;  %v5835_v20 = vadd.f32 %v7408_v17, %v5834_v49  ;;  %v5874_v21 = vmul.f32 %v7408_v17, %v7408_v17 }
 0x211   : > { %v5836_v23 = vadd.f32 %v7405_v50, %v5835_v20  ;;  %v5905_v24 = vadd.f32 %v5904_v19, %v5874_v21  ;;  %v7363_v25 = vpop.f32.mrb[20].mxu0 }
 0x212   : > { %v7409_v26 = vadd.f32 %v7363_v25, %v7171_v3  ;;  %v5612_v28 = vpop.f32.mrb[21].mxu0 }
 0x213   : > { %v5906_v32 = vadd.f32 %v5905_v24, %v5875_v22  ;;  %v7410_v34 = vadd.f32 %v5612_v28, %v3152_v6  ;;  %v5837_v35 = vadd.f32 %v7407_v13, %v5836_v23  ;;  %v7364_v39 = vpop.f32.mrb[22].mxu0  ;;  %v7175_v43 = vpop.f32.mrb[24].mxu1 }
 0x214   : > { %5809 = vst [vmem:[%s8955_s27 + $0xb0] sm:$0xff] %v7409_v26  ;;  %v7411_v40 = vadd.f32 %v7364_v39, %v7172_v11  ;;  %v5615_v27 = vpop.f32.mrb[23].mxu0  ;;  %v3168_v58 = vpop.f32.mrb[25].mxu1  ;;  %v5879_v53 = vmul.f32 %v7409_v26, %v7409_v26 }
 0x215   : > { %5807 = vst [vmem:[%s8955_s27 + $0xa0] sm:$0xff] %v7410_v34  ;;  %v5838_v37 = vadd.f32 %v7410_v34, %v5837_v35  ;;  %v5877_v46 = vmul.f32 %v7410_v34, %v7410_v34  ;;  %v5907_v52 = vadd.f32 %v5906_v32, %v5876_v31  ;;  %v7412_v42 = vadd.f32 %v5615_v27, %v3155_v38  ;;  %v7176_v44 = vpop.f32.mrb[26].mxu1 }
 0x216   : > { %5810 = vst [vmem:[%s8955_s27 + $0xb8] sm:$0xff] %v7411_v40  ;;  %v3171_v4 = vpop.f32.mrb[27].mxu1  ;;  %v5880_v57 = vmul.f32 %v7411_v40, %v7411_v40 }
 0x217   : > { %v5908_v18 = vadd.f32 %v5907_v52, %v5877_v46  ;;  %5808 = vst [vmem:[%s8955_s27 + $0xa8] sm:$0xff] %v7412_v42  ;;  %v5839_v12 = vadd.f32 %v7412_v42, %v5838_v37  ;;  %v5878_v41 = vmul.f32 %v7412_v42, %v7412_v42 }
 0x219   : > { %v5840_v54 = vadd.f32 %v7409_v26, %v5839_v12  ;;  %v5909_v45 = vadd.f32 %v5908_v18, %v5878_v41  ;;  %v7367_v60 = vpop.f32.mrb[24].mxu0 }
 0x21a   : > { %v7413_v55 = vadd.f32 %v7367_v60, %v7175_v43  ;;  %v5628_v29 = vpop.f32.mrb[25].mxu0 }
 0x21b   : > { %v5910_v59 = vadd.f32 %v5909_v45, %v5879_v53  ;;  %v7414_v61 = vadd.f32 %v5628_v29, %v3168_v58  ;;  %v5841_v56 = vadd.f32 %v7411_v40, %v5840_v54  ;;  %v7368_v62 = vpop.f32.mrb[26].mxu0 }
 0x21c   : > { %5813 = vst [vmem:[%s8955_s27 + $0xd0] sm:$0xff] %v7413_v55  ;;  %v7415_v63 = vadd.f32 %v7368_v62, %v7176_v44  ;;  %v5631_v33 = vpop.f32.mrb[27].mxu0  ;;  %v5883_v3 = vmul.f32 %v7413_v55, %v7413_v55 }
 0x21d   : > { %5811 = vst [vmem:[%s8955_s27 + $0xc0] sm:$0xff] %v7414_v61  ;;  %v5842_v0 = vadd.f32 %v7414_v61, %v5841_v56  ;;  %v5881_v16 = vmul.f32 %v7414_v61, %v7414_v61  ;;  %v5911_v30 = vadd.f32 %v5910_v59, %v5880_v57  ;;  %v7416_v36 = vadd.f32 %v5631_v33, %v3171_v4  ;;  %v7179_v6 = vpop.f32.mrb[28].mxu1 }
 0x21e   : > { %5814 = vst [vmem:[%s8955_s27 + $0xd8] sm:$0xff] %v7415_v63  ;;  %v3184_v51 = vpop.f32.mrb[29].mxu1  ;;  %v5884_v10 = vmul.f32 %v7415_v63, %v7415_v63 }
 0x21f   : > { %v5912_v48 = vadd.f32 %v5911_v30, %v5881_v16  ;;  %5812 = vst [vmem:[%s8955_s27 + $0xc8] sm:$0xff] %v7416_v36  ;;  %v5843_v1 = vadd.f32 %v7416_v36, %v5842_v0  ;;  %v5882_v2 = vmul.f32 %v7416_v36, %v7416_v36  ;;  %v7180_v38 = vpop.f32.mrb[30].mxu1 }
 0x220   : > { %v3187_v15 = vpop.f32.mrb[31].mxu1 }
 0x221   : > { %v5844_v50 = vadd.f32 %v7413_v55, %v5843_v1  ;;  %v5913_v5 = vadd.f32 %v5912_v48, %v5882_v2  ;;  %v7371_v7 = vpop.f32.mrb[28].mxu0 }
 0x222   : > { %v7417_v8 = vadd.f32 %v7371_v7, %v7179_v6  ;;  %v5644_v9 = vpop.f32.mrb[29].mxu0 }
 0x223   : > { %v5914_v11 = vadd.f32 %v5913_v5, %v5883_v3  ;;  %v7418_v13 = vadd.f32 %v5644_v9, %v3184_v51  ;;  %v5845_v14 = vadd.f32 %v7415_v63, %v5844_v50  ;;  %v7372_v49 = vpop.f32.mrb[30].mxu0 }
 0x224   : > { %5817 = vst [vmem:[%s8955_s27 + $0xf0] sm:$0xff] %v7417_v8  ;;  %v7419_v47 = vadd.f32 %v7372_v49, %v7180_v38  ;;  %v5647_v17 = vpop.f32.mrb[31].mxu0  ;;  %v5887_v26 = vmul.f32 %v7417_v8, %v7417_v8 }
 0x225   : > { %5815 = vst [vmem:[%s8955_s27 + $0xe0] sm:$0xff] %v7418_v13  ;;  %v5846_v19 = vadd.f32 %v7418_v13, %v5845_v14  ;;  %v5885_v20 = vmul.f32 %v7418_v13, %v7418_v13  ;;  %v5915_v21 = vadd.f32 %v5914_v11, %v5884_v10  ;;  %v7420_v22 = vadd.f32 %v5647_v17, %v3187_v15 }
 0x226   : > { %5818 = vst [vmem:[%s8955_s27 + $0xf8] sm:$0xff] %v7419_v47  ;;  %v5888_v32 = vmul.f32 %v7419_v47, %v7419_v47 }
 0x227   : > { %v5916_v23 = vadd.f32 %v5915_v21, %v5885_v20  ;;  %5816 = vst [vmem:[%s8955_s27 + $0xe8] sm:$0xff] %v7420_v22  ;;  %v5847_v24 = vadd.f32 %v7420_v22, %v5846_v19  ;;  %v5886_v25 = vmul.f32 %v7420_v22, %v7420_v22 }
 0x229   : > { %v5848_v28 = vadd.f32 %v7417_v8, %v5847_v24  ;;  %v5917_v31 = vadd.f32 %v5916_v23, %v5886_v25 }
 0x22b   : > { %v5849_v34 = vadd.f32 %v7419_v47, %v5848_v28  ;;  %v5918_v35 = vadd.f32 %v5917_v31, %v5887_v26 }
 0x22d   : > { %v5850_v39 = vrot.slane %v5849_v34, 4  ;;  %v5919_v40 = vadd.f32 %v5918_v35, %v5888_v32 }
 0x22f   : > { %v5851_v27 = vadd.f32 %v5850_v39, %v5849_v34  ;;  %v5920_v37 = vrot.slane %v5919_v40, 4 }
 0x231   : > { %v5852_v46 = vrot.slane %v5851_v27, 2  ;;  %v5921_v52 = vadd.f32 %v5920_v37, %v5919_v40 }
 0x233   : > { %v5853_v42 = vadd.f32 %v5852_v46, %v5851_v27  ;;  %v5922_v43 = vrot.slane %v5921_v52, 2 }
 0x235   : > { %v5854_v58 = vrot.slane %v5853_v42, 1  ;;  %v5923_v18 = vadd.f32 %v5922_v43, %v5921_v52 }
 0x237   : > { %v5855_v12 = vadd.f32 %v5854_v58, %v5853_v42  ;;  %v5924_v41 = vrot.slane %v5923_v18, 1 }
 0x239   : > { %5856 = vst [vmem:[%s214_s4] sm:$0x1] %v5855_v12  ;;  %v5925_v44 = vadd.f32 %v5924_v41, %v5923_v18 }
 0x23b   : > { %5926 = vst [vmem:[%s214_s4 + $0x1] sm:$0x1] %v5925_v44 }
 0x23c PF: > { %s14_s14 = sadd.s32 1, %s7820_s14   ;;  %s9015_s12 = smov %s7816_s13 }
 0x23d   : > { %p11_p5 = scmp.ge.s32.totalorder %s14_s14, 4   ;;  %s9016_s13 = smov %s9018_s15 }
 0x23f   :  { %13 = sbr.rel (!%p11_p5) target bundleno = 2 (0x2), region = 81 }

</bundles_post_ra>
